<compile_context>
chip_gen: v6e
topology: v6e:2x2x1
jax: 0.10.0
libtpu: 0.0.40
codegen_flags: <defaults>
</compile_context>

<pallas_src>
import jax
import jax.numpy as jnp
from jax import lax
from jax.experimental import pallas as pl
from jax.experimental.pallas import tpu as pltpu

K = 90
HIDDEN_SIZE = K            # LSTM hidden size
L = 6                      # output classes
IN_DIM = 57                # LSTM input feature dim
H_MID = HIDDEN_SIZE // 2   # 45
GATE_PAD = 128             # lane-aligned per-gate width (>= HIDDEN_SIZE)


def fclstm_kernel(x_ref, wih_ref, whh_ref, b_ref, w1_ref, b1_ref, w2_ref, b2_ref,
                  out_ref, zx_scr):
    # x_ref   : (T, B, IN_DIM)          time-major input
    # wih_ref : (IN_DIM, 4*GP)          W_ih.T; gate g in cols [g*GP, g*GP+90), rest 0
    # whh_ref : (GP, 4*GP)              W_hh.T; rows >= 90 zero, same column layout
    # b_ref   : (1, 4*GP)               b_ih + b_hh, zero in padded columns
    # w1_ref  : (GP, H_MID)             rows >= 90 zero;  b1_ref : (1, H_MID)
    # w2_ref  : (H_MID, L)              b2_ref : (1, L)
    # out_ref : (B, L)
    # zx_scr  : (T, B, 4*GP)            precomputed input projection (+ bias)
    T, B, _ = x_ref.shape
    GP = whh_ref.shape[0]

    # ---- Phase 1: input projection for all timesteps, off the recurrent chain ----
    wih = wih_ref[...]                                        # (IN_DIM, 4*GP)
    bias_b = jnp.broadcast_to(b_ref[...], (B, 4 * GP))        # hoisted broadcast

    def proj(t, carry):
        zx_scr[t] = (jnp.dot(x_ref[t], wih,
                             preferred_element_type=jnp.float32) + bias_b)
        return carry

    lax.fori_loop(0, T, proj, 0, unroll=True)

    # ---- Phase 2: serial recurrence; h/c carried in registers -------------------
    whh = whh_ref[...]                                        # (GP, 4*GP), loaded once

    def step(t, carry):
        h, c = carry
        z = zx_scr[t] + jnp.dot(h, whh, preferred_element_type=jnp.float32)  # (B, 4*GP)
        # lane-aligned gate slices (PyTorch gate order i, f, g, o)
        i_g = jax.nn.sigmoid(z[:, 0 * GP:1 * GP])
        f_g = jax.nn.sigmoid(z[:, 1 * GP:2 * GP])
        g_g = jnp.tanh(z[:, 2 * GP:3 * GP])
        o_g = jax.nn.sigmoid(z[:, 3 * GP:4 * GP])
        c_new = f_g * c + i_g * g_g
        h_new = o_g * jnp.tanh(c_new)
        return (h_new, c_new)

    h0 = jnp.zeros((B, GP), jnp.float32)
    c0 = jnp.zeros((B, GP), jnp.float32)
    h_last, _ = lax.fori_loop(0, T, step, (h0, c0), unroll=True)

    # ---- Phase 3: FC head + softmax (padded rows of w1 are zero, so the padded ---
    # ---- lanes of h_last contribute nothing) -------------------------------------
    y1 = jnp.dot(h_last, w1_ref[...], preferred_element_type=jnp.float32) + b1_ref[...]
    y1 = jnp.maximum(y1, 0.0)                                 # ReLU
    logits = jnp.dot(y1, w2_ref[...], preferred_element_type=jnp.float32) + b2_ref[...]
    m = jnp.max(logits, axis=1, keepdims=True)
    e = jnp.exp(logits - m)
    out_ref[...] = e / jnp.sum(e, axis=1, keepdims=True)


@jax.jit
def fclstm_forward(x, params):
    """x: (B, T, IN_DIM) batch_first float32. Returns (B, L) softmax probs."""
    B, T, _ = x.shape
    x_tm = jnp.transpose(x, (1, 0, 2)).astype(jnp.float32)    # (T, B, IN_DIM)

    GP = GATE_PAD
    H = HIDDEN_SIZE
    w_ih = params["w_ih"].astype(jnp.float32)                 # (4H, IN_DIM)
    w_hh = params["w_hh"].astype(jnp.float32)                 # (4H, H)
    b_all = (params["b_ih"] + params["b_hh"]).astype(jnp.float32)   # (4H,)

    def pad_gates_T(w, k_pad):
        # w: (4H, Kin) -> (k_pad, 4*GP); gate g transposed into cols [g*GP, g*GP+H)
        out = jnp.zeros((k_pad, 4 * GP), jnp.float32)
        kin = w.shape[1]
        for g in range(4):
            blk = w[g * H:(g + 1) * H, :].T                   # (Kin, H)
            out = out.at[:kin, g * GP:g * GP + H].set(blk)
        return out

    wih_p = pad_gates_T(w_ih, IN_DIM)                         # (IN_DIM, 512)
    whh_p = pad_gates_T(w_hh, GP)                             # (128, 512), rows>=90 zero
    b_p = jnp.zeros((1, 4 * GP), jnp.float32)
    for g in range(4):
        b_p = b_p.at[0, g * GP:g * GP + H].set(b_all[g * H:(g + 1) * H])

    w1_p = jnp.zeros((GP, H_MID), jnp.float32).at[:H, :].set(params["w1"].T)
    b1 = params["b1"].reshape(1, H_MID).astype(jnp.float32)
    w2 = params["w2"].T.astype(jnp.float32)                   # (H_MID, L)
    b2 = params["b2"].reshape(1, L).astype(jnp.float32)

    vmem = pl.BlockSpec(memory_space=pltpu.MemorySpace.VMEM)
    out = pl.pallas_call(
        fclstm_kernel,
        out_shape=jax.ShapeDtypeStruct((B, L), jnp.float32),
        in_specs=[vmem] * 8,
        out_specs=vmem,
        scratch_shapes=[
            pltpu.VMEM((T, B, 4 * GP), jnp.float32),          # precomputed zx
        ],
    )(x_tm, wih_p, whh_p, b_p, w1_p, b1, w2, b2)
    return out


def init_params(key):
    """Deterministic init matching the PyTorch module's parameter shapes."""
    ks = jax.random.split(key, 8)
    bound = 1.0 / jnp.sqrt(jnp.float32(HIDDEN_SIZE))
    u = lambda k, shape, b: jax.random.uniform(k, shape, jnp.float32, -b, b)
    return {
        # nn.LSTM(in_dim, HIDDEN_SIZE) — gate order i, f, g, o
        "w_ih": u(ks[0], (4 * HIDDEN_SIZE, IN_DIM), bound),
        "w_hh": u(ks[1], (4 * HIDDEN_SIZE, HIDDEN_SIZE), bound),
        "b_ih": u(ks[2], (4 * HIDDEN_SIZE,), bound),
        "b_hh": u(ks[3], (4 * HIDDEN_SIZE,), bound),
        # nn.Linear(HIDDEN_SIZE, HIDDEN_SIZE//2)
        "w1": u(ks[4], (H_MID, HIDDEN_SIZE), 1.0 / jnp.sqrt(jnp.float32(HIDDEN_SIZE))),
        "b1": u(ks[5], (H_MID,), 1.0 / jnp.sqrt(jnp.float32(HIDDEN_SIZE))),
        # nn.Linear(HIDDEN_SIZE//2, L)
        "w2": u(ks[6], (L, H_MID), 1.0 / jnp.sqrt(jnp.float32(H_MID))),
        "b2": u(ks[7], (L,), 1.0 / jnp.sqrt(jnp.float32(H_MID))),
    }


def fclstm_reference(x, p):
    """Pure-JAX reference of the same forward pass, for validation."""
    B, T, _ = x.shape
    h = jnp.zeros((B, HIDDEN_SIZE), jnp.float32)
    c = jnp.zeros((B, HIDDEN_SIZE), jnp.float32)
    H = HIDDEN_SIZE
    for t in range(T):
        z = x[:, t, :] @ p["w_ih"].T + h @ p["w_hh"].T + p["b_ih"] + p["b_hh"]
        i = jax.nn.sigmoid(z[:, 0:H])
        f = jax.nn.sigmoid(z[:, H:2 * H])
        g = jnp.tanh(z[:, 2 * H:3 * H])
        o = jax.nn.sigmoid(z[:, 3 * H:4 * H])
        c = f * c + i * g
        h = o * jnp.tanh(c)
    y = jnp.maximum(h @ p["w1"].T + p["b1"], 0.0)
    logits = y @ p["w2"].T + p["b2"]
    return jax.nn.softmax(logits, axis=1)


if __name__ == "__main__":
    key = jax.random.PRNGKey(0)
    k_x, k_p = jax.random.split(key)

    B, T = 2, 8
    x = jax.random.normal(k_x, (B, T, IN_DIM), dtype=jnp.float32)
    params = init_params(k_p)

    out = fclstm_forward(x, params)
    out = jax.block_until_ready(out)

    ref = fclstm_reference(x, params)
    assert out.shape == (B, L)
    assert jnp.allclose(out, ref, atol=1e-5, rtol=1e-5), (
        f"mismatch: max abs diff {jnp.max(jnp.abs(out - ref))}")
    # rows of a softmax sum to 1
    assert jnp.allclose(jnp.sum(out, axis=1), 1.0, atol=1e-5)

    print("KERNEL_OK")
</pallas_src>

<mosaic_0001>
module attributes {stable_mosaic.version = 11 : i64} {
  func.func @fclstm_kernel(%arg0: memref<8x2x57xf32, #tpu.memory_space<vmem>>, %arg1: memref<57x512xf32, #tpu.memory_space<vmem>>, %arg2: memref<128x512xf32, #tpu.memory_space<vmem>>, %arg3: memref<1x512xf32, #tpu.memory_space<vmem>>, %arg4: memref<128x45xf32, #tpu.memory_space<vmem>>, %arg5: memref<1x45xf32, #tpu.memory_space<vmem>>, %arg6: memref<45x6xf32, #tpu.memory_space<vmem>>, %arg7: memref<1x6xf32, #tpu.memory_space<vmem>>, %arg8: memref<2x6xf32, #tpu.memory_space<vmem>>, %arg9: memref<8x2x512xf32, #tpu.memory_space<vmem>>) attributes {dimension_semantics = [], scalar_prefetch = 0 : i64, scratch_operands = 1 : i64, tpu.core_type = #tpu.core_type<tc>} {
    %c0 = arith.constant 0 : index
    %c0_0 = arith.constant 0 : index
    %0 = vector.load %arg1[%c0, %c0_0] : memref<57x512xf32, #tpu.memory_space<vmem>>, vector<57x512xf32>
    %c0_1 = arith.constant 0 : index
    %c0_2 = arith.constant 0 : index
    %1 = vector.load %arg3[%c0_1, %c0_2] : memref<1x512xf32, #tpu.memory_space<vmem>>, vector<1x512xf32>
    %2 = vector.shape_cast %1 : vector<1x512xf32> to vector<1x512xf32>
    %3 = vector.broadcast %2 : vector<1x512xf32> to vector<2x512xf32>
    %c0_i32 = arith.constant 0 : i32
    %4 = arith.index_cast %c0_i32 : i32 to index
    %c0_3 = arith.constant 0 : index
    %c0_4 = arith.constant 0 : index
    %5 = vector.load %arg0[%4, %c0_3, %c0_4] : memref<8x2x57xf32, #tpu.memory_space<vmem>>, vector<1x2x57xf32>
    %6 = vector.shape_cast %5 : vector<1x2x57xf32> to vector<2x57xf32>
    %cst = arith.constant dense<0.000000e+00> : vector<2x512xf32>
    %7 = tpu.matmul %6, %0, %cst {dimension_numbers = #tpu.dot_dimension_numbers<[1], [0], [0], [1], [0, 0, 1, 1], [], []>} : vector<2x57xf32>, vector<57x512xf32>, vector<2x512xf32> -> vector<2x512xf32>
    %8 = arith.addf %7, %3 : vector<2x512xf32>
    %9 = arith.index_cast %c0_i32 : i32 to index
    %c0_5 = arith.constant 0 : index
    %c0_6 = arith.constant 0 : index
    %10 = vector.load %arg9[%9, %c0_5, %c0_6] : memref<8x2x512xf32, #tpu.memory_space<vmem>>, vector<1x2x512xf32>
    %11 = vector.shape_cast %10 : vector<1x2x512xf32> to vector<2x512xf32>
    %12 = vector.shape_cast %8 : vector<2x512xf32> to vector<1x2x512xf32>
    tpu.vector_store %arg9[%9, %c0_5, %c0_6], %12 {strides = array<i32>} : memref<8x2x512xf32, #tpu.memory_space<vmem>>, vector<1x2x512xf32>,
    %c1_i32 = arith.constant 1 : i32
    %13 = arith.index_cast %c1_i32 : i32 to index
    %c0_7 = arith.constant 0 : index
    %c0_8 = arith.constant 0 : index
    %14 = vector.load %arg0[%13, %c0_7, %c0_8] : memref<8x2x57xf32, #tpu.memory_space<vmem>>, vector<1x2x57xf32>
    %15 = vector.shape_cast %14 : vector<1x2x57xf32> to vector<2x57xf32>
    %cst_9 = arith.constant dense<0.000000e+00> : vector<2x512xf32>
    %16 = tpu.matmul %15, %0, %cst_9 {dimension_numbers = #tpu.dot_dimension_numbers<[1], [0], [0], [1], [0, 0, 1, 1], [], []>} : vector<2x57xf32>, vector<57x512xf32>, vector<2x512xf32> -> vector<2x512xf32>
    %17 = arith.addf %16, %3 : vector<2x512xf32>
    %18 = arith.index_cast %c1_i32 : i32 to index
    %c0_10 = arith.constant 0 : index
    %c0_11 = arith.constant 0 : index
    %19 = vector.load %arg9[%18, %c0_10, %c0_11] : memref<8x2x512xf32, #tpu.memory_space<vmem>>, vector<1x2x512xf32>
    %20 = vector.shape_cast %19 : vector<1x2x512xf32> to vector<2x512xf32>
    %21 = vector.shape_cast %17 : vector<2x512xf32> to vector<1x2x512xf32>
    tpu.vector_store %arg9[%18, %c0_10, %c0_11], %21 {strides = array<i32>} : memref<8x2x512xf32, #tpu.memory_space<vmem>>, vector<1x2x512xf32>,
    %c2_i32 = arith.constant 2 : i32
    %22 = arith.index_cast %c2_i32 : i32 to index
    %c0_12 = arith.constant 0 : index
    %c0_13 = arith.constant 0 : index
    %23 = vector.load %arg0[%22, %c0_12, %c0_13] : memref<8x2x57xf32, #tpu.memory_space<vmem>>, vector<1x2x57xf32>
    %24 = vector.shape_cast %23 : vector<1x2x57xf32> to vector<2x57xf32>
    %cst_14 = arith.constant dense<0.000000e+00> : vector<2x512xf32>
    %25 = tpu.matmul %24, %0, %cst_14 {dimension_numbers = #tpu.dot_dimension_numbers<[1], [0], [0], [1], [0, 0, 1, 1], [], []>} : vector<2x57xf32>, vector<57x512xf32>, vector<2x512xf32> -> vector<2x512xf32>
    %26 = arith.addf %25, %3 : vector<2x512xf32>
    %27 = arith.index_cast %c2_i32 : i32 to index
    %c0_15 = arith.constant 0 : index
    %c0_16 = arith.constant 0 : index
    %28 = vector.load %arg9[%27, %c0_15, %c0_16] : memref<8x2x512xf32, #tpu.memory_space<vmem>>, vector<1x2x512xf32>
    %29 = vector.shape_cast %28 : vector<1x2x512xf32> to vector<2x512xf32>
    %30 = vector.shape_cast %26 : vector<2x512xf32> to vector<1x2x512xf32>
    tpu.vector_store %arg9[%27, %c0_15, %c0_16], %30 {strides = array<i32>} : memref<8x2x512xf32, #tpu.memory_space<vmem>>, vector<1x2x512xf32>,
    %c3_i32 = arith.constant 3 : i32
    %31 = arith.index_cast %c3_i32 : i32 to index
    %c0_17 = arith.constant 0 : index
    %c0_18 = arith.constant 0 : index
    %32 = vector.load %arg0[%31, %c0_17, %c0_18] : memref<8x2x57xf32, #tpu.memory_space<vmem>>, vector<1x2x57xf32>
    %33 = vector.shape_cast %32 : vector<1x2x57xf32> to vector<2x57xf32>
    %cst_19 = arith.constant dense<0.000000e+00> : vector<2x512xf32>
    %34 = tpu.matmul %33, %0, %cst_19 {dimension_numbers = #tpu.dot_dimension_numbers<[1], [0], [0], [1], [0, 0, 1, 1], [], []>} : vector<2x57xf32>, vector<57x512xf32>, vector<2x512xf32> -> vector<2x512xf32>
    %35 = arith.addf %34, %3 : vector<2x512xf32>
    %36 = arith.index_cast %c3_i32 : i32 to index
    %c0_20 = arith.constant 0 : index
    %c0_21 = arith.constant 0 : index
    %37 = vector.load %arg9[%36, %c0_20, %c0_21] : memref<8x2x512xf32, #tpu.memory_space<vmem>>, vector<1x2x512xf32>
    %38 = vector.shape_cast %37 : vector<1x2x512xf32> to vector<2x512xf32>
    %39 = vector.shape_cast %35 : vector<2x512xf32> to vector<1x2x512xf32>
    tpu.vector_store %arg9[%36, %c0_20, %c0_21], %39 {strides = array<i32>} : memref<8x2x512xf32, #tpu.memory_space<vmem>>, vector<1x2x512xf32>,
    %c4_i32 = arith.constant 4 : i32
    %40 = arith.index_cast %c4_i32 : i32 to index
    %c0_22 = arith.constant 0 : index
    %c0_23 = arith.constant 0 : index
    %41 = vector.load %arg0[%40, %c0_22, %c0_23] : memref<8x2x57xf32, #tpu.memory_space<vmem>>, vector<1x2x57xf32>
    %42 = vector.shape_cast %41 : vector<1x2x57xf32> to vector<2x57xf32>
    %cst_24 = arith.constant dense<0.000000e+00> : vector<2x512xf32>
    %43 = tpu.matmul %42, %0, %cst_24 {dimension_numbers = #tpu.dot_dimension_numbers<[1], [0], [0], [1], [0, 0, 1, 1], [], []>} : vector<2x57xf32>, vector<57x512xf32>, vector<2x512xf32> -> vector<2x512xf32>
    %44 = arith.addf %43, %3 : vector<2x512xf32>
    %45 = arith.index_cast %c4_i32 : i32 to index
    %c0_25 = arith.constant 0 : index
    %c0_26 = arith.constant 0 : index
    %46 = vector.load %arg9[%45, %c0_25, %c0_26] : memref<8x2x512xf32, #tpu.memory_space<vmem>>, vector<1x2x512xf32>
    %47 = vector.shape_cast %46 : vector<1x2x512xf32> to vector<2x512xf32>
    %48 = vector.shape_cast %44 : vector<2x512xf32> to vector<1x2x512xf32>
    tpu.vector_store %arg9[%45, %c0_25, %c0_26], %48 {strides = array<i32>} : memref<8x2x512xf32, #tpu.memory_space<vmem>>, vector<1x2x512xf32>,
    %c5_i32 = arith.constant 5 : i32
    %49 = arith.index_cast %c5_i32 : i32 to index
    %c0_27 = arith.constant 0 : index
    %c0_28 = arith.constant 0 : index
    %50 = vector.load %arg0[%49, %c0_27, %c0_28] : memref<8x2x57xf32, #tpu.memory_space<vmem>>, vector<1x2x57xf32>
    %51 = vector.shape_cast %50 : vector<1x2x57xf32> to vector<2x57xf32>
    %cst_29 = arith.constant dense<0.000000e+00> : vector<2x512xf32>
    %52 = tpu.matmul %51, %0, %cst_29 {dimension_numbers = #tpu.dot_dimension_numbers<[1], [0], [0], [1], [0, 0, 1, 1], [], []>} : vector<2x57xf32>, vector<57x512xf32>, vector<2x512xf32> -> vector<2x512xf32>
    %53 = arith.addf %52, %3 : vector<2x512xf32>
    %54 = arith.index_cast %c5_i32 : i32 to index
    %c0_30 = arith.constant 0 : index
    %c0_31 = arith.constant 0 : index
    %55 = vector.load %arg9[%54, %c0_30, %c0_31] : memref<8x2x512xf32, #tpu.memory_space<vmem>>, vector<1x2x512xf32>
    %56 = vector.shape_cast %55 : vector<1x2x512xf32> to vector<2x512xf32>
    %57 = vector.shape_cast %53 : vector<2x512xf32> to vector<1x2x512xf32>
    tpu.vector_store %arg9[%54, %c0_30, %c0_31], %57 {strides = array<i32>} : memref<8x2x512xf32, #tpu.memory_space<vmem>>, vector<1x2x512xf32>,
    %c6_i32 = arith.constant 6 : i32
    %58 = arith.index_cast %c6_i32 : i32 to index
    %c0_32 = arith.constant 0 : index
    %c0_33 = arith.constant 0 : index
    %59 = vector.load %arg0[%58, %c0_32, %c0_33] : memref<8x2x57xf32, #tpu.memory_space<vmem>>, vector<1x2x57xf32>
    %60 = vector.shape_cast %59 : vector<1x2x57xf32> to vector<2x57xf32>
    %cst_34 = arith.constant dense<0.000000e+00> : vector<2x512xf32>
    %61 = tpu.matmul %60, %0, %cst_34 {dimension_numbers = #tpu.dot_dimension_numbers<[1], [0], [0], [1], [0, 0, 1, 1], [], []>} : vector<2x57xf32>, vector<57x512xf32>, vector<2x512xf32> -> vector<2x512xf32>
    %62 = arith.addf %61, %3 : vector<2x512xf32>
    %63 = arith.index_cast %c6_i32 : i32 to index
    %c0_35 = arith.constant 0 : index
    %c0_36 = arith.constant 0 : index
    %64 = vector.load %arg9[%63, %c0_35, %c0_36] : memref<8x2x512xf32, #tpu.memory_space<vmem>>, vector<1x2x512xf32>
    %65 = vector.shape_cast %64 : vector<1x2x512xf32> to vector<2x512xf32>
    %66 = vector.shape_cast %62 : vector<2x512xf32> to vector<1x2x512xf32>
    tpu.vector_store %arg9[%63, %c0_35, %c0_36], %66 {strides = array<i32>} : memref<8x2x512xf32, #tpu.memory_space<vmem>>, vector<1x2x512xf32>,
    %c7_i32 = arith.constant 7 : i32
    %67 = arith.index_cast %c7_i32 : i32 to index
    %c0_37 = arith.constant 0 : index
    %c0_38 = arith.constant 0 : index
    %68 = vector.load %arg0[%67, %c0_37, %c0_38] : memref<8x2x57xf32, #tpu.memory_space<vmem>>, vector<1x2x57xf32>
    %69 = vector.shape_cast %68 : vector<1x2x57xf32> to vector<2x57xf32>
    %cst_39 = arith.constant dense<0.000000e+00> : vector<2x512xf32>
    %70 = tpu.matmul %69, %0, %cst_39 {dimension_numbers = #tpu.dot_dimension_numbers<[1], [0], [0], [1], [0, 0, 1, 1], [], []>} : vector<2x57xf32>, vector<57x512xf32>, vector<2x512xf32> -> vector<2x512xf32>
    %71 = arith.addf %70, %3 : vector<2x512xf32>
    %72 = arith.index_cast %c7_i32 : i32 to index
    %c0_40 = arith.constant 0 : index
    %c0_41 = arith.constant 0 : index
    %73 = vector.load %arg9[%72, %c0_40, %c0_41] : memref<8x2x512xf32, #tpu.memory_space<vmem>>, vector<1x2x512xf32>
    %74 = vector.shape_cast %73 : vector<1x2x512xf32> to vector<2x512xf32>
    %75 = vector.shape_cast %71 : vector<2x512xf32> to vector<1x2x512xf32>
    tpu.vector_store %arg9[%72, %c0_40, %c0_41], %75 {strides = array<i32>} : memref<8x2x512xf32, #tpu.memory_space<vmem>>, vector<1x2x512xf32>,
    %c8_i32 = arith.constant 8 : i32
    %c0_42 = arith.constant 0 : index
    %c0_43 = arith.constant 0 : index
    %76 = vector.load %arg2[%c0_42, %c0_43] : memref<128x512xf32, #tpu.memory_space<vmem>>, vector<128x512xf32>
    %cst_44 = arith.constant 0.000000e+00 : f32
    %77 = vector.broadcast %cst_44 : f32 to vector<2x128xf32>
    %cst_45 = arith.constant 0.000000e+00 : f32
    %78 = vector.broadcast %cst_45 : f32 to vector<2x128xf32>
    %c0_i32_46 = arith.constant 0 : i32
    %79 = arith.index_cast %c0_i32_46 : i32 to index
    %c0_47 = arith.constant 0 : index
    %c0_48 = arith.constant 0 : index
    %80 = vector.load %arg9[%79, %c0_47, %c0_48] : memref<8x2x512xf32, #tpu.memory_space<vmem>>, vector<1x2x512xf32>
    %81 = vector.shape_cast %80 : vector<1x2x512xf32> to vector<2x512xf32>
    %cst_49 = arith.constant dense<0.000000e+00> : vector<2x512xf32>
    %82 = tpu.matmul %77, %76, %cst_49 {dimension_numbers = #tpu.dot_dimension_numbers<[1], [0], [0], [1], [0, 0, 1, 1], [], []>} : vector<2x128xf32>, vector<128x512xf32>, vector<2x512xf32> -> vector<2x512xf32>
    %83 = arith.addf %81, %82 : vector<2x512xf32>
    %84 = vector.extract_strided_slice %83 {offsets = [0, 0], sizes = [2, 128], strides = [1, 1]} : vector<2x512xf32> to vector<2x128xf32>
    %85 = arith.negf %84 : vector<2x128xf32>
    %86 = math.exp %85 : vector<2x128xf32>
    %cst_50 = arith.constant 1.000000e+00 : f32
    %87 = vector.broadcast %cst_50 : f32 to vector<2x128xf32>
    %88 = arith.addf %87, %86 : vector<2x128xf32>
    %89 = arith.divf %87, %88 : vector<2x128xf32>
    %90 = vector.extract_strided_slice %83 {offsets = [0, 128], sizes = [2, 128], strides = [1, 1]} : vector<2x512xf32> to vector<2x128xf32>
    %91 = arith.negf %90 : vector<2x128xf32>
    %92 = math.exp %91 : vector<2x128xf32>
    %cst_51 = arith.constant 1.000000e+00 : f32
    %93 = vector.broadcast %cst_51 : f32 to vector<2x128xf32>
    %94 = arith.addf %93, %92 : vector<2x128xf32>
    %95 = arith.divf %93, %94 : vector<2x128xf32>
    %96 = vector.extract_strided_slice %83 {offsets = [0, 256], sizes = [2, 128], strides = [1, 1]} : vector<2x512xf32> to vector<2x128xf32>
    %97 = math.tanh %96 : vector<2x128xf32>
    %98 = vector.extract_strided_slice %83 {offsets = [0, 384], sizes = [2, 128], strides = [1, 1]} : vector<2x512xf32> to vector<2x128xf32>
    %99 = arith.negf %98 : vector<2x128xf32>
    %100 = math.exp %99 : vector<2x128xf32>
    %cst_52 = arith.constant 1.000000e+00 : f32
    %101 = vector.broadcast %cst_52 : f32 to vector<2x128xf32>
    %102 = arith.addf %101, %100 : vector<2x128xf32>
    %103 = arith.divf %101, %102 : vector<2x128xf32>
    %104 = arith.mulf %95, %78 : vector<2x128xf32>
    %105 = arith.mulf %89, %97 : vector<2x128xf32>
    %106 = arith.addf %104, %105 : vector<2x128xf32>
    %107 = math.tanh %106 : vector<2x128xf32>
    %108 = arith.mulf %103, %107 : vector<2x128xf32>
    %c1_i32_53 = arith.constant 1 : i32
    %109 = arith.index_cast %c1_i32_53 : i32 to index
    %c0_54 = arith.constant 0 : index
    %c0_55 = arith.constant 0 : index
    %110 = vector.load %arg9[%109, %c0_54, %c0_55] : memref<8x2x512xf32, #tpu.memory_space<vmem>>, vector<1x2x512xf32>
    %111 = vector.shape_cast %110 : vector<1x2x512xf32> to vector<2x512xf32>
    %cst_56 = arith.constant dense<0.000000e+00> : vector<2x512xf32>
    %112 = tpu.matmul %108, %76, %cst_56 {dimension_numbers = #tpu.dot_dimension_numbers<[1], [0], [0], [1], [0, 0, 1, 1], [], []>} : vector<2x128xf32>, vector<128x512xf32>, vector<2x512xf32> -> vector<2x512xf32>
    %113 = arith.addf %111, %112 : vector<2x512xf32>
    %114 = vector.extract_strided_slice %113 {offsets = [0, 0], sizes = [2, 128], strides = [1, 1]} : vector<2x512xf32> to vector<2x128xf32>
    %115 = arith.negf %114 : vector<2x128xf32>
    %116 = math.exp %115 : vector<2x128xf32>
    %cst_57 = arith.constant 1.000000e+00 : f32
    %117 = vector.broadcast %cst_57 : f32 to vector<2x128xf32>
    %118 = arith.addf %117, %116 : vector<2x128xf32>
    %119 = arith.divf %117, %118 : vector<2x128xf32>
    %120 = vector.extract_strided_slice %113 {offsets = [0, 128], sizes = [2, 128], strides = [1, 1]} : vector<2x512xf32> to vector<2x128xf32>
    %121 = arith.negf %120 : vector<2x128xf32>
    %122 = math.exp %121 : vector<2x128xf32>
    %cst_58 = arith.constant 1.000000e+00 : f32
    %123 = vector.broadcast %cst_58 : f32 to vector<2x128xf32>
    %124 = arith.addf %123, %122 : vector<2x128xf32>
    %125 = arith.divf %123, %124 : vector<2x128xf32>
    %126 = vector.extract_strided_slice %113 {offsets = [0, 256], sizes = [2, 128], strides = [1, 1]} : vector<2x512xf32> to vector<2x128xf32>
    %127 = math.tanh %126 : vector<2x128xf32>
    %128 = vector.extract_strided_slice %113 {offsets = [0, 384], sizes = [2, 128], strides = [1, 1]} : vector<2x512xf32> to vector<2x128xf32>
    %129 = arith.negf %128 : vector<2x128xf32>
    %130 = math.exp %129 : vector<2x128xf32>
    %cst_59 = arith.constant 1.000000e+00 : f32
    %131 = vector.broadcast %cst_59 : f32 to vector<2x128xf32>
    %132 = arith.addf %131, %130 : vector<2x128xf32>
    %133 = arith.divf %131, %132 : vector<2x128xf32>
    %134 = arith.mulf %125, %106 : vector<2x128xf32>
    %135 = arith.mulf %119, %127 : vector<2x128xf32>
    %136 = arith.addf %134, %135 : vector<2x128xf32>
    %137 = math.tanh %136 : vector<2x128xf32>
    %138 = arith.mulf %133, %137 : vector<2x128xf32>
    %c2_i32_60 = arith.constant 2 : i32
    %139 = arith.index_cast %c2_i32_60 : i32 to index
    %c0_61 = arith.constant 0 : index
    %c0_62 = arith.constant 0 : index
    %140 = vector.load %arg9[%139, %c0_61, %c0_62] : memref<8x2x512xf32, #tpu.memory_space<vmem>>, vector<1x2x512xf32>
    %141 = vector.shape_cast %140 : vector<1x2x512xf32> to vector<2x512xf32>
    %cst_63 = arith.constant dense<0.000000e+00> : vector<2x512xf32>
    %142 = tpu.matmul %138, %76, %cst_63 {dimension_numbers = #tpu.dot_dimension_numbers<[1], [0], [0], [1], [0, 0, 1, 1], [], []>} : vector<2x128xf32>, vector<128x512xf32>, vector<2x512xf32> -> vector<2x512xf32>
    %143 = arith.addf %141, %142 : vector<2x512xf32>
    %144 = vector.extract_strided_slice %143 {offsets = [0, 0], sizes = [2, 128], strides = [1, 1]} : vector<2x512xf32> to vector<2x128xf32>
    %145 = arith.negf %144 : vector<2x128xf32>
    %146 = math.exp %145 : vector<2x128xf32>
    %cst_64 = arith.constant 1.000000e+00 : f32
    %147 = vector.broadcast %cst_64 : f32 to vector<2x128xf32>
    %148 = arith.addf %147, %146 : vector<2x128xf32>
    %149 = arith.divf %147, %148 : vector<2x128xf32>
    %150 = vector.extract_strided_slice %143 {offsets = [0, 128], sizes = [2, 128], strides = [1, 1]} : vector<2x512xf32> to vector<2x128xf32>
    %151 = arith.negf %150 : vector<2x128xf32>
    %152 = math.exp %151 : vector<2x128xf32>
    %cst_65 = arith.constant 1.000000e+00 : f32
    %153 = vector.broadcast %cst_65 : f32 to vector<2x128xf32>
    %154 = arith.addf %153, %152 : vector<2x128xf32>
    %155 = arith.divf %153, %154 : vector<2x128xf32>
    %156 = vector.extract_strided_slice %143 {offsets = [0, 256], sizes = [2, 128], strides = [1, 1]} : vector<2x512xf32> to vector<2x128xf32>
    %157 = math.tanh %156 : vector<2x128xf32>
    %158 = vector.extract_strided_slice %143 {offsets = [0, 384], sizes = [2, 128], strides = [1, 1]} : vector<2x512xf32> to vector<2x128xf32>
    %159 = arith.negf %158 : vector<2x128xf32>
    %160 = math.exp %159 : vector<2x128xf32>
    %cst_66 = arith.constant 1.000000e+00 : f32
    %161 = vector.broadcast %cst_66 : f32 to vector<2x128xf32>
    %162 = arith.addf %161, %160 : vector<2x128xf32>
    %163 = arith.divf %161, %162 : vector<2x128xf32>
    %164 = arith.mulf %155, %136 : vector<2x128xf32>
    %165 = arith.mulf %149, %157 : vector<2x128xf32>
    %166 = arith.addf %164, %165 : vector<2x128xf32>
    %167 = math.tanh %166 : vector<2x128xf32>
    %168 = arith.mulf %163, %167 : vector<2x128xf32>
    %c3_i32_67 = arith.constant 3 : i32
    %169 = arith.index_cast %c3_i32_67 : i32 to index
    %c0_68 = arith.constant 0 : index
    %c0_69 = arith.constant 0 : index
    %170 = vector.load %arg9[%169, %c0_68, %c0_69] : memref<8x2x512xf32, #tpu.memory_space<vmem>>, vector<1x2x512xf32>
    %171 = vector.shape_cast %170 : vector<1x2x512xf32> to vector<2x512xf32>
    %cst_70 = arith.constant dense<0.000000e+00> : vector<2x512xf32>
    %172 = tpu.matmul %168, %76, %cst_70 {dimension_numbers = #tpu.dot_dimension_numbers<[1], [0], [0], [1], [0, 0, 1, 1], [], []>} : vector<2x128xf32>, vector<128x512xf32>, vector<2x512xf32> -> vector<2x512xf32>
    %173 = arith.addf %171, %172 : vector<2x512xf32>
    %174 = vector.extract_strided_slice %173 {offsets = [0, 0], sizes = [2, 128], strides = [1, 1]} : vector<2x512xf32> to vector<2x128xf32>
    %175 = arith.negf %174 : vector<2x128xf32>
    %176 = math.exp %175 : vector<2x128xf32>
    %cst_71 = arith.constant 1.000000e+00 : f32
    %177 = vector.broadcast %cst_71 : f32 to vector<2x128xf32>
    %178 = arith.addf %177, %176 : vector<2x128xf32>
    %179 = arith.divf %177, %178 : vector<2x128xf32>
    %180 = vector.extract_strided_slice %173 {offsets = [0, 128], sizes = [2, 128], strides = [1, 1]} : vector<2x512xf32> to vector<2x128xf32>
    %181 = arith.negf %180 : vector<2x128xf32>
    %182 = math.exp %181 : vector<2x128xf32>
    %cst_72 = arith.constant 1.000000e+00 : f32
    %183 = vector.broadcast %cst_72 : f32 to vector<2x128xf32>
    %184 = arith.addf %183, %182 : vector<2x128xf32>
    %185 = arith.divf %183, %184 : vector<2x128xf32>
    %186 = vector.extract_strided_slice %173 {offsets = [0, 256], sizes = [2, 128], strides = [1, 1]} : vector<2x512xf32> to vector<2x128xf32>
    %187 = math.tanh %186 : vector<2x128xf32>
    %188 = vector.extract_strided_slice %173 {offsets = [0, 384], sizes = [2, 128], strides = [1, 1]} : vector<2x512xf32> to vector<2x128xf32>
    %189 = arith.negf %188 : vector<2x128xf32>
    %190 = math.exp %189 : vector<2x128xf32>
    %cst_73 = arith.constant 1.000000e+00 : f32
    %191 = vector.broadcast %cst_73 : f32 to vector<2x128xf32>
    %192 = arith.addf %191, %190 : vector<2x128xf32>
    %193 = arith.divf %191, %192 : vector<2x128xf32>
    %194 = arith.mulf %185, %166 : vector<2x128xf32>
    %195 = arith.mulf %179, %187 : vector<2x128xf32>
    %196 = arith.addf %194, %195 : vector<2x128xf32>
    %197 = math.tanh %196 : vector<2x128xf32>
    %198 = arith.mulf %193, %197 : vector<2x128xf32>
    %c4_i32_74 = arith.constant 4 : i32
    %199 = arith.index_cast %c4_i32_74 : i32 to index
    %c0_75 = arith.constant 0 : index
    %c0_76 = arith.constant 0 : index
    %200 = vector.load %arg9[%199, %c0_75, %c0_76] : memref<8x2x512xf32, #tpu.memory_space<vmem>>, vector<1x2x512xf32>
    %201 = vector.shape_cast %200 : vector<1x2x512xf32> to vector<2x512xf32>
    %cst_77 = arith.constant dense<0.000000e+00> : vector<2x512xf32>
    %202 = tpu.matmul %198, %76, %cst_77 {dimension_numbers = #tpu.dot_dimension_numbers<[1], [0], [0], [1], [0, 0, 1, 1], [], []>} : vector<2x128xf32>, vector<128x512xf32>, vector<2x512xf32> -> vector<2x512xf32>
    %203 = arith.addf %201, %202 : vector<2x512xf32>
    %204 = vector.extract_strided_slice %203 {offsets = [0, 0], sizes = [2, 128], strides = [1, 1]} : vector<2x512xf32> to vector<2x128xf32>
    %205 = arith.negf %204 : vector<2x128xf32>
    %206 = math.exp %205 : vector<2x128xf32>
    %cst_78 = arith.constant 1.000000e+00 : f32
    %207 = vector.broadcast %cst_78 : f32 to vector<2x128xf32>
    %208 = arith.addf %207, %206 : vector<2x128xf32>
    %209 = arith.divf %207, %208 : vector<2x128xf32>
    %210 = vector.extract_strided_slice %203 {offsets = [0, 128], sizes = [2, 128], strides = [1, 1]} : vector<2x512xf32> to vector<2x128xf32>
    %211 = arith.negf %210 : vector<2x128xf32>
    %212 = math.exp %211 : vector<2x128xf32>
    %cst_79 = arith.constant 1.000000e+00 : f32
    %213 = vector.broadcast %cst_79 : f32 to vector<2x128xf32>
    %214 = arith.addf %213, %212 : vector<2x128xf32>
    %215 = arith.divf %213, %214 : vector<2x128xf32>
    %216 = vector.extract_strided_slice %203 {offsets = [0, 256], sizes = [2, 128], strides = [1, 1]} : vector<2x512xf32> to vector<2x128xf32>
    %217 = math.tanh %216 : vector<2x128xf32>
    %218 = vector.extract_strided_slice %203 {offsets = [0, 384], sizes = [2, 128], strides = [1, 1]} : vector<2x512xf32> to vector<2x128xf32>
    %219 = arith.negf %218 : vector<2x128xf32>
    %220 = math.exp %219 : vector<2x128xf32>
    %cst_80 = arith.constant 1.000000e+00 : f32
    %221 = vector.broadcast %cst_80 : f32 to vector<2x128xf32>
    %222 = arith.addf %221, %220 : vector<2x128xf32>
    %223 = arith.divf %221, %222 : vector<2x128xf32>
    %224 = arith.mulf %215, %196 : vector<2x128xf32>
    %225 = arith.mulf %209, %217 : vector<2x128xf32>
    %226 = arith.addf %224, %225 : vector<2x128xf32>
    %227 = math.tanh %226 : vector<2x128xf32>
    %228 = arith.mulf %223, %227 : vector<2x128xf32>
    %c5_i32_81 = arith.constant 5 : i32
    %229 = arith.index_cast %c5_i32_81 : i32 to index
    %c0_82 = arith.constant 0 : index
    %c0_83 = arith.constant 0 : index
    %230 = vector.load %arg9[%229, %c0_82, %c0_83] : memref<8x2x512xf32, #tpu.memory_space<vmem>>, vector<1x2x512xf32>
    %231 = vector.shape_cast %230 : vector<1x2x512xf32> to vector<2x512xf32>
    %cst_84 = arith.constant dense<0.000000e+00> : vector<2x512xf32>
    %232 = tpu.matmul %228, %76, %cst_84 {dimension_numbers = #tpu.dot_dimension_numbers<[1], [0], [0], [1], [0, 0, 1, 1], [], []>} : vector<2x128xf32>, vector<128x512xf32>, vector<2x512xf32> -> vector<2x512xf32>
    %233 = arith.addf %231, %232 : vector<2x512xf32>
    %234 = vector.extract_strided_slice %233 {offsets = [0, 0], sizes = [2, 128], strides = [1, 1]} : vector<2x512xf32> to vector<2x128xf32>
    %235 = arith.negf %234 : vector<2x128xf32>
    %236 = math.exp %235 : vector<2x128xf32>
    %cst_85 = arith.constant 1.000000e+00 : f32
    %237 = vector.broadcast %cst_85 : f32 to vector<2x128xf32>
    %238 = arith.addf %237, %236 : vector<2x128xf32>
    %239 = arith.divf %237, %238 : vector<2x128xf32>
    %240 = vector.extract_strided_slice %233 {offsets = [0, 128], sizes = [2, 128], strides = [1, 1]} : vector<2x512xf32> to vector<2x128xf32>
    %241 = arith.negf %240 : vector<2x128xf32>
    %242 = math.exp %241 : vector<2x128xf32>
    %cst_86 = arith.constant 1.000000e+00 : f32
    %243 = vector.broadcast %cst_86 : f32 to vector<2x128xf32>
    %244 = arith.addf %243, %242 : vector<2x128xf32>
    %245 = arith.divf %243, %244 : vector<2x128xf32>
    %246 = vector.extract_strided_slice %233 {offsets = [0, 256], sizes = [2, 128], strides = [1, 1]} : vector<2x512xf32> to vector<2x128xf32>
    %247 = math.tanh %246 : vector<2x128xf32>
    %248 = vector.extract_strided_slice %233 {offsets = [0, 384], sizes = [2, 128], strides = [1, 1]} : vector<2x512xf32> to vector<2x128xf32>
    %249 = arith.negf %248 : vector<2x128xf32>
    %250 = math.exp %249 : vector<2x128xf32>
    %cst_87 = arith.constant 1.000000e+00 : f32
    %251 = vector.broadcast %cst_87 : f32 to vector<2x128xf32>
    %252 = arith.addf %251, %250 : vector<2x128xf32>
    %253 = arith.divf %251, %252 : vector<2x128xf32>
    %254 = arith.mulf %245, %226 : vector<2x128xf32>
    %255 = arith.mulf %239, %247 : vector<2x128xf32>
    %256 = arith.addf %254, %255 : vector<2x128xf32>
    %257 = math.tanh %256 : vector<2x128xf32>
    %258 = arith.mulf %253, %257 : vector<2x128xf32>
    %c6_i32_88 = arith.constant 6 : i32
    %259 = arith.index_cast %c6_i32_88 : i32 to index
    %c0_89 = arith.constant 0 : index
    %c0_90 = arith.constant 0 : index
    %260 = vector.load %arg9[%259, %c0_89, %c0_90] : memref<8x2x512xf32, #tpu.memory_space<vmem>>, vector<1x2x512xf32>
    %261 = vector.shape_cast %260 : vector<1x2x512xf32> to vector<2x512xf32>
    %cst_91 = arith.constant dense<0.000000e+00> : vector<2x512xf32>
    %262 = tpu.matmul %258, %76, %cst_91 {dimension_numbers = #tpu.dot_dimension_numbers<[1], [0], [0], [1], [0, 0, 1, 1], [], []>} : vector<2x128xf32>, vector<128x512xf32>, vector<2x512xf32> -> vector<2x512xf32>
    %263 = arith.addf %261, %262 : vector<2x512xf32>
    %264 = vector.extract_strided_slice %263 {offsets = [0, 0], sizes = [2, 128], strides = [1, 1]} : vector<2x512xf32> to vector<2x128xf32>
    %265 = arith.negf %264 : vector<2x128xf32>
    %266 = math.exp %265 : vector<2x128xf32>
    %cst_92 = arith.constant 1.000000e+00 : f32
    %267 = vector.broadcast %cst_92 : f32 to vector<2x128xf32>
    %268 = arith.addf %267, %266 : vector<2x128xf32>
    %269 = arith.divf %267, %268 : vector<2x128xf32>
    %270 = vector.extract_strided_slice %263 {offsets = [0, 128], sizes = [2, 128], strides = [1, 1]} : vector<2x512xf32> to vector<2x128xf32>
    %271 = arith.negf %270 : vector<2x128xf32>
    %272 = math.exp %271 : vector<2x128xf32>
    %cst_93 = arith.constant 1.000000e+00 : f32
    %273 = vector.broadcast %cst_93 : f32 to vector<2x128xf32>
    %274 = arith.addf %273, %272 : vector<2x128xf32>
    %275 = arith.divf %273, %274 : vector<2x128xf32>
    %276 = vector.extract_strided_slice %263 {offsets = [0, 256], sizes = [2, 128], strides = [1, 1]} : vector<2x512xf32> to vector<2x128xf32>
    %277 = math.tanh %276 : vector<2x128xf32>
    %278 = vector.extract_strided_slice %263 {offsets = [0, 384], sizes = [2, 128], strides = [1, 1]} : vector<2x512xf32> to vector<2x128xf32>
    %279 = arith.negf %278 : vector<2x128xf32>
    %280 = math.exp %279 : vector<2x128xf32>
    %cst_94 = arith.constant 1.000000e+00 : f32
    %281 = vector.broadcast %cst_94 : f32 to vector<2x128xf32>
    %282 = arith.addf %281, %280 : vector<2x128xf32>
    %283 = arith.divf %281, %282 : vector<2x128xf32>
    %284 = arith.mulf %275, %256 : vector<2x128xf32>
    %285 = arith.mulf %269, %277 : vector<2x128xf32>
    %286 = arith.addf %284, %285 : vector<2x128xf32>
    %287 = math.tanh %286 : vector<2x128xf32>
    %288 = arith.mulf %283, %287 : vector<2x128xf32>
    %c7_i32_95 = arith.constant 7 : i32
    %289 = arith.index_cast %c7_i32_95 : i32 to index
    %c0_96 = arith.constant 0 : index
    %c0_97 = arith.constant 0 : index
    %290 = vector.load %arg9[%289, %c0_96, %c0_97] : memref<8x2x512xf32, #tpu.memory_space<vmem>>, vector<1x2x512xf32>
    %291 = vector.shape_cast %290 : vector<1x2x512xf32> to vector<2x512xf32>
    %cst_98 = arith.constant dense<0.000000e+00> : vector<2x512xf32>
    %292 = tpu.matmul %288, %76, %cst_98 {dimension_numbers = #tpu.dot_dimension_numbers<[1], [0], [0], [1], [0, 0, 1, 1], [], []>} : vector<2x128xf32>, vector<128x512xf32>, vector<2x512xf32> -> vector<2x512xf32>
    %293 = arith.addf %291, %292 : vector<2x512xf32>
    %294 = vector.extract_strided_slice %293 {offsets = [0, 0], sizes = [2, 128], strides = [1, 1]} : vector<2x512xf32> to vector<2x128xf32>
    %295 = arith.negf %294 : vector<2x128xf32>
    %296 = math.exp %295 : vector<2x128xf32>
    %cst_99 = arith.constant 1.000000e+00 : f32
    %297 = vector.broadcast %cst_99 : f32 to vector<2x128xf32>
    %298 = arith.addf %297, %296 : vector<2x128xf32>
    %299 = arith.divf %297, %298 : vector<2x128xf32>
    %300 = vector.extract_strided_slice %293 {offsets = [0, 128], sizes = [2, 128], strides = [1, 1]} : vector<2x512xf32> to vector<2x128xf32>
    %301 = arith.negf %300 : vector<2x128xf32>
    %302 = math.exp %301 : vector<2x128xf32>
    %cst_100 = arith.constant 1.000000e+00 : f32
    %303 = vector.broadcast %cst_100 : f32 to vector<2x128xf32>
    %304 = arith.addf %303, %302 : vector<2x128xf32>
    %305 = arith.divf %303, %304 : vector<2x128xf32>
    %306 = vector.extract_strided_slice %293 {offsets = [0, 256], sizes = [2, 128], strides = [1, 1]} : vector<2x512xf32> to vector<2x128xf32>
    %307 = math.tanh %306 : vector<2x128xf32>
    %308 = vector.extract_strided_slice %293 {offsets = [0, 384], sizes = [2, 128], strides = [1, 1]} : vector<2x512xf32> to vector<2x128xf32>
    %309 = arith.negf %308 : vector<2x128xf32>
    %310 = math.exp %309 : vector<2x128xf32>
    %cst_101 = arith.constant 1.000000e+00 : f32
    %311 = vector.broadcast %cst_101 : f32 to vector<2x128xf32>
    %312 = arith.addf %311, %310 : vector<2x128xf32>
    %313 = arith.divf %311, %312 : vector<2x128xf32>
    %314 = arith.mulf %305, %286 : vector<2x128xf32>
    %315 = arith.mulf %299, %307 : vector<2x128xf32>
    %316 = arith.addf %314, %315 : vector<2x128xf32>
    %317 = math.tanh %316 : vector<2x128xf32>
    %318 = arith.mulf %313, %317 : vector<2x128xf32>
    %c8_i32_102 = arith.constant 8 : i32
    %c0_103 = arith.constant 0 : index
    %c0_104 = arith.constant 0 : index
    %319 = vector.load %arg4[%c0_103, %c0_104] : memref<128x45xf32, #tpu.memory_space<vmem>>, vector<128x45xf32>
    %cst_105 = arith.constant dense<0.000000e+00> : vector<2x45xf32>
    %320 = tpu.matmul %318, %319, %cst_105 {dimension_numbers = #tpu.dot_dimension_numbers<[1], [0], [0], [1], [0, 0, 1, 1], [], []>} : vector<2x128xf32>, vector<128x45xf32>, vector<2x45xf32> -> vector<2x45xf32>
    %c0_106 = arith.constant 0 : index
    %c0_107 = arith.constant 0 : index
    %321 = vector.load %arg5[%c0_106, %c0_107] : memref<1x45xf32, #tpu.memory_space<vmem>>, vector<1x45xf32>
    %322 = vector.broadcast %321 : vector<1x45xf32> to vector<2x45xf32>
    %323 = arith.addf %320, %322 : vector<2x45xf32>
    %cst_108 = arith.constant 0.000000e+00 : f32
    %324 = vector.broadcast %cst_108 : f32 to vector<2x45xf32>
    %325 = arith.maximumf %323, %324 : vector<2x45xf32>
    %c0_109 = arith.constant 0 : index
    %c0_110 = arith.constant 0 : index
    %326 = vector.load %arg6[%c0_109, %c0_110] : memref<45x6xf32, #tpu.memory_space<vmem>>, vector<45x6xf32>
    %cst_111 = arith.constant dense<0.000000e+00> : vector<2x6xf32>
    %327 = tpu.matmul %325, %326, %cst_111 {dimension_numbers = #tpu.dot_dimension_numbers<[1], [0], [0], [1], [0, 0, 1, 1], [], []>} : vector<2x45xf32>, vector<45x6xf32>, vector<2x6xf32> -> vector<2x6xf32>
    %c0_112 = arith.constant 0 : index
    %c0_113 = arith.constant 0 : index
    %328 = vector.load %arg7[%c0_112, %c0_113] : memref<1x6xf32, #tpu.memory_space<vmem>>, vector<1x6xf32>
    %329 = vector.broadcast %328 : vector<1x6xf32> to vector<2x6xf32>
    %330 = arith.addf %327, %329 : vector<2x6xf32>
    %cst_114 = arith.constant dense<0xFF800000> : vector<2xf32>
    %331 = vector.multi_reduction <maximumf>, %330, %cst_114 [1] : vector<2x6xf32> to vector<2xf32>
    %332 = vector.shape_cast %331 : vector<2xf32> to vector<2x1xf32>
    %333 = vector.broadcast %332 : vector<2x1xf32> to vector<2x6xf32>
    %334 = arith.subf %330, %333 : vector<2x6xf32>
    %335 = math.exp %334 : vector<2x6xf32>
    %cst_115 = arith.constant dense<0.000000e+00> : vector<2xf32>
    %336 = vector.multi_reduction <add>, %335, %cst_115 [1] : vector<2x6xf32> to vector<2xf32>
    %337 = vector.shape_cast %336 : vector<2xf32> to vector<2x1xf32>
    %338 = vector.broadcast %337 : vector<2x1xf32> to vector<2x6xf32>
    %339 = arith.divf %335, %338 : vector<2x6xf32>
    %c0_116 = arith.constant 0 : index
    %c0_117 = arith.constant 0 : index
    %340 = vector.load %arg8[%c0_116, %c0_117] : memref<2x6xf32, #tpu.memory_space<vmem>>, vector<2x6xf32>
    tpu.vector_store %arg8[%c0_116, %c0_117], %339 {strides = array<i32>} : memref<2x6xf32, #tpu.memory_space<vmem>>, vector<2x6xf32>,
    return
  }
}

</mosaic_0001>

<bundles_post_ra>
// kernel: fclstm_forward.1
= control target key start
LH: loop header
LB: loop body
LE: loop exit
PB: predicated region body
PF: predicated region fallthrough
CT: control target
= control target key end

     0   :  { %vm89_vm0 = vcmask 1040384   ;;  %v5715_v5 = vmov 0.0   ;;  %s5704_s0 = inlined_call_operand.vmem [shape: f32[8,2,57], index: 0, kind: input, shape index: {}]   ;;  %s5705_s1 = inlined_call_operand.vmem [shape: f32[57,512], index: 1, kind: input, shape index: {}]   ;;  %s5706_s2 = inlined_call_operand.vmem [shape: f32[128,512], index: 2, kind: input, shape index: {}]   ;;  %s5707_s3 = inlined_call_operand.vmem [shape: f32[1,512], index: 3, kind: input, shape index: {}]   ;;  %s5708_s4 = inlined_call_operand.vmem [shape: f32[128,45], index: 4, kind: input, shape index: {}]   ;;  %s5709_s5 = inlined_call_operand.vmem [shape: f32[1,45], index: 5, kind: input, shape index: {}]   ;;  %s5710_s6 = inlined_call_operand.vmem [shape: f32[45,6], index: 6, kind: input, shape index: {}]   ;;  %s5711_s7 = inlined_call_operand.vmem [shape: f32[1,6], index: 7, kind: input, shape index: {}]   ;;  %s5712_s8 = inlined_call_operand.hbm [shape: f32[2,6], index: 8, kind: output, shape index: {}]  }
   0x1   :  { %v3747_v0 = vld [vmem:[%s5705_s1 + $0xe8] sm:$0x1]  ;;  %v3752_v1 = vld [vmem:[%s5705_s1 + $0xe0] sm:$0x1]  ;;  %166 = vmatprep.mubr.f32.mxu1 %v5715_v5 }
   0x2   :  { %v3757_v2 = vld [vmem:[%s5705_s1 + $0xc8] sm:$0xff]  ;;  %3316 = vmatprep.subr.msk.mxu1 %vm89_vm0, %v3747_v0  ;;  %v3764_v3 = vld [vmem:[%s5705_s1 + $0xc0] sm:$0xff]  ;;  %3323 = vmatprep.subr.msk.mxu0 %vm89_vm0, %v3747_v0 }
   0x3   :  { %3317 = vmatpush1.msk.msra.mxu1 %vm89_vm0, %v3752_v1  ;;  %v3773_v4 = vld [vmem:[%s5705_s1 + $0xa8] sm:$0xff]  ;;  %v3780_v6 = vld [vmem:[%s5705_s1 + $0xa0] sm:$0xff]  ;;  %3324 = vmatpush1.msk.msra.mxu0 %vm89_vm0, %v3752_v1 }
   0x4   :  { %120 = vmatprep.subr.mxu1 %v3757_v2  ;;  %v3788_v7 = vld [vmem:[%s5705_s1 + $0x88] sm:$0xff]  ;;  %290 = vmatprep.subr.mxu0 %v3757_v2  ;;  %v3795_v8 = vld [vmem:[%s5705_s1 + $0x80] sm:$0xff] }
   0x5   :  { %121 = vmatpush1.msra.mxu1 %v3764_v3  ;;  %291 = vmatpush1.msra.mxu0 %v3764_v3  ;;  %v3802_v9 = vld [vmem:[%s5705_s1 + $0x68] sm:$0xff]  ;;  %v3809_v10 = vld [vmem:[%s5705_s1 + $0x60] sm:$0xff] }
   0x6   :  { %122 = vmatprep.subr.mxu1 %v3773_v4  ;;  %292 = vmatprep.subr.mxu0 %v3773_v4  ;;  %v3816_v11 = vld [vmem:[%s5705_s1 + $0x48] sm:$0xff]  ;;  %v3823_v12 = vld [vmem:[%s5705_s1 + $0x40] sm:$0xff] }
   0x7   :  { %123 = vmatpush1.msra.mxu1 %v3780_v6  ;;  %293 = vmatpush1.msra.mxu0 %v3780_v6  ;;  %v3830_v13 = vld [vmem:[%s5705_s1 + $0x28] sm:$0xff]  ;;  %v3837_v14 = vld [vmem:[%s5705_s1 + $0x20] sm:$0xff] }
   0x8   :  { %124 = vmatprep.subr.mxu1 %v3788_v7  ;;  %294 = vmatprep.subr.mxu0 %v3788_v7  ;;  %v3844_v15 = vld [vmem:[%s5705_s1 + $0x8] sm:$0xff]  ;;  %v3851_v16 = vld [vmem:[%s5705_s1] sm:$0xff] }
   0x9   :  { %125 = vmatpush1.msra.mxu1 %v3795_v8  ;;  %295 = vmatpush1.msra.mxu0 %v3795_v8 }
   0xa   :  { %126 = vmatprep.subr.mxu1 %v3802_v9  ;;  %296 = vmatprep.subr.mxu0 %v3802_v9 }
   0xb   :  { %127 = vmatpush1.msra.mxu1 %v3809_v10  ;;  %297 = vmatpush1.msra.mxu0 %v3809_v10 }
   0xc   :  { %128 = vmatprep.subr.mxu1 %v3816_v11  ;;  %298 = vmatprep.subr.mxu0 %v3816_v11 }
   0xd   :  { %129 = vmatpush1.msra.mxu1 %v3823_v12  ;;  %299 = vmatpush1.msra.mxu0 %v3823_v12 }
   0xe   :  { %130 = vmatprep.subr.mxu1 %v3830_v13 }
   0xf   :  { %13 = vsyncpa [#allocation4], 0  ;;  %131 = vmatpush1.msra.mxu1 %v3837_v14  ;;  %v84_v17 = vld [vmem:[%s5704_s0] sm:$0x3]  ;;  %vm85_vm1 = vcmask 465920   ;;  %300 = vmatprep.subr.mxu0 %v3830_v13  ;;  %v3875_v20 = vld [vmem:[%s5705_s1 + $0xd8] sm:$0xff] }
  0x10   :  { %v3861_v18 = vld [vmem:[%s5705_s1 + $0xf8] sm:$0x1]  ;;  %132 = vmatprep.subr.mxu1 %v3844_v15  ;;  %v3868_v19 = vld [vmem:[%s5705_s1 + $0xf0] sm:$0x1]  ;;  %301 = vmatpush1.msra.mxu0 %v3837_v14  ;;  %v3904_v24 = vld [vmem:[%s5704_s0 + $0x2] sm:$0x3] }
  0x11   :  { %133 = vmatpush1.msra.mxu1 %v3851_v16  ;;  %302 = vmatprep.subr.mxu0 %v3844_v15  ;;  %v3884_v21 = vld [vmem:[%s5705_s1 + $0xd0] sm:$0xff]  ;;  %v3891_v22 = vld [vmem:[%s5705_s1 + $0xb8] sm:$0xff]  ;;  %v3329_v35 = vld [vmem:[%s5704_s0 + $0x4] sm:$0x3]  ;;  %vm3697_vm2 = vmmov 0   ;;  %vm3215_vm3 = vcmask 1044480  }
  0x12   :  { %3318 = vmatmul.mubr.msk.f32.vlgmr.msra.gmra.mxu1 %vm85_vm1, %v84_v17  ;;  %3319 = vmatprep.subr.msk.mxu1 %vm89_vm0, %v3861_v18  ;;  %v3898_v23 = vld [vmem:[%s5705_s1 + $0xb0] sm:$0xff]  ;;  %v3910_v25 = vld [vmem:[%s5705_s1 + $0x98] sm:$0xff]  ;;  %v3336_v36 = vld [vmem:[%s5704_s0 + $0x6] sm:$0x3]  ;;  %vm3211_vm4 = vcmask 367616   ;;  %vm3289_vm5 = vcmask 41984  }
  0x13   :  { %3320 = vmatpush1.msk.msra.mxu1 %vm89_vm0, %v3868_v19  ;;  %237 = vmatprep.mubr.f32.mxu1 %v5715_v5  ;;  %v3917_v26 = vld [vmem:[%s5705_s1 + $0x90] sm:$0xff]  ;;  %v3925_v27 = vld [vmem:[%s5705_s1 + $0x78] sm:$0xff]  ;;  %v3343_v37 = vld [vmem:[%s5704_s0 + $0x8] sm:$0x3] }
  0x14   :  { %191 = vmatprep.subr.mxu1 %v3875_v20  ;;  %303 = vmatpush1.msra.mxu0 %v3851_v16  ;;  %v3933_v28 = vld [vmem:[%s5705_s1 + $0x70] sm:$0xff]  ;;  %v3941_v29 = vld [vmem:[%s5705_s1 + $0x58] sm:$0xff]  ;;  %v3350_v38 = vld [vmem:[%s5704_s0 + $0xa] sm:$0x3] }
  0x15   :  { %192 = vmatpush1.msra.mxu1 %v3884_v21  ;;  %336 = vmatprep.mubr.f32.mxu0 %v5715_v5  ;;  %v3948_v30 = vld [vmem:[%s5705_s1 + $0x50] sm:$0xff]  ;;  %v3955_v31 = vld [vmem:[%s5705_s1 + $0x38] sm:$0xff]  ;;  %v3357_v39 = vld [vmem:[%s5704_s0 + $0xc] sm:$0x3] }
  0x16   :  { %193 = vmatprep.subr.mxu1 %v3891_v22  ;;  %3330 = vmatprep.subr.msk.mxu0 %vm89_vm0, %v3747_v0  ;;  %v3962_v32 = vld [vmem:[%s5705_s1 + $0x30] sm:$0xff]  ;;  %v3969_v33 = vld [vmem:[%s5705_s1 + $0x18] sm:$0xff]  ;;  %v4242_v40 = vld [vmem:[%s5706_s2 + $0x1e8] sm:$0xff] }
  0x17   :  { %194 = vmatpush1.msra.mxu1 %v3898_v23  ;;  %3325 = vmatmul.mubr.msk.f32.vlgmr.msra.gmra.mxu0 %vm85_vm1, %v3904_v24  ;;  %v3976_v34 = vld [vmem:[%s5705_s1 + $0x10] sm:$0xff]  ;;  %5827 = vst [vmem:[#allocation6_spill] sm:$0xff] %v4242_v40  ;;  %v3364_v41 = vld [vmem:[%s5704_s0 + $0xe] sm:$0x3]  ;;  %v4256_v42 = vld [vmem:[%s5706_s2 + $0x1e0] sm:$0xff] }
  0x18   :  { %195 = vmatprep.subr.mxu1 %v3910_v25  ;;  %3331 = vmatpush1.msk.msra.mxu0 %vm89_vm0, %v3752_v1  ;;  %v4263_v43 = vld [vmem:[%s5706_s2 + $0x1c8] sm:$0xff]  ;;  %v4268_v44 = vld [vmem:[%s5706_s2 + $0x1f8] sm:$0xff]  ;;  %v4275_v45 = vld [vmem:[%s5706_s2 + $0x1c0] sm:$0xff] }
  0x19   :  { %196 = vmatpush1.msra.mxu1 %v3917_v26  ;;  %461 = vmatprep.subr.mxu0 %v3757_v2  ;;  %5828 = vst [vmem:[#allocation7_spill] sm:$0xff] %v4268_v44  ;;  %v4280_v46 = vld [vmem:[%s5706_s2 + $0x1f0] sm:$0xff]  ;;  %v4287_v47 = vld [vmem:[%s5706_s2 + $0x1a8] sm:$0xff]  ;;  %v4292_v48 = vld [vmem:[%s5706_s2 + $0x1d8] sm:$0xff] }
  0x1a   :  { %197 = vmatprep.subr.mxu1 %v3925_v27  ;;  %462 = vmatpush1.msra.mxu0 %v3764_v3  ;;  %v4299_v49 = vld [vmem:[%s5706_s2 + $0x1a0] sm:$0xff]  ;;  %v4304_v50 = vld [vmem:[%s5706_s2 + $0x1d0] sm:$0xff]  ;;  %v4311_v51 = vld [vmem:[%s5706_s2 + $0x188] sm:$0xff] }
  0x1b   :  { %198 = vmatpush1.msra.mxu1 %v3933_v28  ;;  %463 = vmatprep.subr.mxu0 %v3773_v4  ;;  %v4316_v52 = vld [vmem:[%s5706_s2 + $0x1b8] sm:$0xff]  ;;  %v4323_v53 = vld [vmem:[%s5706_s2 + $0x180] sm:$0xff]  ;;  %v4328_v54 = vld [vmem:[%s5706_s2 + $0x1b0] sm:$0xff] }
  0x1c   :  { %199 = vmatprep.subr.mxu1 %v3941_v29  ;;  %464 = vmatpush1.msra.mxu0 %v3780_v6  ;;  %v4335_v55 = vld [vmem:[%s5706_s2 + $0x168] sm:$0xff]  ;;  %v4340_v56 = vld [vmem:[%s5706_s2 + $0x198] sm:$0xff]  ;;  %v4347_v57 = vld [vmem:[%s5706_s2 + $0x160] sm:$0xff] }
  0x1d   :  { %200 = vmatpush1.msra.mxu1 %v3948_v30  ;;  %465 = vmatprep.subr.mxu0 %v3788_v7  ;;  %v4352_v58 = vld [vmem:[%s5706_s2 + $0x190] sm:$0xff]  ;;  %v4359_v59 = vld [vmem:[%s5706_s2 + $0x148] sm:$0xff]  ;;  %v4364_v60 = vld [vmem:[%s5706_s2 + $0x178] sm:$0xff] }
  0x1e   :  { %201 = vmatprep.subr.mxu1 %v3955_v31  ;;  %466 = vmatpush1.msra.mxu0 %v3795_v8  ;;  %v4371_v61 = vld [vmem:[%s5706_s2 + $0x140] sm:$0xff]  ;;  %v4376_v62 = vld [vmem:[%s5706_s2 + $0x170] sm:$0xff]  ;;  %v4383_v63 = vld [vmem:[%s5706_s2 + $0x128] sm:$0xff] }
  0x1f   :  { %202 = vmatpush1.msra.mxu1 %v3962_v32  ;;  %467 = vmatprep.subr.mxu0 %v3802_v9 }
  0x20   :  { %203 = vmatprep.subr.mxu1 %v3969_v33  ;;  %468 = vmatpush1.msra.mxu0 %v3809_v10 }
  0x21   :  { %204 = vmatpush1.msra.mxu1 %v3976_v34  ;;  %469 = vmatprep.subr.mxu0 %v3816_v11 }
  0x22   :  { %3321 = vmatmul.mubr.msk.f32.vlgmr.msra.gmra.mxu1 %vm85_vm1, %v84_v17  ;;  %3326 = vmatprep.subr.msk.mxu1 %vm89_vm0, %v3861_v18  ;;  %v4484_v17 = vld [vmem:[%s5706_s2 + $0xd8] sm:$0xff] }
  0x23   :  { %3327 = vmatpush1.msk.msra.mxu1 %vm89_vm0, %v3868_v19  ;;  %407 = vmatprep.mubr.f32.mxu1 %v5715_v5 }
  0x24   :  { %361 = vmatprep.subr.mxu1 %v3875_v20  ;;  %470 = vmatpush1.msra.mxu0 %v3823_v12 }
  0x25   :  { %362 = vmatpush1.msra.mxu1 %v3884_v21  ;;  %471 = vmatprep.subr.mxu0 %v3830_v13 }
  0x26   :  { %363 = vmatprep.subr.mxu1 %v3891_v22  ;;  %472 = vmatpush1.msra.mxu0 %v3837_v14 }
  0x27   :  { %364 = vmatpush1.msra.mxu1 %v3898_v23  ;;  %473 = vmatprep.subr.mxu0 %v3844_v15 }
  0x28   :  { %365 = vmatprep.subr.mxu1 %v3910_v25  ;;  %474 = vmatpush1.msra.mxu0 %v3851_v16 }
  0x29   :  { %366 = vmatpush1.msra.mxu1 %v3917_v26  ;;  %507 = vmatprep.mubr.f32.mxu0 %v5715_v5 }
  0x2a   :  { %367 = vmatprep.subr.mxu1 %v3925_v27  ;;  %3337 = vmatprep.subr.msk.mxu0 %vm89_vm0, %v3747_v0 }
  0x2b   :  { %368 = vmatpush1.msra.mxu1 %v3933_v28  ;;  %3332 = vmatmul.mubr.msk.f32.vlgmr.msra.gmra.mxu0 %vm85_vm1, %v3329_v35 }
  0x2c   :  { %369 = vmatprep.subr.mxu1 %v3941_v29  ;;  %3338 = vmatpush1.msk.msra.mxu0 %vm89_vm0, %v3752_v1 }
  0x2d   :  { %370 = vmatpush1.msra.mxu1 %v3948_v30  ;;  %632 = vmatprep.subr.mxu0 %v3757_v2 }
  0x2e   :  { %371 = vmatprep.subr.mxu1 %v3955_v31  ;;  %633 = vmatpush1.msra.mxu0 %v3764_v3 }
  0x2f   :  { %372 = vmatpush1.msra.mxu1 %v3962_v32  ;;  %634 = vmatprep.subr.mxu0 %v3773_v4 }
  0x30   :  { %373 = vmatprep.subr.mxu1 %v3969_v33  ;;  %635 = vmatpush1.msra.mxu0 %v3780_v6 }
  0x31   :  { %374 = vmatpush1.msra.mxu1 %v3976_v34  ;;  %636 = vmatprep.subr.mxu0 %v3788_v7 }
  0x32   :  { %3328 = vmatmul.mubr.msk.f32.vlgmr.msra.gmra.mxu1 %vm85_vm1, %v3904_v24  ;;  %3333 = vmatprep.subr.msk.mxu1 %vm89_vm0, %v3861_v18  ;;  %v4527_v24 = vld [vmem:[%s5706_s2 + $0x68] sm:$0xff] }
  0x33   :  { %3334 = vmatpush1.msk.msra.mxu1 %vm89_vm0, %v3868_v19  ;;  %578 = vmatprep.mubr.f32.mxu1 %v5715_v5  ;;  %5835 = vst [vmem:[#allocation14_spill] sm:$0xff] %v4527_v24 }
  0x34   :  { %532 = vmatprep.subr.mxu1 %v3875_v20  ;;  %637 = vmatpush1.msra.mxu0 %v3795_v8 }
  0x35   :  { %533 = vmatpush1.msra.mxu1 %v3884_v21  ;;  %638 = vmatprep.subr.mxu0 %v3802_v9 }
  0x36   :  { %534 = vmatprep.subr.mxu1 %v3891_v22  ;;  %639 = vmatpush1.msra.mxu0 %v3809_v10 }
  0x37   :  { %535 = vmatpush1.msra.mxu1 %v3898_v23  ;;  %640 = vmatprep.subr.mxu0 %v3816_v11 }
  0x38   :  { %536 = vmatprep.subr.mxu1 %v3910_v25  ;;  %641 = vmatpush1.msra.mxu0 %v3823_v12 }
  0x39   :  { %537 = vmatpush1.msra.mxu1 %v3917_v26  ;;  %642 = vmatprep.subr.mxu0 %v3830_v13 }
  0x3a   :  { %538 = vmatprep.subr.mxu1 %v3925_v27  ;;  %643 = vmatpush1.msra.mxu0 %v3837_v14 }
  0x3b   :  { %539 = vmatpush1.msra.mxu1 %v3933_v28  ;;  %644 = vmatprep.subr.mxu0 %v3844_v15 }
  0x3c   :  { %540 = vmatprep.subr.mxu1 %v3941_v29  ;;  %645 = vmatpush1.msra.mxu0 %v3851_v16 }
  0x3d   :  { %541 = vmatpush1.msra.mxu1 %v3948_v30  ;;  %678 = vmatprep.mubr.f32.mxu0 %v5715_v5 }
  0x3e   :  { %542 = vmatprep.subr.mxu1 %v3955_v31  ;;  %3344 = vmatprep.subr.msk.mxu0 %vm89_vm0, %v3747_v0 }
  0x3f   :  { %543 = vmatpush1.msra.mxu1 %v3962_v32  ;;  %3339 = vmatmul.mubr.msk.f32.vlgmr.msra.gmra.mxu0 %vm85_vm1, %v3336_v36 }
  0x40   :  { %544 = vmatprep.subr.mxu1 %v3969_v33  ;;  %3345 = vmatpush1.msk.msra.mxu0 %vm89_vm0, %v3752_v1 }
  0x41   :  { %545 = vmatpush1.msra.mxu1 %v3976_v34  ;;  %803 = vmatprep.subr.mxu0 %v3757_v2 }
  0x42   :  { %3335 = vmatmul.mubr.msk.f32.vlgmr.msra.gmra.mxu1 %vm85_vm1, %v3329_v35  ;;  %3340 = vmatprep.subr.msk.mxu1 %vm89_vm0, %v3861_v18  ;;  %v4592_v35 = vld [vmem:[%s5706_s2 + $0x50] sm:$0xff] }
  0x43   :  { %3341 = vmatpush1.msk.msra.mxu1 %vm89_vm0, %v3868_v19  ;;  %749 = vmatprep.mubr.f32.mxu1 %v5715_v5  ;;  %5846 = vst [vmem:[#allocation25_spill] sm:$0xff] %v4592_v35 }
  0x44   :  { %703 = vmatprep.subr.mxu1 %v3875_v20  ;;  %804 = vmatpush1.msra.mxu0 %v3764_v3 }
  0x45   :  { %704 = vmatpush1.msra.mxu1 %v3884_v21  ;;  %805 = vmatprep.subr.mxu0 %v3773_v4 }
  0x46   :  { %705 = vmatprep.subr.mxu1 %v3891_v22  ;;  %806 = vmatpush1.msra.mxu0 %v3780_v6 }
  0x47   :  { %706 = vmatpush1.msra.mxu1 %v3898_v23  ;;  %807 = vmatprep.subr.mxu0 %v3788_v7 }
  0x48   :  { %707 = vmatprep.subr.mxu1 %v3910_v25  ;;  %808 = vmatpush1.msra.mxu0 %v3795_v8 }
  0x49   :  { %708 = vmatpush1.msra.mxu1 %v3917_v26  ;;  %809 = vmatprep.subr.mxu0 %v3802_v9 }
  0x4a   :  { %709 = vmatprep.subr.mxu1 %v3925_v27  ;;  %810 = vmatpush1.msra.mxu0 %v3809_v10 }
  0x4b   :  { %710 = vmatpush1.msra.mxu1 %v3933_v28  ;;  %811 = vmatprep.subr.mxu0 %v3816_v11 }
  0x4c   :  { %711 = vmatprep.subr.mxu1 %v3941_v29  ;;  %812 = vmatpush1.msra.mxu0 %v3823_v12 }
  0x4d   :  { %712 = vmatpush1.msra.mxu1 %v3948_v30  ;;  %813 = vmatprep.subr.mxu0 %v3830_v13 }
  0x4e   :  { %713 = vmatprep.subr.mxu1 %v3955_v31  ;;  %814 = vmatpush1.msra.mxu0 %v3837_v14 }
  0x4f   :  { %714 = vmatpush1.msra.mxu1 %v3962_v32  ;;  %815 = vmatprep.subr.mxu0 %v3844_v15 }
  0x50   :  { %715 = vmatprep.subr.mxu1 %v3969_v33  ;;  %816 = vmatpush1.msra.mxu0 %v3851_v16 }
  0x51   :  { %716 = vmatpush1.msra.mxu1 %v3976_v34  ;;  %849 = vmatprep.mubr.f32.mxu0 %v5715_v5 }
  0x52   :  { %3342 = vmatmul.mubr.msk.f32.vlgmr.msra.gmra.mxu1 %vm85_vm1, %v3336_v36  ;;  %3347 = vmatprep.subr.msk.mxu1 %vm89_vm0, %v3861_v18  ;;  %v4599_v36 = vld [vmem:[%s5706_s2 + $0x8] sm:$0xff] }
  0x53   :  { %3348 = vmatpush1.msk.msra.mxu1 %vm89_vm0, %v3868_v19  ;;  %3351 = vmatprep.subr.msk.mxu0 %vm89_vm0, %v3747_v0  ;;  %5847 = vst [vmem:[#allocation26_spill] sm:$0xff] %v4599_v36 }
  0x54   :  { %874 = vmatprep.subr.mxu1 %v3875_v20  ;;  %3346 = vmatmul.mubr.msk.f32.vlgmr.msra.gmra.mxu0 %vm85_vm1, %v3343_v37 }
  0x55   :  { %875 = vmatpush1.msra.mxu1 %v3884_v21  ;;  %920 = vmatprep.mubr.f32.mxu1 %v5715_v5 }
  0x56   :  { %876 = vmatprep.subr.mxu1 %v3891_v22  ;;  %3352 = vmatpush1.msk.msra.mxu0 %vm89_vm0, %v3752_v1 }
  0x57   :  { %877 = vmatpush1.msra.mxu1 %v3898_v23  ;;  %974 = vmatprep.subr.mxu0 %v3757_v2 }
  0x58   :  { %878 = vmatprep.subr.mxu1 %v3910_v25  ;;  %975 = vmatpush1.msra.mxu0 %v3764_v3 }
  0x59   :  { %879 = vmatpush1.msra.mxu1 %v3917_v26  ;;  %976 = vmatprep.subr.mxu0 %v3773_v4 }
  0x5a   :  { %880 = vmatprep.subr.mxu1 %v3925_v27  ;;  %977 = vmatpush1.msra.mxu0 %v3780_v6 }
  0x5b   :  { %881 = vmatpush1.msra.mxu1 %v3933_v28  ;;  %978 = vmatprep.subr.mxu0 %v3788_v7 }
  0x5c   :  { %882 = vmatprep.subr.mxu1 %v3941_v29  ;;  %979 = vmatpush1.msra.mxu0 %v3795_v8 }
  0x5d   :  { %883 = vmatpush1.msra.mxu1 %v3948_v30  ;;  %980 = vmatprep.subr.mxu0 %v3802_v9 }
  0x5e   :  { %884 = vmatprep.subr.mxu1 %v3955_v31  ;;  %981 = vmatpush1.msra.mxu0 %v3809_v10 }
  0x5f   :  { %885 = vmatpush1.msra.mxu1 %v3962_v32  ;;  %982 = vmatprep.subr.mxu0 %v3816_v11 }
  0x60   :  { %886 = vmatprep.subr.mxu1 %v3969_v33  ;;  %983 = vmatpush1.msra.mxu0 %v3823_v12 }
  0x61   :  { %887 = vmatpush1.msra.mxu1 %v3976_v34  ;;  %984 = vmatprep.subr.mxu0 %v3830_v13 }
  0x62   :  { %3349 = vmatmul.mubr.msk.f32.vlgmr.msra.gmra.mxu1 %vm85_vm1, %v3343_v37  ;;  %3354 = vmatprep.subr.msk.mxu1 %vm89_vm0, %v3861_v18  ;;  %v4604_v37 = vld [vmem:[%s5706_s2 + $0x38] sm:$0xff] }
  0x63   :  { %3355 = vmatpush1.msk.msra.mxu1 %vm89_vm0, %v3868_v19  ;;  %985 = vmatpush1.msra.mxu0 %v3837_v14  ;;  %5848 = vst [vmem:[#allocation27_spill] sm:$0xff] %v4604_v37 }
  0x64   :  { %1045 = vmatprep.subr.mxu1 %v3875_v20  ;;  %986 = vmatprep.subr.mxu0 %v3844_v15 }
  0x65   :  { %1046 = vmatpush1.msra.mxu1 %v3884_v21  ;;  %987 = vmatpush1.msra.mxu0 %v3851_v16 }
  0x66   :  { %1047 = vmatprep.subr.mxu1 %v3891_v22  ;;  %1020 = vmatprep.mubr.f32.mxu0 %v5715_v5 }
  0x67   :  { %1048 = vmatpush1.msra.mxu1 %v3898_v23  ;;  %3358 = vmatprep.subr.msk.mxu0 %vm89_vm0, %v3747_v0 }
  0x68   :  { %1049 = vmatprep.subr.mxu1 %v3910_v25  ;;  %3353 = vmatmul.mubr.msk.f32.vlgmr.msra.gmra.mxu0 %vm85_vm1, %v3350_v38 }
  0x69   :  { %1050 = vmatpush1.msra.mxu1 %v3917_v26  ;;  %1091 = vmatprep.mubr.f32.mxu1 %v5715_v5 }
  0x6a   :  { %1051 = vmatprep.subr.mxu1 %v3925_v27  ;;  %3359 = vmatpush1.msk.msra.mxu0 %vm89_vm0, %v3752_v1 }
  0x6b   :  { %1052 = vmatpush1.msra.mxu1 %v3933_v28  ;;  %1145 = vmatprep.subr.mxu0 %v3757_v2 }
  0x6c   :  { %1053 = vmatprep.subr.mxu1 %v3941_v29  ;;  %1146 = vmatpush1.msra.mxu0 %v3764_v3 }
  0x6d   :  { %1054 = vmatpush1.msra.mxu1 %v3948_v30  ;;  %1147 = vmatprep.subr.mxu0 %v3773_v4 }
  0x6e   :  { %1055 = vmatprep.subr.mxu1 %v3955_v31  ;;  %1148 = vmatpush1.msra.mxu0 %v3780_v6 }
  0x6f   :  { %1056 = vmatpush1.msra.mxu1 %v3962_v32  ;;  %1149 = vmatprep.subr.mxu0 %v3788_v7 }
  0x70   :  { %1057 = vmatprep.subr.mxu1 %v3969_v33  ;;  %1150 = vmatpush1.msra.mxu0 %v3795_v8 }
  0x71   :  { %1058 = vmatpush1.msra.mxu1 %v3976_v34  ;;  %1151 = vmatprep.subr.mxu0 %v3802_v9 }
  0x72   :  { %3356 = vmatmul.mubr.msk.f32.vlgmr.msra.gmra.mxu1 %vm85_vm1, %v3350_v38  ;;  %3361 = vmatprep.subr.msk.mxu1 %vm89_vm0, %v3861_v18  ;;  %v4611_v38 = vld [vmem:[%s5706_s2] sm:$0xff] }
  0x73   :  { %3362 = vmatpush1.msk.msra.mxu1 %vm89_vm0, %v3868_v19  ;;  %1152 = vmatpush1.msra.mxu0 %v3809_v10  ;;  %5849 = vst [vmem:[#allocation28_spill] sm:$0xff] %v4611_v38 }
  0x74   :  { %1216 = vmatprep.subr.mxu1 %v3875_v20  ;;  %1153 = vmatprep.subr.mxu0 %v3816_v11 }
  0x75   :  { %1217 = vmatpush1.msra.mxu1 %v3884_v21  ;;  %1154 = vmatpush1.msra.mxu0 %v3823_v12 }
  0x76   :  { %1218 = vmatprep.subr.mxu1 %v3891_v22  ;;  %1155 = vmatprep.subr.mxu0 %v3830_v13 }
  0x77   :  { %1219 = vmatpush1.msra.mxu1 %v3898_v23  ;;  %1156 = vmatpush1.msra.mxu0 %v3837_v14 }
  0x78   :  { %1220 = vmatprep.subr.mxu1 %v3910_v25  ;;  %1157 = vmatprep.subr.mxu0 %v3844_v15 }
  0x79   :  { %1221 = vmatpush1.msra.mxu1 %v3917_v26  ;;  %1158 = vmatpush1.msra.mxu0 %v3851_v16 }
  0x7a   :  { %1222 = vmatprep.subr.mxu1 %v3925_v27  ;;  %1191 = vmatprep.mubr.f32.mxu0 %v5715_v5 }
  0x7b   :  { %1223 = vmatpush1.msra.mxu1 %v3933_v28  ;;  %3365 = vmatprep.subr.msk.mxu0 %vm89_vm0, %v3747_v0  ;;  %v4388_v0 = vld [vmem:[%s5706_s2 + $0x158] sm:$0xff] }
  0x7c   :  { %1224 = vmatprep.subr.mxu1 %v3941_v29  ;;  %3360 = vmatmul.mubr.msk.f32.vlgmr.msra.gmra.mxu0 %vm85_vm1, %v3357_v39 }
  0x7d   :  { %1225 = vmatpush1.msra.mxu1 %v3948_v30  ;;  %1262 = vmatprep.mubr.f32.mxu1 %v5715_v5 }
  0x7e   :  { %1226 = vmatprep.subr.mxu1 %v3955_v31  ;;  %3366 = vmatpush1.msk.msra.mxu0 %vm89_vm0, %v3752_v1  ;;  %v4395_v1 = vld [vmem:[%s5706_s2 + $0x120] sm:$0xff] }
  0x7f   :  { %1227 = vmatpush1.msra.mxu1 %v3962_v32  ;;  %1316 = vmatprep.subr.mxu0 %v3757_v2  ;;  %v4400_v2 = vld [vmem:[%s5706_s2 + $0x150] sm:$0xff] }
  0x80   :  { %1228 = vmatprep.subr.mxu1 %v3969_v33  ;;  %1317 = vmatpush1.msra.mxu0 %v3764_v3  ;;  %v4407_v3 = vld [vmem:[%s5706_s2 + $0x108] sm:$0xff] }
  0x81   :  { %1229 = vmatpush1.msra.mxu1 %v3976_v34  ;;  %1318 = vmatprep.subr.mxu0 %v3773_v4  ;;  %v4412_v4 = vld [vmem:[%s5706_s2 + $0x138] sm:$0xff] }
  0x82   :  { %3363 = vmatmul.mubr.msk.f32.vlgmr.msra.gmra.mxu1 %vm85_vm1, %v3357_v39  ;;  %3368 = vmatprep.subr.msk.mxu1 %vm89_vm0, %v3861_v18  ;;  %v4491_v18 = vld [vmem:[%s5706_s2 + $0xa0] sm:$0xff]  ;;  %v4618_v39 = vld [vmem:[%s5706_s2 + $0x30] sm:$0xff] }
  0x83   :  { %3369 = vmatpush1.msk.msra.mxu1 %vm89_vm0, %v3868_v19  ;;  %1319 = vmatpush1.msra.mxu0 %v3780_v6  ;;  %v4419_v6 = vld [vmem:[%s5706_s2 + $0x100] sm:$0xff]  ;;  %5830 = vst [vmem:[#allocation9_spill] sm:$0xff] %v4491_v18  ;;  %v4496_v19 = vld [vmem:[%s5706_s2 + $0xd0] sm:$0xff]  ;;  %5850 = vst [vmem:[#allocation29_spill] sm:$0xff] %v4618_v39 }
  0x84   :  { %1387 = vmatprep.subr.mxu1 %v3875_v20  ;;  %1320 = vmatprep.subr.mxu0 %v3788_v7  ;;  %v4424_v7 = vld [vmem:[%s5706_s2 + $0x130] sm:$0xff]  ;;  %v4503_v20 = vld [vmem:[%s5706_s2 + $0x88] sm:$0xff] }
  0x85   :  { %1388 = vmatpush1.msra.mxu1 %v3884_v21  ;;  %1321 = vmatpush1.msra.mxu0 %v3795_v8  ;;  %v4431_v8 = vld [vmem:[%s5706_s2 + $0xe8] sm:$0xff]  ;;  %5831 = vst [vmem:[#allocation10_spill] sm:$0xff] %v4503_v20  ;;  %v4508_v21 = vld [vmem:[%s5706_s2 + $0xb8] sm:$0xff] }
  0x86   :  { %1389 = vmatprep.subr.mxu1 %v3891_v22  ;;  %1322 = vmatprep.subr.mxu0 %v3802_v9  ;;  %v4436_v9 = vld [vmem:[%s5706_s2 + $0x118] sm:$0xff]  ;;  %5832 = vst [vmem:[#allocation11_spill] sm:$0xff] %v4508_v21  ;;  %v4515_v22 = vld [vmem:[%s5706_s2 + $0x80] sm:$0xff] }
  0x87   :  { %1390 = vmatpush1.msra.mxu1 %v3898_v23  ;;  %1323 = vmatpush1.msra.mxu0 %v3809_v10  ;;  %v4443_v10 = vld [vmem:[%s5706_s2 + $0xe0] sm:$0xff]  ;;  %5833 = vst [vmem:[#allocation12_spill] sm:$0xff] %v4515_v22  ;;  %v4520_v23 = vld [vmem:[%s5706_s2 + $0xb0] sm:$0xff] }
  0x88   :  { %1391 = vmatprep.subr.mxu1 %v3910_v25  ;;  %1324 = vmatprep.subr.mxu0 %v3816_v11  ;;  %v4448_v11 = vld [vmem:[%s5706_s2 + $0x110] sm:$0xff]  ;;  %5834 = vst [vmem:[#allocation13_spill] sm:$0xff] %v4520_v23  ;;  %v4532_v25 = vld [vmem:[%s5706_s2 + $0x98] sm:$0xff] }
  0x89   :  { %1392 = vmatpush1.msra.mxu1 %v3917_v26  ;;  %1325 = vmatpush1.msra.mxu0 %v3823_v12  ;;  %v4455_v12 = vld [vmem:[%s5706_s2 + $0xc8] sm:$0xff]  ;;  %5836 = vst [vmem:[#allocation15_spill] sm:$0xff] %v4532_v25  ;;  %v4539_v26 = vld [vmem:[%s5706_s2 + $0x60] sm:$0xff] }
  0x8a   :  { %1393 = vmatprep.subr.mxu1 %v3925_v27  ;;  %1326 = vmatprep.subr.mxu0 %v3830_v13  ;;  %v4460_v13 = vld [vmem:[%s5706_s2 + $0xf8] sm:$0xff]  ;;  %5837 = vst [vmem:[#allocation16_spill] sm:$0xff] %v4539_v26  ;;  %v4544_v27 = vld [vmem:[%s5706_s2 + $0x90] sm:$0xff] }
  0x8b   :  { %1394 = vmatpush1.msra.mxu1 %v3933_v28  ;;  %1327 = vmatpush1.msra.mxu0 %v3837_v14  ;;  %v4467_v14 = vld [vmem:[%s5706_s2 + $0xc0] sm:$0xff]  ;;  %5838 = vst [vmem:[#allocation17_spill] sm:$0xff] %v4544_v27  ;;  %v4551_v28 = vld [vmem:[%s5706_s2 + $0x48] sm:$0xff] }
  0x8c   :  { %1395 = vmatprep.subr.mxu1 %v3941_v29  ;;  %1328 = vmatprep.subr.mxu0 %v3844_v15  ;;  %v4472_v15 = vld [vmem:[%s5706_s2 + $0xf0] sm:$0xff]  ;;  %5839 = vst [vmem:[#allocation18_spill] sm:$0xff] %v4551_v28  ;;  %v4556_v29 = vld [vmem:[%s5706_s2 + $0x78] sm:$0xff] }
  0x8d   :  { %1396 = vmatpush1.msra.mxu1 %v3948_v30  ;;  %1329 = vmatpush1.msra.mxu0 %v3851_v16  ;;  %v4479_v16 = vld [vmem:[%s5706_s2 + $0xa8] sm:$0xff]  ;;  %5840 = vst [vmem:[#allocation19_spill] sm:$0xff] %v4556_v29  ;;  %v4563_v30 = vld [vmem:[%s5706_s2 + $0x40] sm:$0xff] }
  0x8e   :  { %1397 = vmatprep.subr.mxu1 %v3955_v31  ;;  %1362 = vmatprep.mubr.f32.mxu0 %v5715_v5  ;;  %5829 = vst [vmem:[#allocation8_spill] sm:$0xff] %v4479_v16  ;;  %5841 = vst [vmem:[#allocation20_spill] sm:$0xff] %v4563_v30  ;;  %v4568_v31 = vld [vmem:[%s5706_s2 + $0x70] sm:$0xff] }
  0x8f   :  { %1398 = vmatpush1.msra.mxu1 %v3962_v32  ;;  %1529 = vmatprep.subr.mxu0 %v4242_v40  ;;  %5842 = vst [vmem:[#allocation21_spill] sm:$0xff] %v4568_v31  ;;  %v4575_v32 = vld [vmem:[%s5706_s2 + $0x28] sm:$0xff] }
  0x90   :  { %1399 = vmatprep.subr.mxu1 %v3969_v33  ;;  %3367 = vmatmul.mubr.msk.f32.vlgmr.msra.gmra.mxu0 %vm85_vm1, %v3364_v41  ;;  %5843 = vst [vmem:[#allocation22_spill] sm:$0xff] %v4575_v32  ;;  %v4580_v33 = vld [vmem:[%s5706_s2 + $0x58] sm:$0xff] }
  0x91   :  { %1400 = vmatpush1.msra.mxu1 %v3976_v34  ;;  %1433 = vmatprep.mubr.f32.mxu1 %v5715_v5  ;;  %5844 = vst [vmem:[#allocation23_spill] sm:$0xff] %v4580_v33  ;;  %v4587_v34 = vld [vmem:[%s5706_s2 + $0x20] sm:$0xff] }
  0x92   :  { %1530 = vmatpush1.msra.mxu0 %v4256_v42  ;;  %3370 = vmatmul.mubr.msk.f32.vlgmr.msra.gmra.mxu1 %vm85_vm1, %v3364_v41  ;;  %5845 = vst [vmem:[#allocation24_spill] sm:$0xff] %v4587_v34  ;;  %v4625_v41 = vld [vmem:[%s5706_s2 + $0x18] sm:$0xff] }
  0x93   :  { %1531 = vmatprep.subr.mxu0 %v4263_v43  ;;  %1600 = vmatprep.subr.mxu1 %v4268_v44  ;;  %5851 = vst [vmem:[#allocation30_spill] sm:$0xff] %v4625_v41 }
  0x94   :  { %1532 = vmatpush1.msra.mxu0 %v4275_v45  ;;  %1601 = vmatpush1.msra.mxu1 %v4280_v46 }
  0x95   :  { %1533 = vmatprep.subr.mxu0 %v4287_v47  ;;  %1602 = vmatprep.subr.mxu1 %v4292_v48 }
  0x96   :  { %1534 = vmatpush1.msra.mxu0 %v4299_v49  ;;  %1603 = vmatpush1.msra.mxu1 %v4304_v50 }
  0x97   :  { %1535 = vmatprep.subr.mxu0 %v4311_v51  ;;  %1604 = vmatprep.subr.mxu1 %v4316_v52 }
  0x98   :  { %1536 = vmatpush1.msra.mxu0 %v4323_v53  ;;  %1605 = vmatpush1.msra.mxu1 %v4328_v54 }
  0x99   :  { %1537 = vmatprep.subr.mxu0 %v4335_v55  ;;  %1606 = vmatprep.subr.mxu1 %v4340_v56 }
  0x9a   :  { %1538 = vmatpush1.msra.mxu0 %v4347_v57  ;;  %1607 = vmatpush1.msra.mxu1 %v4352_v58 }
  0x9b   :  { %1539 = vmatprep.subr.mxu0 %v4359_v59  ;;  %1608 = vmatprep.subr.mxu1 %v4364_v60 }
  0x9c   :  { %1540 = vmatpush1.msra.mxu0 %v4371_v61  ;;  %1609 = vmatpush1.msra.mxu1 %v4376_v62 }
  0x9d   :  { %1541 = vmatprep.subr.mxu0 %v4383_v63  ;;  %1610 = vmatprep.subr.mxu1 %v4388_v0 }
  0x9e   :  { %1542 = vmatpush1.msra.mxu0 %v4395_v1  ;;  %1611 = vmatpush1.msra.mxu1 %v4400_v2 }
  0x9f   :  { %1543 = vmatprep.subr.mxu0 %v4407_v3  ;;  %1612 = vmatprep.subr.mxu1 %v4412_v4 }
  0xa0   :  { %1544 = vmatpush1.msra.mxu0 %v4419_v6  ;;  %1613 = vmatpush1.msra.mxu1 %v4424_v7 }
  0xa1   :  { %1545 = vmatprep.subr.mxu0 %v4431_v8  ;;  %1614 = vmatprep.subr.mxu1 %v4436_v9 }
  0xa2   :  { %1546 = vmatpush1.msra.mxu0 %v4443_v10  ;;  %1615 = vmatpush1.msra.mxu1 %v4448_v11 }
  0xa3   :  { %1547 = vmatprep.subr.mxu0 %v4455_v12  ;;  %1616 = vmatprep.subr.mxu1 %v4460_v13 }
  0xa4   :  { %1548 = vmatpush1.msra.mxu0 %v4467_v14  ;;  %1617 = vmatpush1.msra.mxu1 %v4472_v15 }
  0xa5   :  { %1549 = vmatprep.subr.mxu0 %v4479_v16  ;;  %1618 = vmatprep.subr.mxu1 %v4484_v17 }
  0xa6   :  { %1550 = vmatpush1.msra.mxu0 %v4491_v18  ;;  %1619 = vmatpush1.msra.mxu1 %v4496_v19 }
  0xa7   :  { %1551 = vmatprep.subr.mxu0 %v4503_v20  ;;  %1620 = vmatprep.subr.mxu1 %v4508_v21 }
  0xa8   :  { %1552 = vmatpush1.msra.mxu0 %v4515_v22  ;;  %1621 = vmatpush1.msra.mxu1 %v4520_v23 }
  0xa9   :  { %1553 = vmatprep.subr.mxu0 %v4527_v24  ;;  %1622 = vmatprep.subr.mxu1 %v4532_v25 }
  0xaa   :  { %1554 = vmatpush1.msra.mxu0 %v4539_v26  ;;  %1623 = vmatpush1.msra.mxu1 %v4544_v27 }
  0xab   :  { %1555 = vmatprep.subr.mxu0 %v4551_v28  ;;  %1624 = vmatprep.subr.mxu1 %v4556_v29 }
  0xac   :  { %1556 = vmatpush1.msra.mxu0 %v4563_v30  ;;  %1625 = vmatpush1.msra.mxu1 %v4568_v31 }
  0xad   :  { %1557 = vmatprep.subr.mxu0 %v4575_v32  ;;  %1626 = vmatprep.subr.mxu1 %v4580_v33 }
  0xae   :  { %1558 = vmatpush1.msra.mxu0 %v4587_v34  ;;  %1627 = vmatpush1.msra.mxu1 %v4592_v35  ;;  %v4632_v34 = vld [vmem:[%s5706_s2 + $0x10] sm:$0xff] }
  0xaf   :  { %1559 = vmatprep.subr.mxu0 %v4599_v36  ;;  %1628 = vmatprep.subr.mxu1 %v4604_v37  ;;  %5852 = vst [vmem:[#allocation31_spill] sm:$0xff] %v4632_v34 }
  0xb0   :  { %1560 = vmatpush1.msra.mxu0 %v4611_v38  ;;  %1593 = vmatprep.mubr.f32.mxu0 %v5715_v5 }
  0xb1   :  { %1629 = vmatpush1.msra.mxu1 %v4618_v39  ;;  %1594 = vmatmul.mubr.f32.vlgmr.msra.gmra.mxu0 %v5715_v5 }
  0xb2   :  { %1630 = vmatprep.subr.mxu1 %v4625_v41  ;;  %1664 = vmatprep.mubr.f32.mxu1 %v5715_v5 }
  0xb3   :  { %1631 = vmatpush1.msra.mxu1 %v4632_v34  ;;  %1726 = vmatprep.subr.mxu0 %v4242_v40 }
  0xb4   :  { %1665 = vmatmul.mubr.f32.vlgmr.msra.gmra.mxu1 %v5715_v5  ;;  %1797 = vmatprep.subr.mxu1 %v4268_v44  ;;  %v64_v5 = vlaneseq }
  0xb5   :  { %1727 = vmatpush1.msra.mxu0 %v4256_v42  ;;  %1798 = vmatpush1.msra.mxu1 %v4280_v46 }
  0xb6   :  { %1728 = vmatprep.subr.mxu0 %v4263_v43  ;;  %1799 = vmatprep.subr.mxu1 %v4292_v48 }
  0xb7   :  { %1729 = vmatpush1.msra.mxu0 %v4275_v45  ;;  %1800 = vmatpush1.msra.mxu1 %v4304_v50 }
  0xb8   :  { %1730 = vmatprep.subr.mxu0 %v4287_v47  ;;  %1801 = vmatprep.subr.mxu1 %v4316_v52 }
  0xb9   :  { %1731 = vmatpush1.msra.mxu0 %v4299_v49  ;;  %1802 = vmatpush1.msra.mxu1 %v4328_v54 }
  0xba   :  { %1732 = vmatprep.subr.mxu0 %v4311_v51  ;;  %1803 = vmatprep.subr.mxu1 %v4340_v56 }
  0xbb   :  { %1733 = vmatpush1.msra.mxu0 %v4323_v53  ;;  %1804 = vmatpush1.msra.mxu1 %v4352_v58 }
  0xbc   :  { %1734 = vmatprep.subr.mxu0 %v4335_v55  ;;  %1805 = vmatprep.subr.mxu1 %v4364_v60 }
  0xbd   :  { %1735 = vmatpush1.msra.mxu0 %v4347_v57  ;;  %1806 = vmatpush1.msra.mxu1 %v4376_v62 }
  0xbe   :  { %1736 = vmatprep.subr.mxu0 %v4359_v59  ;;  %1807 = vmatprep.subr.mxu1 %v4388_v0 }
  0xbf   :  { %1737 = vmatpush1.msra.mxu0 %v4371_v61  ;;  %1808 = vmatpush1.msra.mxu1 %v4400_v2 }
  0xc0   :  { %1738 = vmatprep.subr.mxu0 %v4383_v63  ;;  %1809 = vmatprep.subr.mxu1 %v4412_v4 }
  0xc1   :  { %1739 = vmatpush1.msra.mxu0 %v4395_v1  ;;  %1810 = vmatpush1.msra.mxu1 %v4424_v7 }
  0xc2   :  { %1740 = vmatprep.subr.mxu0 %v4407_v3  ;;  %1811 = vmatprep.subr.mxu1 %v4436_v9 }
  0xc3   :  { %1741 = vmatpush1.msra.mxu0 %v4419_v6  ;;  %1812 = vmatpush1.msra.mxu1 %v4448_v11 }
  0xc4   :  { %1742 = vmatprep.subr.mxu0 %v4431_v8  ;;  %1813 = vmatprep.subr.mxu1 %v4460_v13 }
  0xc5   :  { %1743 = vmatpush1.msra.mxu0 %v4443_v10  ;;  %1814 = vmatpush1.msra.mxu1 %v4472_v15 }
  0xc6   :  { %1744 = vmatprep.subr.mxu0 %v4455_v12  ;;  %1815 = vmatprep.subr.mxu1 %v4484_v17 }
  0xc7   :  { %1745 = vmatpush1.msra.mxu0 %v4467_v14  ;;  %1816 = vmatpush1.msra.mxu1 %v4496_v19 }
  0xc8   :  { %1746 = vmatprep.subr.mxu0 %v4479_v16  ;;  %1817 = vmatprep.subr.mxu1 %v4508_v21 }
  0xc9   :  { %1747 = vmatpush1.msra.mxu0 %v4491_v18  ;;  %1818 = vmatpush1.msra.mxu1 %v4520_v23  ;;  %v65_v18 = vshrl.u32 %v64_v5, 7  ;;  %v62_v5 = vld [vmem:[%s5707_s3] sm:$0xf] }
  0xca   :  { %1748 = vmatprep.subr.mxu0 %v4503_v20  ;;  %1819 = vmatprep.subr.mxu1 %v4532_v25 }
  0xcb   :  { %1749 = vmatpush1.msra.mxu0 %v4515_v22  ;;  %1820 = vmatpush1.msra.mxu1 %v4544_v27 }
  0xcc   :  { %1750 = vmatprep.subr.mxu0 %v4527_v24  ;;  %1821 = vmatprep.subr.mxu1 %v4556_v29  ;;  %v5853_v24 = vld [vmem:[#allocation24_spill] sm:$0xff] }
  0xcd   :  { %1751 = vmatpush1.msra.mxu0 %v4539_v26  ;;  %1822 = vmatpush1.msra.mxu1 %v4568_v31  ;;  %v66_v26 = vsub.s32 0, %v65_v18  ;;  %v74_v31 = vsub.s32 2, %v65_v18 }
  0xce   :  { %1752 = vmatprep.subr.mxu0 %v4551_v28  ;;  %1823 = vmatprep.subr.mxu1 %v4580_v33 }
  0xcf   :  { %1753 = vmatpush1.msra.mxu0 %v4563_v30  ;;  %1824 = vmatpush1.msra.mxu1 %v4592_v35  ;;  %v5854_v35 = vmov 0.0  }
  0xd0   :  { %1754 = vmatprep.subr.mxu0 %v4575_v32  ;;  %1825 = vmatprep.subr.mxu1 %v4604_v37  ;;  %v70_v32 = vsub.s32 1, %v65_v18 }
  0xd1   :  { %1755 = vmatpush1.msra.mxu0 %v5853_v24  ;;  %1826 = vmatpush1.msra.mxu1 %v4618_v39 }
  0xd2   :  { %1756 = vmatprep.subr.mxu0 %v4599_v36  ;;  %1827 = vmatprep.subr.mxu1 %v4625_v41  ;;  %v4711_v36 = vrot.slane %v62_v5, %v66_v26  ;;  %v4713_v39 = vrot.slane %v62_v5, %v70_v32  ;;  %v4717_v33 = vpop.f32.mrf.mxu1  ;;  %v3696_v26 = vmov 1983009808  }
  0xd3   :  { %1757 = vmatpush1.msra.mxu0 %v4611_v38  ;;  %1790 = vmatprep.mubr.f32.mxu0 %v5854_v35 }
  0xd4   :  { %1828 = vmatpush1.msra.mxu1 %v4632_v34  ;;  %1861 = vmatprep.mubr.f32.mxu1 %v5854_v35  ;;  %v4719_v34 = vpop.f32.mrf.mxu1 }
  0xd5   :  { %1923 = vmatprep.subr.mxu0 %v4242_v40  ;;  %1994 = vmatprep.subr.mxu1 %v4268_v44  ;;  %v251_v40 = vunpack.c.l.s4 %v3696_v26 }
  0xd7   :  { %v338_v41 = vpop.f32.mrf.mxu0 }
  0xd8   :  { %v339_v24 = vadd.f32 %v338_v41, %v4711_v36  ;;  %v78_v41 = vsub.s32 3, %v65_v18 }
  0xd9   :  { %v340_v37 = vpop.f32.mrf.mxu0 }
  0xda   :  { %v341_v38 = vadd.f32 %v340_v37, %v4713_v39  ;;  %v4729_v25 = vrot.slane %v62_v5, %v78_v41 }
  0xdc   :  { %v418_v30 = vcombine.low %v339_v24, %v341_v38  ;;  %v252_v24 = vunpack.c.0.s8 %v251_v40  ;;  %v4727_v38 = vrot.slane %v62_v5, %v74_v31 }
  0xe2   :  { %v4721_v28 = vpop.f32.mrf.mxu1 }
  0xe4   :  { %v4725_v27 = vpop.f32.mrf.mxu1 }
  0xeb   :  { %v509_v35 = vpop.f32.mrf.mxu0 }
  0xec   :  { %v510_v44 = vadd.f32 %v509_v35, %v4711_v36  ;;  %v4732_v35 = vsub.s32 %v252_v24, %v65_v18 }
  0xed   :  { %v511_v32 = vpop.f32.mrf.mxu0 }
  0xee   :  { %v512_v29 = vadd.f32 %v511_v32, %v4713_v39  ;;  %v4736_v21 = vrot.slane %v418_v30, %v4732_v35 }
  0xf0   :  { %v589_v37 = vcombine.low %v510_v44, %v512_v29 }
  0xf2   :  { %v409_v22 = vpop.f32.mrf.mxu1 }
  0xf3   :  { %v410_v20 = vadd.f32 %v409_v22, %v4727_v38 }
  0xf4   :  { %v411_v23 = vpop.f32.mrf.mxu1 }
  0xf5   :  { %v412_v26 = vadd.f32 %v411_v23, %v4729_v25 }
  0xf7   :  { %v419_v32 = vcombine.low %v410_v20, %v412_v26  ;;  %v4748_v20 = vrot.slane %v589_v37, %v4732_v35 }
  0xf9   :  { %v4739_v16 = vrot.slane %v419_v32, %v4732_v35  ;;  %5856 = vst [vmem:[#allocation33_spill] sm:$0xff] %v4748_v20 }
  0xfb   :  { %5855 = vst [vmem:[#allocation32_spill] sm:$0xff] %v4739_v16 }
  0xff   :  { %v680_v44 = vpop.f32.mrf.mxu0 }
 0x100   :  { %v681_v29 = vadd.f32 %v680_v44, %v4711_v36 }
 0x101   :  { %v682_v31 = vpop.f32.mrf.mxu0 }
 0x102   :  { %v580_v22 = vpop.f32.mrf.mxu1  ;;  %v683_v18 = vadd.f32 %v682_v31, %v4713_v39 }
 0x103   :  { %v581_v5 = vadd.f32 %v580_v22, %v4727_v38 }
 0x104   :  { %v582_v23 = vpop.f32.mrf.mxu1  ;;  %v760_v41 = vcombine.low %v681_v29, %v683_v18 }
 0x105   :  { %v583_v30 = vadd.f32 %v582_v23, %v4729_v25 }
 0x106   :  { %v4759_v37 = vrot.slane %v760_v41, %v4732_v35 }
 0x107   :  { %v590_v24 = vcombine.low %v581_v5, %v583_v30 }
 0x108   :  { %5858 = vst [vmem:[#allocation35_spill] sm:$0xff] %v4759_v37  ;;  %v5890_v37 = vld [vmem:[#allocation28_spill] sm:$0xff] }
 0x109   :  { %v4751_v26 = vrot.slane %v590_v24, %v4732_v35 }
 0x10b   :  { %5857 = vst [vmem:[#allocation34_spill] sm:$0xff] %v4751_v26 }
 0x112   :  { %v751_v44 = vpop.f32.mrf.mxu1 }
 0x113   :  { %v752_v40 = vadd.f32 %v751_v44, %v4727_v38 }
 0x114   :  { %v753_v31 = vpop.f32.mrf.mxu1  ;;  %v851_v16 = vpop.f32.mrf.mxu0 }
 0x115   :  { %v754_v22 = vadd.f32 %v753_v31, %v4729_v25  ;;  %v852_v29 = vadd.f32 %v851_v16, %v4711_v36 }
 0x116   :  { %v853_v18 = vpop.f32.mrf.mxu0 }
 0x117   :  { %v761_v5 = vcombine.low %v752_v40, %v754_v22  ;;  %v854_v23 = vadd.f32 %v853_v18, %v4713_v39 }
 0x119   :  { %v4763_v30 = vrot.slane %v761_v5, %v4732_v35  ;;  %v931_v24 = vcombine.low %v852_v29, %v854_v23 }
 0x11b   :  { %5859 = vst [vmem:[#allocation36_spill] sm:$0xff] %v4763_v30  ;;  %v4770_v20 = vrot.slane %v931_v24, %v4732_v35 }
 0x11d   :  { %5860 = vst [vmem:[#allocation37_spill] sm:$0xff] %v4770_v20 }
 0x122   :  { %v922_v32 = vpop.f32.mrf.mxu1 }
 0x123   :  { %v923_v26 = vadd.f32 %v922_v32, %v4727_v38 }
 0x124   :  { %v924_v31 = vpop.f32.mrf.mxu1 }
 0x125   :  { %v925_v16 = vadd.f32 %v924_v31, %v4729_v25 }
 0x127   :  { %v932_v41 = vcombine.low %v923_v26, %v925_v16 }
 0x128   :  { %v1022_v40 = vpop.f32.mrf.mxu0 }
 0x129   :  { %v4773_v22 = vrot.slane %v932_v41, %v4732_v35  ;;  %v1023_v18 = vadd.f32 %v1022_v40, %v4711_v36 }
 0x12a   :  { %v1024_v29 = vpop.f32.mrf.mxu0 }
 0x12b   :  { %5861 = vst [vmem:[#allocation38_spill] sm:$0xff] %v4773_v22  ;;  %v1025_v23 = vadd.f32 %v1024_v29, %v4713_v39 }
 0x12d   :  { %v1102_v32 = vcombine.low %v1023_v18, %v1025_v23 }
 0x12f   :  { %v4782_v26 = vrot.slane %v1102_v32, %v4732_v35 }
 0x131   :  { %5862 = vst [vmem:[#allocation39_spill] sm:$0xff] %v4782_v26 }
 0x132   :  { %v1093_v44 = vpop.f32.mrf.mxu1 }
 0x133   :  { %v1094_v31 = vadd.f32 %v1093_v44, %v4727_v38 }
 0x134   :  { %v1095_v30 = vpop.f32.mrf.mxu1 }
 0x135   :  { %v1096_v24 = vadd.f32 %v1095_v30, %v4729_v25 }
 0x137   :  { %v1103_v16 = vcombine.low %v1094_v31, %v1096_v24 }
 0x139   :  { %v4785_v41 = vrot.slane %v1103_v16, %v4732_v35 }
 0x13b   :  { %5863 = vst [vmem:[#allocation40_spill] sm:$0xff] %v4785_v41 }
 0x13c   :  { %v1193_v5 = vpop.f32.mrf.mxu0 }
 0x13d   :  { %v1194_v29 = vadd.f32 %v1193_v5, %v4711_v36  ;;  %v240_v5 = vadd.f32 %v4721_v28, %v4727_v38 }
 0x13e   :  { %v1195_v18 = vpop.f32.mrf.mxu0 }
 0x13f   :  { %v1196_v23 = vadd.f32 %v1195_v18, %v4713_v39 }
 0x141   :  { %v1273_v44 = vcombine.low %v1194_v29, %v1196_v23 }
 0x142   :  { %v1264_v22 = vpop.f32.mrf.mxu1 }
 0x143   :  { %v1265_v30 = vadd.f32 %v1264_v22, %v4727_v38  ;;  %v4794_v31 = vrot.slane %v1273_v44, %v4732_v35 }
 0x144   :  { %v1266_v20 = vpop.f32.mrf.mxu1 }
 0x145   :  { %v1267_v32 = vadd.f32 %v1266_v20, %v4729_v25  ;;  %5864 = vst [vmem:[#allocation41_spill] sm:$0xff] %v4794_v31  ;;  %v5889_v31 = vld [vmem:[#allocation30_spill] sm:$0xff] }
 0x147   :  { %v1274_v24 = vcombine.low %v1265_v30, %v1267_v32 }
 0x149   :  { %v4797_v16 = vrot.slane %v1274_v24, %v4732_v35 }
 0x14b   :  { %5865 = vst [vmem:[#allocation42_spill] sm:$0xff] %v4797_v16 }
 0x150   :  { %v1364_v40 = vpop.f32.mrf.mxu0 }
 0x151   :  { %v1365_v18 = vadd.f32 %v1364_v40, %v4711_v36 }
 0x152   :  { %v1435_v29 = vpop.f32.mrf.mxu1  ;;  %v1366_v23 = vpop.f32.mrf.mxu0 }
 0x153   :  { %v1436_v22 = vadd.f32 %v1435_v29, %v4727_v38  ;;  %v1367_v41 = vadd.f32 %v1366_v23, %v4713_v39  ;;  %v242_v29 = vadd.f32 %v4725_v27, %v4729_v25 }
 0x154   :  { %v1437_v20 = vpop.f32.mrf.mxu1 }
 0x155   :  { %v1444_v26 = vcombine.low %v1365_v18, %v1367_v41  ;;  %v1438_v44 = vadd.f32 %v1437_v20, %v4729_v25  ;;  %v169_v41 = vadd.f32 %v4717_v33, %v4711_v36  ;;  %v249_v23 = vcombine.low %v240_v5, %v242_v29 }
 0x157   :  { %v4806_v30 = vrot.slane %v1444_v26, %v4732_v35  ;;  %v1445_v32 = vcombine.low %v1436_v22, %v1438_v44  ;;  %v171_v26 = vadd.f32 %v4719_v34, %v4713_v39  ;;  %v263_v40 = vrot.slane %v249_v23, %v4732_v35 }
 0x159   :  { %5866 = vst [vmem:[#allocation43_spill] sm:$0xff] %v4806_v30  ;;  %v4809_v24 = vrot.slane %v1445_v32, %v4732_v35  ;;  %v248_v44 = vcombine.low %v169_v41, %v171_v26  ;;  %v5888_v30 = vld [vmem:[#allocation26_spill] sm:$0xff] }
 0x15b   :  { %5867 = vst [vmem:[#allocation44_spill] sm:$0xff] %v4809_v24  ;;  %v256_v28 = vrot.slane %v248_v44, %v4732_v35 }
 0x15d   :  { %v264_v33 = vcombine.low %v256_v28, %v263_v40 }
 0x171   :  { %v1595_v18 = vpop.f32.mrf.mxu0 }
 0x173   :  { %v1597_v22 = vpop.f32.mrf.mxu0 }
 0x174   :  { %v1666_v20 = vpop.f32.mrf.mxu1  ;;  %v1675_v32 = vcombine.low %v1595_v18, %v1597_v22 }
 0x176   :  { %v1668_v16 = vpop.f32.mrf.mxu1  ;;  %v1683_v25 = vrot.slane %v1675_v32, %v4732_v35 }
 0x177   :  { %v1676_v24 = vcombine.low %v1666_v20, %v1668_v16 }
 0x179   :  { %v1690_v27 = vrot.slane %v1676_v24, %v4732_v35 }
 0x17b   :  { %v1691_v36 = vcombine.low %v1683_v25, %v1690_v27 }
 0x17d   :  { %v1693_v38 = vadd.f32 %v1691_v36, %v264_v33 }
 0x17f   :  { %v3371_v34 = vmul.f32 -1.442695, %v1693_v38  ;;  %v1701_v39 = vrot.slane %v1693_v38, 2  ;;  %v1712_v29 = vrot.slane %v1693_v38, 6  ;;  %v1709_v18 = vrot.slane %v1693_v38, 4 }
 0x181   :  { %3477 = vpow2.f32 %v3371_v34  ;;  %v3372_v5 = vmul.f32 -1.442695, %v1701_v39  ;;  %v3373_v41 = vmul.f32 -1.442695, %v1712_v29  ;;  %v5868_v34 = vld [vmem:[#allocation8_spill] sm:$0xff]  ;;  %v5869_v39 = vld [vmem:[#allocation11_spill] sm:$0xff] }
 0x182   :  { %v5871_v29 = vld [vmem:[#allocation13_spill] sm:$0xff] }
 0x183   :  { %3479 = vpow2.f32 %v3372_v5  ;;  %v5870_v5 = vld [vmem:[#allocation9_spill] sm:$0xff] }
 0x184   :  { %3481 = vpow2.f32 %v3373_v41  ;;  %v5872_v41 = vld [vmem:[#allocation10_spill] sm:$0xff] }
 0x18e   :  { %v3478_v26 = vpop.eup %3477 }
 0x18f   :  { %v1697_v23 = vadd.f32 1.0, %v3478_v26  ;;  %v5873_v26 = vld [vmem:[#allocation15_spill] sm:$0xff] }
 0x190   :  { %v3480_v16 = vpop.eup %3479 }
 0x191   :  { %3483 = vrcp.f32 %v1697_v23  ;;  %v1706_v22 = vadd.f32 1.0, %v3480_v16  ;;  %v3482_v24 = vpop.eup %3481  ;;  %v5875_v23 = vld [vmem:[#allocation17_spill] sm:$0xff]  ;;  %v5876_v16 = vld [vmem:[#allocation14_spill] sm:$0xff] }
 0x192   :  { %3485 = vtanh.f32 %v1709_v18  ;;  %v1717_v32 = vadd.f32 1.0, %v3482_v24  ;;  %v5874_v18 = vld [vmem:[#allocation12_spill] sm:$0xff] }
 0x193   :  { %3487 = vrcp.f32 %v1706_v22  ;;  %v5877_v22 = vld [vmem:[#allocation19_spill] sm:$0xff]  ;;  %v5878_v24 = vld [vmem:[#allocation16_spill] sm:$0xff] }
 0x194   :  { %3489 = vrcp.f32 %v1717_v32  ;;  %v5882_v32 = vld [vmem:[#allocation20_spill] sm:$0xff] }
 0x19e   :  { %v3484_v40 = vpop.eup %3483 }
 0x19f   :  { %v3486_v20 = vpop.eup %3485 }
 0x1a0   :  { %v3488_v44 = vpop.eup %3487  ;;  %v1721_v25 = vmul.f32 %v3486_v20, %v3484_v40  ;;  %v5879_v40 = vld [vmem:[#allocation21_spill] sm:$0xff]  ;;  %v5880_v20 = vld [vmem:[#allocation18_spill] sm:$0xff] }
 0x1a1   :  { %v1720_v28 = vmul.f32 0.0, %v3488_v44  ;;  %v3490_v33 = vpop.eup %3489  ;;  %v5881_v44 = vld [vmem:[#allocation23_spill] sm:$0xff] }
 0x1a3   :  { %v4825_v27 = vadd.f32 %v1721_v25, %v1720_v28  ;;  %v5883_v28 = vld [vmem:[#allocation25_spill] sm:$0xff]  ;;  %v5884_v25 = vld [vmem:[#allocation22_spill] sm:$0xff] }
 0x1a5   :  { %3491 = vtanh.f32 %v4825_v27 }
 0x1b2   :  { %v3492_v36 = vpop.eup %3491 }
 0x1b3   :  { %v1724_v38 = vmul.f32 %v3492_v36, %v3490_v33  ;;  %v5885_v33 = vld [vmem:[#allocation27_spill] sm:$0xff]  ;;  %v5886_v36 = vld [vmem:[#allocation24_spill] sm:$0xff] }
 0x1b5   :  { %1791 = vmatmul.mubr.f32.vlgmr.msra.gmra.mxu0 %v1724_v38  ;;  %1862 = vmatmul.mubr.f32.vlgmr.msra.gmra.mxu1 %v1724_v38  ;;  %v5887_v38 = vld [vmem:[#allocation29_spill] sm:$0xff] }
 0x1b6   :  { %1924 = vmatpush1.msra.mxu0 %v4256_v42  ;;  %1995 = vmatpush1.msra.mxu1 %v4280_v46 }
 0x1b7   :  { %1925 = vmatprep.subr.mxu0 %v4263_v43  ;;  %1996 = vmatprep.subr.mxu1 %v4292_v48 }
 0x1b8   :  { %1926 = vmatpush1.msra.mxu0 %v4275_v45  ;;  %1997 = vmatpush1.msra.mxu1 %v4304_v50 }
 0x1b9   :  { %1927 = vmatprep.subr.mxu0 %v4287_v47  ;;  %1998 = vmatprep.subr.mxu1 %v4316_v52 }
 0x1ba   :  { %1928 = vmatpush1.msra.mxu0 %v4299_v49  ;;  %1999 = vmatpush1.msra.mxu1 %v4328_v54 }
 0x1bb   :  { %1929 = vmatprep.subr.mxu0 %v4311_v51  ;;  %2000 = vmatprep.subr.mxu1 %v4340_v56 }
 0x1bc   :  { %1930 = vmatpush1.msra.mxu0 %v4323_v53  ;;  %2001 = vmatpush1.msra.mxu1 %v4352_v58 }
 0x1bd   :  { %1931 = vmatprep.subr.mxu0 %v4335_v55  ;;  %2002 = vmatprep.subr.mxu1 %v4364_v60 }
 0x1be   :  { %1932 = vmatpush1.msra.mxu0 %v4347_v57  ;;  %2003 = vmatpush1.msra.mxu1 %v4376_v62 }
 0x1bf   :  { %1933 = vmatprep.subr.mxu0 %v4359_v59  ;;  %2004 = vmatprep.subr.mxu1 %v4388_v0 }
 0x1c0   :  { %1934 = vmatpush1.msra.mxu0 %v4371_v61  ;;  %2005 = vmatpush1.msra.mxu1 %v4400_v2 }
 0x1c1   :  { %1935 = vmatprep.subr.mxu0 %v4383_v63  ;;  %2006 = vmatprep.subr.mxu1 %v4412_v4 }
 0x1c2   :  { %1936 = vmatpush1.msra.mxu0 %v4395_v1  ;;  %2007 = vmatpush1.msra.mxu1 %v4424_v7 }
 0x1c3   :  { %1937 = vmatprep.subr.mxu0 %v4407_v3  ;;  %2008 = vmatprep.subr.mxu1 %v4436_v9 }
 0x1c4   :  { %1938 = vmatpush1.msra.mxu0 %v4419_v6  ;;  %2009 = vmatpush1.msra.mxu1 %v4448_v11 }
 0x1c5   :  { %1939 = vmatprep.subr.mxu0 %v4431_v8  ;;  %2010 = vmatprep.subr.mxu1 %v4460_v13 }
 0x1c6   :  { %1940 = vmatpush1.msra.mxu0 %v4443_v10  ;;  %2011 = vmatpush1.msra.mxu1 %v4472_v15 }
 0x1c7   :  { %1941 = vmatprep.subr.mxu0 %v4455_v12  ;;  %2012 = vmatprep.subr.mxu1 %v4484_v17 }
 0x1c8   :  { %1942 = vmatpush1.msra.mxu0 %v4467_v14  ;;  %2013 = vmatpush1.msra.mxu1 %v4496_v19 }
 0x1c9   :  { %1943 = vmatprep.subr.mxu0 %v5868_v34  ;;  %2014 = vmatprep.subr.mxu1 %v5869_v39 }
 0x1ca   :  { %1944 = vmatpush1.msra.mxu0 %v5870_v5  ;;  %2015 = vmatpush1.msra.mxu1 %v5871_v29 }
 0x1cb   :  { %1945 = vmatprep.subr.mxu0 %v5872_v41  ;;  %2016 = vmatprep.subr.mxu1 %v5873_v26 }
 0x1cc   :  { %1946 = vmatpush1.msra.mxu0 %v5874_v18  ;;  %2017 = vmatpush1.msra.mxu1 %v5875_v23 }
 0x1cd   :  { %1947 = vmatprep.subr.mxu0 %v5876_v16  ;;  %2018 = vmatprep.subr.mxu1 %v5877_v22  ;;  %v5895_v22 = vld [vmem:[#allocation32_spill] sm:$0xff] }
 0x1ce   :  { %1948 = vmatpush1.msra.mxu0 %v5878_v24  ;;  %2019 = vmatpush1.msra.mxu1 %v5879_v40 }
 0x1cf   :  { %1949 = vmatprep.subr.mxu0 %v5880_v20  ;;  %2020 = vmatprep.subr.mxu1 %v5881_v44  ;;  %v5891_v20 = vmov 0.0   ;;  %v5892_v44 = vld [vmem:[#allocation31_spill] sm:$0xff] }
 0x1d0   :  { %1950 = vmatpush1.msra.mxu0 %v5882_v32  ;;  %2021 = vmatpush1.msra.mxu1 %v5883_v28  ;;  %v5893_v28 = vld [vmem:[#allocation6_spill] sm:$0xff] }
 0x1d1   :  { %1951 = vmatprep.subr.mxu0 %v5884_v25  ;;  %2022 = vmatprep.subr.mxu1 %v5885_v33  ;;  %v5894_v25 = vld [vmem:[#allocation7_spill] sm:$0xff] }
 0x1d2   :  { %1952 = vmatpush1.msra.mxu0 %v5886_v36  ;;  %2023 = vmatpush1.msra.mxu1 %v5887_v38 }
 0x1d3   :  { %1953 = vmatprep.subr.mxu0 %v5888_v30  ;;  %2024 = vmatprep.subr.mxu1 %v5889_v31 }
 0x1d4   :  { %1954 = vmatpush1.msra.mxu0 %v5890_v37  ;;  %1987 = vmatprep.mubr.f32.mxu0 %v5891_v20 }
 0x1d5   :  { %2025 = vmatpush1.msra.mxu1 %v5892_v44  ;;  %2058 = vmatprep.mubr.f32.mxu1 %v5891_v20  ;;  %v5896_v44 = vcombine.low %v4736_v21, %v5895_v22 }
 0x1d6   :  { %2120 = vmatprep.subr.mxu0 %v5893_v28  ;;  %2191 = vmatprep.subr.mxu1 %v5894_v25 }
 0x275   :  { %v1792_v33 = vpop.f32.mrf.mxu0  ;;  %v1863_v36 = vpop.f32.mrf.mxu1 }
 0x277   :  { %v1794_v32 = vpop.f32.mrf.mxu0  ;;  %v1865_v38 = vpop.f32.mrf.mxu1 }
 0x278   :  { %v1872_v40 = vcombine.low %v1792_v33, %v1794_v32  ;;  %v1873_v30 = vcombine.low %v1863_v36, %v1865_v38 }
 0x27a   :  { %v1880_v31 = vrot.slane %v1872_v40, %v4732_v35  ;;  %v1887_v37 = vrot.slane %v1873_v30, %v4732_v35 }
 0x27c   :  { %v1888_v24 = vcombine.low %v1880_v31, %v1887_v37 }
 0x27e   :  { %v1890_v16 = vadd.f32 %v1888_v24, %v5896_v44 }
 0x280   :  { %v3374_v20 = vmul.f32 -1.442695, %v1890_v16  ;;  %v1898_v23 = vrot.slane %v1890_v16, 2  ;;  %v1909_v25 = vrot.slane %v1890_v16, 6  ;;  %v1906_v41 = vrot.slane %v1890_v16, 4 }
 0x282   :  { %3493 = vpow2.f32 %v3374_v20  ;;  %v3375_v28 = vmul.f32 -1.442695, %v1898_v23  ;;  %v3376_v18 = vmul.f32 -1.442695, %v1909_v25 }
 0x284   :  { %3495 = vpow2.f32 %v3375_v28 }
 0x285   :  { %3497 = vpow2.f32 %v3376_v18 }
 0x28f   :  { %v3494_v26 = vpop.eup %3493 }
 0x290   :  { %v1894_v32 = vadd.f32 1.0, %v3494_v26 }
 0x291   :  { %v3496_v33 = vpop.eup %3495 }
 0x292   :  { %3499 = vrcp.f32 %v1894_v32  ;;  %v1903_v40 = vadd.f32 1.0, %v3496_v33  ;;  %v3498_v37 = vpop.eup %3497 }
 0x293   :  { %3501 = vtanh.f32 %v1906_v41  ;;  %v1914_v22 = vadd.f32 1.0, %v3498_v37 }
 0x294   :  { %3503 = vrcp.f32 %v1903_v40 }
 0x295   :  { %3505 = vrcp.f32 %v1914_v22 }
 0x29f   :  { %v3500_v31 = vpop.eup %3499 }
 0x2a0   :  { %v3502_v21 = vpop.eup %3501 }
 0x2a1   :  { %v3504_v30 = vpop.eup %3503  ;;  %v1918_v23 = vmul.f32 %v3502_v21, %v3500_v31 }
 0x2a2   :  { %v1917_v24 = vmul.f32 %v3504_v30, %v4825_v27  ;;  %v3506_v26 = vpop.eup %3505 }
 0x2a4   :  { %v4900_v20 = vadd.f32 %v1918_v23, %v1917_v24  ;;  %v4991_v24 = vld [vmem:[%s5706_s2 + $0x1e0] sm:$0xff]  ;;  %v4997_v23 = vld [vmem:[%s5706_s2 + $0x1f0] sm:$0xff] }
 0x2a6   :  { %3507 = vtanh.f32 %v4900_v20 }
 0x2b3   :  { %v3508_v16 = vpop.eup %3507 }
 0x2b4   :  { %v1921_v18 = vmul.f32 %v3508_v16, %v3506_v26  ;;  %v5009_v26 = vld [vmem:[%s5706_s2 + $0x1d8] sm:$0xff]  ;;  %v5015_v16 = vld [vmem:[%s5706_s2 + $0x1c0] sm:$0xff] }
 0x2b6   :  { %1988 = vmatmul.mubr.f32.vlgmr.msra.gmra.mxu0 %v1921_v18  ;;  %2059 = vmatmul.mubr.f32.vlgmr.msra.gmra.mxu1 %v1921_v18  ;;  %v5021_v18 = vld [vmem:[%s5706_s2 + $0x1d0] sm:$0xff] }
 0x2b7   :  { %2121 = vmatpush1.msra.mxu0 %v4256_v42  ;;  %2192 = vmatpush1.msra.mxu1 %v4280_v46  ;;  %v5897_v42 = vld [vmem:[#allocation10_spill] sm:$0xff]  ;;  %v5900_v46 = vld [vmem:[#allocation17_spill] sm:$0xff] }
 0x2b8   :  { %2122 = vmatprep.subr.mxu0 %v4263_v43  ;;  %2193 = vmatprep.subr.mxu1 %v4292_v48  ;;  %v5898_v43 = vld [vmem:[#allocation15_spill] sm:$0xff] }
 0x2b9   :  { %2123 = vmatpush1.msra.mxu0 %v4275_v45  ;;  %2194 = vmatpush1.msra.mxu1 %v4304_v50  ;;  %v5899_v45 = vld [vmem:[#allocation12_spill] sm:$0xff]  ;;  %v5902_v48 = vld [vmem:[#allocation19_spill] sm:$0xff]  ;;  %v5904_v50 = vld [vmem:[#allocation21_spill] sm:$0xff] }
 0x2ba   :  { %2124 = vmatprep.subr.mxu0 %v4287_v47  ;;  %2195 = vmatprep.subr.mxu1 %v4316_v52  ;;  %v5901_v47 = vld [vmem:[#allocation14_spill] sm:$0xff]  ;;  %v5906_v52 = vld [vmem:[#allocation23_spill] sm:$0xff] }
 0x2bb   :  { %2125 = vmatpush1.msra.mxu0 %v4299_v49  ;;  %2196 = vmatpush1.msra.mxu1 %v4328_v54  ;;  %v5903_v49 = vld [vmem:[#allocation16_spill] sm:$0xff]  ;;  %v5908_v54 = vld [vmem:[#allocation25_spill] sm:$0xff] }
 0x2bc   :  { %2126 = vmatprep.subr.mxu0 %v4311_v51  ;;  %2197 = vmatprep.subr.mxu1 %v4340_v56  ;;  %v5905_v51 = vld [vmem:[#allocation18_spill] sm:$0xff]  ;;  %v5910_v56 = vld [vmem:[#allocation27_spill] sm:$0xff] }
 0x2bd   :  { %2127 = vmatpush1.msra.mxu0 %v4323_v53  ;;  %2198 = vmatpush1.msra.mxu1 %v4352_v58  ;;  %v5907_v53 = vld [vmem:[#allocation20_spill] sm:$0xff]  ;;  %v5912_v58 = vld [vmem:[#allocation29_spill] sm:$0xff] }
 0x2be   :  { %2128 = vmatprep.subr.mxu0 %v4335_v55  ;;  %2199 = vmatprep.subr.mxu1 %v4364_v60  ;;  %v5909_v55 = vld [vmem:[#allocation22_spill] sm:$0xff] }
 0x2bf   :  { %2129 = vmatpush1.msra.mxu0 %v4347_v57  ;;  %2200 = vmatpush1.msra.mxu1 %v4376_v62  ;;  %v5911_v57 = vld [vmem:[#allocation24_spill] sm:$0xff]  ;;  %v5914_v60 = vld [vmem:[#allocation30_spill] sm:$0xff]  ;;  %v5916_v62 = vmov 0.0  }
 0x2c0   :  { %2130 = vmatprep.subr.mxu0 %v4359_v59  ;;  %2201 = vmatprep.subr.mxu1 %v4388_v0  ;;  %v5913_v59 = vld [vmem:[#allocation26_spill] sm:$0xff] }
 0x2c1   :  { %2131 = vmatpush1.msra.mxu0 %v4371_v61  ;;  %2202 = vmatpush1.msra.mxu1 %v4400_v2  ;;  %v5915_v61 = vld [vmem:[#allocation28_spill] sm:$0xff]  ;;  %v4970_v0 = vld [vmem:[%s5706_s2 + $0x1e8] sm:$0xff] }
 0x2c2   :  { %2132 = vmatprep.subr.mxu0 %v4383_v63  ;;  %2203 = vmatprep.subr.mxu1 %v4412_v4  ;;  %v5917_v63 = vld [vmem:[#allocation31_spill] sm:$0xff]  ;;  %5918 = vst [vmem:[#allocation8_spill] sm:$0xff] %v4970_v0 }
 0x2c3   :  { %2133 = vmatpush1.msra.mxu0 %v4395_v1  ;;  %2204 = vmatpush1.msra.mxu1 %v4424_v7  ;;  %v4976_v1 = vld [vmem:[%s5706_s2 + $0x1f8] sm:$0xff] }
 0x2c4   :  { %2134 = vmatprep.subr.mxu0 %v4407_v3  ;;  %2205 = vmatprep.subr.mxu1 %v4436_v9  ;;  %5919 = vst [vmem:[#allocation11_spill] sm:$0xff] %v4976_v1 }
 0x2c5   :  { %2135 = vmatpush1.msra.mxu0 %v4419_v6  ;;  %2206 = vmatpush1.msra.mxu1 %v4448_v11 }
 0x2c6   :  { %2136 = vmatprep.subr.mxu0 %v4431_v8  ;;  %2207 = vmatprep.subr.mxu1 %v4460_v13  ;;  %v5921_v13 = vld [vmem:[#allocation34_spill] sm:$0xff] }
 0x2c7   :  { %2137 = vmatpush1.msra.mxu0 %v4443_v10  ;;  %2208 = vmatpush1.msra.mxu1 %v4472_v15 }
 0x2c8   :  { %2138 = vmatprep.subr.mxu0 %v4455_v12  ;;  %2209 = vmatprep.subr.mxu1 %v4484_v17  ;;  %v5920_v12 = vld [vmem:[#allocation33_spill] sm:$0xff] }
 0x2c9   :  { %2139 = vmatpush1.msra.mxu0 %v4467_v14  ;;  %2210 = vmatpush1.msra.mxu1 %v4496_v19  ;;  %v5922_v14 = vcombine.low %v5920_v12, %v5921_v13  ;;  %v5189_v12 = vld [vmem:[%s5706_s2 + $0xf0] sm:$0xff]  ;;  %v5195_v13 = vld [vmem:[%s5706_s2 + $0xc8] sm:$0xff] }
 0x2ca   :  { %2140 = vmatprep.subr.mxu0 %v5868_v34  ;;  %2211 = vmatprep.subr.mxu1 %v5869_v39 }
 0x2cb   :  { %2141 = vmatpush1.msra.mxu0 %v5870_v5  ;;  %2212 = vmatpush1.msra.mxu1 %v5871_v29 }
 0x2cc   :  { %2142 = vmatprep.subr.mxu0 %v5897_v42  ;;  %2213 = vmatprep.subr.mxu1 %v5898_v43  ;;  %v5027_v42 = vld [vmem:[%s5706_s2 + $0x1a8] sm:$0xff]  ;;  %v5033_v43 = vld [vmem:[%s5706_s2 + $0x1b8] sm:$0xff] }
 0x2cd   :  { %2143 = vmatpush1.msra.mxu0 %v5899_v45  ;;  %2214 = vmatpush1.msra.mxu1 %v5900_v46  ;;  %v5039_v45 = vld [vmem:[%s5706_s2 + $0x1a0] sm:$0xff]  ;;  %v5045_v46 = vld [vmem:[%s5706_s2 + $0x1b0] sm:$0xff] }
 0x2ce   :  { %2144 = vmatprep.subr.mxu0 %v5901_v47  ;;  %2215 = vmatprep.subr.mxu1 %v5902_v48  ;;  %v5051_v47 = vld [vmem:[%s5706_s2 + $0x188] sm:$0xff]  ;;  %v5057_v48 = vld [vmem:[%s5706_s2 + $0x198] sm:$0xff] }
 0x2cf   :  { %2145 = vmatpush1.msra.mxu0 %v5903_v49  ;;  %2216 = vmatpush1.msra.mxu1 %v5904_v50  ;;  %v5063_v49 = vld [vmem:[%s5706_s2 + $0x180] sm:$0xff]  ;;  %v5069_v50 = vld [vmem:[%s5706_s2 + $0x190] sm:$0xff] }
 0x2d0   :  { %2146 = vmatprep.subr.mxu0 %v5905_v51  ;;  %2217 = vmatprep.subr.mxu1 %v5906_v52  ;;  %v5075_v51 = vld [vmem:[%s5706_s2 + $0x168] sm:$0xff]  ;;  %v5081_v52 = vld [vmem:[%s5706_s2 + $0x178] sm:$0xff] }
 0x2d1   :  { %2147 = vmatpush1.msra.mxu0 %v5907_v53  ;;  %2218 = vmatpush1.msra.mxu1 %v5908_v54  ;;  %v5087_v53 = vld [vmem:[%s5706_s2 + $0x160] sm:$0xff]  ;;  %v5093_v54 = vld [vmem:[%s5706_s2 + $0x170] sm:$0xff] }
 0x2d2   :  { %2148 = vmatprep.subr.mxu0 %v5909_v55  ;;  %2219 = vmatprep.subr.mxu1 %v5910_v56  ;;  %v5099_v55 = vld [vmem:[%s5706_s2 + $0x148] sm:$0xff]  ;;  %v5105_v56 = vld [vmem:[%s5706_s2 + $0x158] sm:$0xff] }
 0x2d3   :  { %2149 = vmatpush1.msra.mxu0 %v5911_v57  ;;  %2220 = vmatpush1.msra.mxu1 %v5912_v58  ;;  %v5111_v57 = vld [vmem:[%s5706_s2 + $0x140] sm:$0xff]  ;;  %v5117_v58 = vld [vmem:[%s5706_s2 + $0x150] sm:$0xff] }
 0x2d4   :  { %2150 = vmatprep.subr.mxu0 %v5913_v59  ;;  %2221 = vmatprep.subr.mxu1 %v5914_v60  ;;  %v5123_v59 = vld [vmem:[%s5706_s2 + $0x128] sm:$0xff] }
 0x2d5   :  { %2151 = vmatpush1.msra.mxu0 %v5915_v61  ;;  %2184 = vmatprep.mubr.f32.mxu0 %v5916_v62  ;;  %v5129_v61 = vld [vmem:[%s5706_s2 + $0x138] sm:$0xff] }
 0x2d6   :  { %2222 = vmatpush1.msra.mxu1 %v5917_v63  ;;  %2255 = vmatprep.mubr.f32.mxu1 %v5916_v62 }
 0x2d7   :  { %2317 = vmatprep.subr.mxu0 %v4970_v0  ;;  %2388 = vmatprep.subr.mxu1 %v4976_v1 }
 0x376   :  { %v1989_v2 = vpop.f32.mrf.mxu0  ;;  %v2060_v3 = vpop.f32.mrf.mxu1 }
 0x378   :  { %v1991_v4 = vpop.f32.mrf.mxu0  ;;  %v2062_v6 = vpop.f32.mrf.mxu1 }
 0x379   :  { %v2069_v7 = vcombine.low %v1989_v2, %v1991_v4  ;;  %v2070_v8 = vcombine.low %v2060_v3, %v2062_v6  ;;  %v5135_v2 = vld [vmem:[%s5706_s2 + $0x120] sm:$0xff]  ;;  %v5141_v3 = vld [vmem:[%s5706_s2 + $0x130] sm:$0xff]  ;;  %v5147_v4 = vld [vmem:[%s5706_s2 + $0x108] sm:$0xff] }
 0x37a   :  { %v5153_v6 = vld [vmem:[%s5706_s2 + $0x118] sm:$0xff] }
 0x37b   :  { %v2077_v9 = vrot.slane %v2069_v7, %v4732_v35  ;;  %v2084_v10 = vrot.slane %v2070_v8, %v4732_v35  ;;  %v5159_v7 = vld [vmem:[%s5706_s2 + $0x100] sm:$0xff]  ;;  %v5165_v8 = vld [vmem:[%s5706_s2 + $0x110] sm:$0xff] }
 0x37d   :  { %v2085_v11 = vcombine.low %v2077_v9, %v2084_v10  ;;  %v5171_v9 = vld [vmem:[%s5706_s2 + $0xe8] sm:$0xff]  ;;  %v5177_v10 = vld [vmem:[%s5706_s2 + $0xf8] sm:$0xff] }
 0x37f   :  { %v2087_v15 = vadd.f32 %v2085_v11, %v5922_v14  ;;  %v5183_v11 = vld [vmem:[%s5706_s2 + $0xe0] sm:$0xff]  ;;  %v5201_v14 = vld [vmem:[%s5706_s2 + $0xd8] sm:$0xff] }
 0x381   :  { %v3377_v17 = vmul.f32 -1.442695, %v2087_v15  ;;  %v2095_v19 = vrot.slane %v2087_v15, 2  ;;  %v2106_v34 = vrot.slane %v2087_v15, 6  ;;  %v2103_v29 = vrot.slane %v2087_v15, 4  ;;  %v5207_v15 = vld [vmem:[%s5706_s2 + $0xc0] sm:$0xff] }
 0x383   :  { %3509 = vpow2.f32 %v3377_v17  ;;  %v3378_v27 = vmul.f32 -1.442695, %v2095_v19  ;;  %v3379_v39 = vmul.f32 -1.442695, %v2106_v34  ;;  %v5213_v17 = vld [vmem:[%s5706_s2 + $0xd0] sm:$0xff]  ;;  %v5219_v19 = vld [vmem:[%s5706_s2 + $0xa8] sm:$0xff] }
 0x384   :  { %v5231_v34 = vld [vmem:[%s5706_s2 + $0xa0] sm:$0xff] }
 0x385   :  { %3511 = vpow2.f32 %v3378_v27  ;;  %v5225_v27 = vld [vmem:[%s5706_s2 + $0xb8] sm:$0xff] }
 0x386   :  { %3513 = vpow2.f32 %v3379_v39  ;;  %v5237_v39 = vld [vmem:[%s5706_s2 + $0xb0] sm:$0xff] }
 0x390   :  { %v3510_v5 = vpop.eup %3509 }
 0x391   :  { %v2091_v41 = vadd.f32 1.0, %v3510_v5  ;;  %v5243_v5 = vld [vmem:[%s5706_s2 + $0x88] sm:$0xff] }
 0x392   :  { %v3512_v44 = vpop.eup %3511  ;;  %5923 = vst [vmem:[#allocation9_spill] sm:$0xff] %v5243_v5 }
 0x393   :  { %3515 = vrcp.f32 %v2091_v41  ;;  %v2100_v36 = vadd.f32 1.0, %v3512_v44  ;;  %v3514_v38 = vpop.eup %3513  ;;  %v5255_v41 = vld [vmem:[%s5706_s2 + $0x80] sm:$0xff]  ;;  %v5261_v44 = vld [vmem:[%s5706_s2 + $0x90] sm:$0xff] }
 0x394   :  { %3517 = vtanh.f32 %v2103_v29  ;;  %v2111_v33 = vadd.f32 1.0, %v3514_v38  ;;  %v5249_v29 = vld [vmem:[%s5706_s2 + $0x98] sm:$0xff]  ;;  %5925 = vst [vmem:[#allocation6_spill] sm:$0xff] %v5255_v41  ;;  %5926 = vst [vmem:[#allocation7_spill] sm:$0xff] %v5261_v44 }
 0x395   :  { %3519 = vrcp.f32 %v2100_v36  ;;  %5924 = vst [vmem:[#allocation13_spill] sm:$0xff] %v5249_v29  ;;  %v5267_v36 = vld [vmem:[%s5706_s2 + $0x68] sm:$0xff]  ;;  %v5273_v38 = vld [vmem:[%s5706_s2 + $0x78] sm:$0xff] }
 0x396   :  { %3521 = vrcp.f32 %v2111_v33  ;;  %5927 = vst [vmem:[#allocation32_spill] sm:$0xff] %v5267_v36  ;;  %5928 = vst [vmem:[#allocation10_spill] sm:$0xff] %v5273_v38  ;;  %v5297_v33 = vld [vmem:[%s5706_s2 + $0x58] sm:$0xff] }
 0x397   :  { %5932 = vst [vmem:[#allocation14_spill] sm:$0xff] %v5297_v33 }
 0x3a0   :  { %v3516_v28 = vpop.eup %3515 }
 0x3a1   :  { %v3518_v25 = vpop.eup %3517 }
 0x3a2   :  { %v3520_v32 = vpop.eup %3519  ;;  %v2115_v37 = vmul.f32 %v3518_v25, %v3516_v28  ;;  %v5279_v28 = vld [vmem:[%s5706_s2 + $0x60] sm:$0xff]  ;;  %v5285_v25 = vld [vmem:[%s5706_s2 + $0x70] sm:$0xff] }
 0x3a3   :  { %v2114_v40 = vmul.f32 %v3520_v32, %v4900_v20  ;;  %v3522_v21 = vpop.eup %3521  ;;  %v5003_v20 = vld [vmem:[%s5706_s2 + $0x1c8] sm:$0xff]  ;;  %5929 = vst [vmem:[#allocation15_spill] sm:$0xff] %v5279_v28  ;;  %5930 = vst [vmem:[#allocation12_spill] sm:$0xff] %v5285_v25 }
 0x3a4   :  { %v5291_v32 = vld [vmem:[%s5706_s2 + $0x48] sm:$0xff] }
 0x3a5   :  { %v4985_v31 = vadd.f32 %v2115_v37, %v2114_v40  ;;  %5931 = vst [vmem:[#allocation17_spill] sm:$0xff] %v5291_v32  ;;  %v5303_v40 = vld [vmem:[%s5706_s2 + $0x40] sm:$0xff]  ;;  %v5309_v37 = vld [vmem:[%s5706_s2 + $0x50] sm:$0xff] }
 0x3a6   :  { %5933 = vst [vmem:[#allocation19_spill] sm:$0xff] %v5303_v40  ;;  %5934 = vst [vmem:[#allocation16_spill] sm:$0xff] %v5309_v37 }
 0x3a7   :  { %3523 = vtanh.f32 %v4985_v31 }
 0x3b4   :  { %v3524_v30 = vpop.eup %3523 }
 0x3b5   :  { %v2118_v22 = vmul.f32 %v3524_v30, %v3522_v21  ;;  %v5315_v21 = vld [vmem:[%s5706_s2 + $0x28] sm:$0xff]  ;;  %v5321_v30 = vld [vmem:[%s5706_s2 + $0x38] sm:$0xff] }
 0x3b6   :  { %5935 = vst [vmem:[#allocation21_spill] sm:$0xff] %v5315_v21  ;;  %5936 = vst [vmem:[#allocation18_spill] sm:$0xff] %v5321_v30 }
 0x3b7   :  { %2185 = vmatmul.mubr.f32.vlgmr.msra.gmra.mxu0 %v2118_v22  ;;  %2256 = vmatmul.mubr.f32.vlgmr.msra.gmra.mxu1 %v2118_v22  ;;  %v5327_v22 = vld [vmem:[%s5706_s2 + $0x20] sm:$0xff] }
 0x3b8   :  { %2318 = vmatpush1.msra.mxu0 %v4991_v24  ;;  %2389 = vmatpush1.msra.mxu1 %v4997_v23  ;;  %5937 = vst [vmem:[#allocation23_spill] sm:$0xff] %v5327_v22 }
 0x3b9   :  { %2319 = vmatprep.subr.mxu0 %v5003_v20  ;;  %2390 = vmatprep.subr.mxu1 %v5009_v26 }
 0x3ba   :  { %2320 = vmatpush1.msra.mxu0 %v5015_v16  ;;  %2391 = vmatpush1.msra.mxu1 %v5021_v18 }
 0x3bb   :  { %2321 = vmatprep.subr.mxu0 %v5027_v42  ;;  %2392 = vmatprep.subr.mxu1 %v5033_v43 }
 0x3bc   :  { %2322 = vmatpush1.msra.mxu0 %v5039_v45  ;;  %2393 = vmatpush1.msra.mxu1 %v5045_v46 }
 0x3bd   :  { %2323 = vmatprep.subr.mxu0 %v5051_v47  ;;  %2394 = vmatprep.subr.mxu1 %v5057_v48 }
 0x3be   :  { %2324 = vmatpush1.msra.mxu0 %v5063_v49  ;;  %2395 = vmatpush1.msra.mxu1 %v5069_v50 }
 0x3bf   :  { %2325 = vmatprep.subr.mxu0 %v5075_v51  ;;  %2396 = vmatprep.subr.mxu1 %v5081_v52 }
 0x3c0   :  { %2326 = vmatpush1.msra.mxu0 %v5087_v53  ;;  %2397 = vmatpush1.msra.mxu1 %v5093_v54 }
 0x3c1   :  { %2327 = vmatprep.subr.mxu0 %v5099_v55  ;;  %2398 = vmatprep.subr.mxu1 %v5105_v56 }
 0x3c2   :  { %2328 = vmatpush1.msra.mxu0 %v5111_v57  ;;  %2399 = vmatpush1.msra.mxu1 %v5117_v58 }
 0x3c3   :  { %2329 = vmatprep.subr.mxu0 %v5123_v59  ;;  %2400 = vmatprep.subr.mxu1 %v5129_v61 }
 0x3c4   :  { %2330 = vmatpush1.msra.mxu0 %v5135_v2  ;;  %2401 = vmatpush1.msra.mxu1 %v5141_v3 }
 0x3c5   :  { %2331 = vmatprep.subr.mxu0 %v5147_v4  ;;  %2402 = vmatprep.subr.mxu1 %v5153_v6 }
 0x3c6   :  { %2332 = vmatpush1.msra.mxu0 %v5159_v7  ;;  %2403 = vmatpush1.msra.mxu1 %v5165_v8 }
 0x3c7   :  { %2333 = vmatprep.subr.mxu0 %v5171_v9  ;;  %2404 = vmatprep.subr.mxu1 %v5177_v10 }
 0x3c8   :  { %2334 = vmatpush1.msra.mxu0 %v5183_v11  ;;  %2405 = vmatpush1.msra.mxu1 %v5189_v12 }
 0x3c9   :  { %2335 = vmatprep.subr.mxu0 %v5195_v13  ;;  %2406 = vmatprep.subr.mxu1 %v5201_v14 }
 0x3ca   :  { %2336 = vmatpush1.msra.mxu0 %v5207_v15  ;;  %2407 = vmatpush1.msra.mxu1 %v5213_v17 }
 0x3cb   :  { %2337 = vmatprep.subr.mxu0 %v5219_v19  ;;  %2408 = vmatprep.subr.mxu1 %v5225_v27 }
 0x3cc   :  { %2338 = vmatpush1.msra.mxu0 %v5231_v34  ;;  %2409 = vmatpush1.msra.mxu1 %v5237_v39 }
 0x3cd   :  { %2339 = vmatprep.subr.mxu0 %v5243_v5  ;;  %2410 = vmatprep.subr.mxu1 %v5249_v29 }
 0x3ce   :  { %2340 = vmatpush1.msra.mxu0 %v5255_v41  ;;  %2411 = vmatpush1.msra.mxu1 %v5261_v44 }
 0x3cf   :  { %2341 = vmatprep.subr.mxu0 %v5267_v36  ;;  %2412 = vmatprep.subr.mxu1 %v5273_v38  ;;  %v5942_v38 = vld [vmem:[#allocation36_spill] sm:$0xff] }
 0x3d0   :  { %2342 = vmatpush1.msra.mxu0 %v5279_v28  ;;  %2413 = vmatpush1.msra.mxu1 %v5285_v25  ;;  %v5941_v28 = vld [vmem:[#allocation35_spill] sm:$0xff] }
 0x3d1   :  { %2343 = vmatprep.subr.mxu0 %v5291_v32  ;;  %2414 = vmatprep.subr.mxu1 %v5297_v33 }
 0x3d2   :  { %2344 = vmatpush1.msra.mxu0 %v5303_v40  ;;  %2415 = vmatpush1.msra.mxu1 %v5309_v37  ;;  %v5333_v37 = vld [vmem:[%s5706_s2 + $0x30] sm:$0xff] }
 0x3d3   :  { %2345 = vmatprep.subr.mxu0 %v5315_v21  ;;  %2416 = vmatprep.subr.mxu1 %v5321_v30  ;;  %5938 = vst [vmem:[#allocation20_spill] sm:$0xff] %v5333_v37  ;;  %v5339_v21 = vld [vmem:[%s5706_s2 + $0x8] sm:$0xff] }
 0x3d4   :  { %2346 = vmatpush1.msra.mxu0 %v5327_v22  ;;  %2417 = vmatpush1.msra.mxu1 %v5333_v37  ;;  %5939 = vst [vmem:[#allocation25_spill] sm:$0xff] %v5339_v21  ;;  %v5346_v22 = vld [vmem:[%s5706_s2] sm:$0xff] }
 0x3d5   :  { %2347 = vmatprep.subr.mxu0 %v5339_v21  ;;  %2418 = vmatprep.subr.mxu1 %v5914_v60  ;;  %5940 = vst [vmem:[#allocation22_spill] sm:$0xff] %v5346_v22 }
 0x3d6   :  { %2348 = vmatpush1.msra.mxu0 %v5346_v22  ;;  %2381 = vmatprep.mubr.f32.mxu0 %v5916_v62 }
 0x3d7   :  { %2419 = vmatpush1.msra.mxu1 %v5917_v63  ;;  %2452 = vmatprep.mubr.f32.mxu1 %v5916_v62  ;;  %v5943_v63 = vcombine.low %v5941_v28, %v5942_v38 }
 0x3d8   :  { %2514 = vmatprep.subr.mxu0 %v4970_v0  ;;  %2585 = vmatprep.subr.mxu1 %v4976_v1 }
 0x477   :  { %v2186_v21 = vpop.f32.mrf.mxu0  ;;  %v2257_v37 = vpop.f32.mrf.mxu1 }
 0x479   :  { %v2188_v60 = vpop.f32.mrf.mxu0  ;;  %v2259_v30 = vpop.f32.mrf.mxu1 }
 0x47a   :  { %v2266_v40 = vcombine.low %v2186_v21, %v2188_v60  ;;  %v2267_v33 = vcombine.low %v2257_v37, %v2259_v30  ;;  %v5947_v30 = vld [vmem:[#allocation7_spill] sm:$0xff]  ;;  %v5949_v60 = vld [vmem:[#allocation10_spill] sm:$0xff] }
 0x47c   :  { %v2274_v32 = vrot.slane %v2266_v40, %v4732_v35  ;;  %v2281_v22 = vrot.slane %v2267_v33, %v4732_v35 }
 0x47e   :  { %v2282_v25 = vcombine.low %v2274_v32, %v2281_v22  ;;  %v5948_v22 = vld [vmem:[#allocation32_spill] sm:$0xff] }
 0x480   :  { %v2284_v36 = vadd.f32 %v2282_v25, %v5943_v63  ;;  %v5950_v63 = vld [vmem:[#allocation15_spill] sm:$0xff] }
 0x482   :  { %v3380_v62 = vmul.f32 -1.442695, %v2284_v36  ;;  %v2292_v44 = vrot.slane %v2284_v36, 2  ;;  %v2303_v1 = vrot.slane %v2284_v36, 6  ;;  %v2300_v5 = vrot.slane %v2284_v36, 4  ;;  %v5946_v36 = vld [vmem:[#allocation6_spill] sm:$0xff] }
 0x484   :  { %3525 = vpow2.f32 %v3380_v62  ;;  %v3381_v0 = vmul.f32 -1.442695, %v2292_v44  ;;  %v3382_v41 = vmul.f32 -1.442695, %v2303_v1 }
 0x486   :  { %3527 = vpow2.f32 %v3381_v0 }
 0x487   :  { %3529 = vpow2.f32 %v3382_v41 }
 0x491   :  { %v3526_v29 = vpop.eup %3525 }
 0x492   :  { %v2288_v21 = vadd.f32 1.0, %v3526_v29 }
 0x493   :  { %v3528_v37 = vpop.eup %3527 }
 0x494   :  { %3531 = vrcp.f32 %v2288_v21  ;;  %v2297_v40 = vadd.f32 1.0, %v3528_v37  ;;  %v3530_v32 = vpop.eup %3529  ;;  %v5951_v21 = vld [vmem:[#allocation12_spill] sm:$0xff]  ;;  %v5952_v37 = vld [vmem:[#allocation17_spill] sm:$0xff] }
 0x495   :  { %3533 = vtanh.f32 %v2300_v5  ;;  %v2308_v25 = vadd.f32 1.0, %v3530_v32  ;;  %v5945_v5 = vld [vmem:[#allocation13_spill] sm:$0xff]  ;;  %v5954_v32 = vld [vmem:[#allocation19_spill] sm:$0xff] }
 0x496   :  { %3535 = vrcp.f32 %v2297_v40  ;;  %v5953_v40 = vld [vmem:[#allocation14_spill] sm:$0xff] }
 0x497   :  { %3537 = vrcp.f32 %v2308_v25  ;;  %v5958_v25 = vld [vmem:[#allocation23_spill] sm:$0xff] }
 0x4a1   :  { %v3532_v33 = vpop.eup %3531 }
 0x4a2   :  { %v3534_v38 = vpop.eup %3533 }
 0x4a3   :  { %v3536_v28 = vpop.eup %3535  ;;  %v2312_v44 = vmul.f32 %v3534_v38, %v3532_v33  ;;  %v5955_v33 = vld [vmem:[#allocation16_spill] sm:$0xff]  ;;  %v5956_v38 = vld [vmem:[#allocation21_spill] sm:$0xff] }
 0x4a4   :  { %v2311_v62 = vmul.f32 %v3536_v28, %v4985_v31  ;;  %v3538_v1 = vpop.eup %3537  ;;  %v5944_v31 = vld [vmem:[#allocation9_spill] sm:$0xff]  ;;  %v5957_v28 = vld [vmem:[#allocation18_spill] sm:$0xff] }
 0x4a6   :  { %v5360_v0 = vadd.f32 %v2312_v44, %v2311_v62  ;;  %v5959_v62 = vld [vmem:[#allocation20_spill] sm:$0xff]  ;;  %v5960_v44 = vld [vmem:[#allocation25_spill] sm:$0xff] }
 0x4a8   :  { %3539 = vtanh.f32 %v5360_v0 }
 0x4b5   :  { %v3540_v29 = vpop.eup %3539 }
 0x4b6   :  { %v2315_v41 = vmul.f32 %v3540_v29, %v3538_v1  ;;  %v5425_v1 = vld [vmem:[%s5706_s2 + $0x18] sm:$0xff]  ;;  %v5962_v29 = vld [vmem:[#allocation22_spill] sm:$0xff] }
 0x4b7   :  { %5961 = vst [vmem:[#allocation27_spill] sm:$0xff] %v5425_v1 }
 0x4b8   :  { %2382 = vmatmul.mubr.f32.vlgmr.msra.gmra.mxu0 %v2315_v41  ;;  %2453 = vmatmul.mubr.f32.vlgmr.msra.gmra.mxu1 %v2315_v41  ;;  %v5963_v41 = vmov 0.0  }
 0x4b9   :  { %2515 = vmatpush1.msra.mxu0 %v4991_v24  ;;  %2586 = vmatpush1.msra.mxu1 %v4997_v23 }
 0x4ba   :  { %2516 = vmatprep.subr.mxu0 %v5003_v20  ;;  %2587 = vmatprep.subr.mxu1 %v5009_v26 }
 0x4bb   :  { %2517 = vmatpush1.msra.mxu0 %v5015_v16  ;;  %2588 = vmatpush1.msra.mxu1 %v5021_v18 }
 0x4bc   :  { %2518 = vmatprep.subr.mxu0 %v5027_v42  ;;  %2589 = vmatprep.subr.mxu1 %v5033_v43 }
 0x4bd   :  { %2519 = vmatpush1.msra.mxu0 %v5039_v45  ;;  %2590 = vmatpush1.msra.mxu1 %v5045_v46 }
 0x4be   :  { %2520 = vmatprep.subr.mxu0 %v5051_v47  ;;  %2591 = vmatprep.subr.mxu1 %v5057_v48 }
 0x4bf   :  { %2521 = vmatpush1.msra.mxu0 %v5063_v49  ;;  %2592 = vmatpush1.msra.mxu1 %v5069_v50 }
 0x4c0   :  { %2522 = vmatprep.subr.mxu0 %v5075_v51  ;;  %2593 = vmatprep.subr.mxu1 %v5081_v52 }
 0x4c1   :  { %2523 = vmatpush1.msra.mxu0 %v5087_v53  ;;  %2594 = vmatpush1.msra.mxu1 %v5093_v54 }
 0x4c2   :  { %2524 = vmatprep.subr.mxu0 %v5099_v55  ;;  %2595 = vmatprep.subr.mxu1 %v5105_v56 }
 0x4c3   :  { %2525 = vmatpush1.msra.mxu0 %v5111_v57  ;;  %2596 = vmatpush1.msra.mxu1 %v5117_v58 }
 0x4c4   :  { %2526 = vmatprep.subr.mxu0 %v5123_v59  ;;  %2597 = vmatprep.subr.mxu1 %v5129_v61 }
 0x4c5   :  { %2527 = vmatpush1.msra.mxu0 %v5135_v2  ;;  %2598 = vmatpush1.msra.mxu1 %v5141_v3 }
 0x4c6   :  { %2528 = vmatprep.subr.mxu0 %v5147_v4  ;;  %2599 = vmatprep.subr.mxu1 %v5153_v6 }
 0x4c7   :  { %2529 = vmatpush1.msra.mxu0 %v5159_v7  ;;  %2600 = vmatpush1.msra.mxu1 %v5165_v8 }
 0x4c8   :  { %2530 = vmatprep.subr.mxu0 %v5171_v9  ;;  %2601 = vmatprep.subr.mxu1 %v5177_v10 }
 0x4c9   :  { %2531 = vmatpush1.msra.mxu0 %v5183_v11  ;;  %2602 = vmatpush1.msra.mxu1 %v5189_v12 }
 0x4ca   :  { %2532 = vmatprep.subr.mxu0 %v5195_v13  ;;  %2603 = vmatprep.subr.mxu1 %v5201_v14 }
 0x4cb   :  { %2533 = vmatpush1.msra.mxu0 %v5207_v15  ;;  %2604 = vmatpush1.msra.mxu1 %v5213_v17 }
 0x4cc   :  { %2534 = vmatprep.subr.mxu0 %v5219_v19  ;;  %2605 = vmatprep.subr.mxu1 %v5225_v27 }
 0x4cd   :  { %2535 = vmatpush1.msra.mxu0 %v5231_v34  ;;  %2606 = vmatpush1.msra.mxu1 %v5237_v39 }
 0x4ce   :  { %2536 = vmatprep.subr.mxu0 %v5944_v31  ;;  %2607 = vmatprep.subr.mxu1 %v5945_v5 }
 0x4cf   :  { %2537 = vmatpush1.msra.mxu0 %v5946_v36  ;;  %2608 = vmatpush1.msra.mxu1 %v5947_v30 }
 0x4d0   :  { %2538 = vmatprep.subr.mxu0 %v5948_v22  ;;  %2609 = vmatprep.subr.mxu1 %v5949_v60  ;;  %v5968_v60 = vld [vmem:[#allocation38_spill] sm:$0xff] }
 0x4d1   :  { %2539 = vmatpush1.msra.mxu0 %v5950_v63  ;;  %2610 = vmatpush1.msra.mxu1 %v5951_v21  ;;  %v5967_v63 = vld [vmem:[#allocation37_spill] sm:$0xff] }
 0x4d2   :  { %2540 = vmatprep.subr.mxu0 %v5952_v37  ;;  %2611 = vmatprep.subr.mxu1 %v5953_v40 }
 0x4d3   :  { %2541 = vmatpush1.msra.mxu0 %v5954_v32  ;;  %2612 = vmatpush1.msra.mxu1 %v5955_v33 }
 0x4d4   :  { %2542 = vmatprep.subr.mxu0 %v5956_v38  ;;  %2613 = vmatprep.subr.mxu1 %v5957_v28  ;;  %v5433_v28 = vld [vmem:[%s5706_s2 + $0x10] sm:$0xff] }
 0x4d5   :  { %2543 = vmatpush1.msra.mxu0 %v5958_v25  ;;  %2614 = vmatpush1.msra.mxu1 %v5959_v62  ;;  %5964 = vst [vmem:[#allocation24_spill] sm:$0xff] %v5433_v28  ;;  %v5966_v62 = vld [vmem:[#allocation11_spill] sm:$0xff] }
 0x4d6   :  { %2544 = vmatprep.subr.mxu0 %v5960_v44  ;;  %2615 = vmatprep.subr.mxu1 %v5425_v1  ;;  %v5965_v44 = vld [vmem:[#allocation8_spill] sm:$0xff] }
 0x4d7   :  { %2545 = vmatpush1.msra.mxu0 %v5962_v29  ;;  %2578 = vmatprep.mubr.f32.mxu0 %v5963_v41 }
 0x4d8   :  { %2616 = vmatpush1.msra.mxu1 %v5433_v28  ;;  %2649 = vmatprep.mubr.f32.mxu1 %v5963_v41  ;;  %v5969_v28 = vcombine.low %v5967_v63, %v5968_v60 }
 0x4d9   :  { %2711 = vmatprep.subr.mxu0 %v5965_v44  ;;  %2782 = vmatprep.subr.mxu1 %v5966_v62 }
 0x578   :  { %v2383_v25 = vpop.f32.mrf.mxu0  ;;  %v2454_v38 = vpop.f32.mrf.mxu1 }
 0x57a   :  { %v2385_v1 = vpop.f32.mrf.mxu0  ;;  %v2456_v33 = vpop.f32.mrf.mxu1 }
 0x57b   :  { %v2463_v29 = vcombine.low %v2383_v25, %v2385_v1  ;;  %v2464_v32 = vcombine.low %v2454_v38, %v2456_v33  ;;  %v5974_v1 = vld [vmem:[#allocation32_spill] sm:$0xff] }
 0x57d   :  { %v2471_v40 = vrot.slane %v2463_v29, %v4732_v35  ;;  %v2478_v37 = vrot.slane %v2464_v32, %v4732_v35  ;;  %v5975_v29 = vld [vmem:[#allocation10_spill] sm:$0xff] }
 0x57f   :  { %v2479_v21 = vcombine.low %v2471_v40, %v2478_v37 }
 0x581   :  { %v2481_v22 = vadd.f32 %v2479_v21, %v5969_v28 }
 0x583   :  { %v3383_v41 = vmul.f32 -1.442695, %v2481_v22  ;;  %v2489_v30 = vrot.slane %v2481_v22, 2  ;;  %v2500_v62 = vrot.slane %v2481_v22, 6  ;;  %v2497_v31 = vrot.slane %v2481_v22, 4 }
 0x585   :  { %3541 = vpow2.f32 %v3383_v41  ;;  %v3384_v44 = vmul.f32 -1.442695, %v2489_v30  ;;  %v3385_v36 = vmul.f32 -1.442695, %v2500_v62  ;;  %v5972_v62 = vld [vmem:[#allocation6_spill] sm:$0xff]  ;;  %v5976_v41 = vld [vmem:[#allocation15_spill] sm:$0xff] }
 0x587   :  { %3543 = vpow2.f32 %v3384_v44  ;;  %v5973_v44 = vld [vmem:[#allocation7_spill] sm:$0xff] }
 0x588   :  { %3545 = vpow2.f32 %v3385_v36 }
 0x592   :  { %v3542_v5 = vpop.eup %3541 }
 0x593   :  { %v2485_v25 = vadd.f32 1.0, %v3542_v5 }
 0x594   :  { %v3544_v33 = vpop.eup %3543 }
 0x595   :  { %3547 = vrcp.f32 %v2485_v25  ;;  %v2494_v38 = vadd.f32 1.0, %v3544_v33  ;;  %v3546_v37 = vpop.eup %3545  ;;  %v5977_v25 = vld [vmem:[#allocation12_spill] sm:$0xff]  ;;  %v5978_v33 = vld [vmem:[#allocation17_spill] sm:$0xff] }
 0x596   :  { %3549 = vtanh.f32 %v2497_v31  ;;  %v2505_v21 = vadd.f32 1.0, %v3546_v37  ;;  %v5971_v31 = vld [vmem:[#allocation13_spill] sm:$0xff]  ;;  %v5980_v37 = vld [vmem:[#allocation19_spill] sm:$0xff] }
 0x597   :  { %3551 = vrcp.f32 %v2494_v38  ;;  %v5979_v38 = vld [vmem:[#allocation14_spill] sm:$0xff] }
 0x598   :  { %3553 = vrcp.f32 %v2505_v21  ;;  %v5984_v21 = vld [vmem:[#allocation23_spill] sm:$0xff] }
 0x5a2   :  { %v3548_v40 = vpop.eup %3547 }
 0x5a3   :  { %v3550_v60 = vpop.eup %3549 }
 0x5a4   :  { %v3552_v63 = vpop.eup %3551  ;;  %v2509_v30 = vmul.f32 %v3550_v60, %v3548_v40  ;;  %v5981_v40 = vld [vmem:[#allocation16_spill] sm:$0xff]  ;;  %v5982_v60 = vld [vmem:[#allocation21_spill] sm:$0xff] }
 0x5a5   :  { %v2508_v32 = vmul.f32 %v3552_v63, %v5360_v0  ;;  %v3554_v5 = vpop.eup %3553  ;;  %v5970_v0 = vld [vmem:[#allocation9_spill] sm:$0xff]  ;;  %v5983_v63 = vld [vmem:[#allocation18_spill] sm:$0xff] }
 0x5a7   :  { %v5445_v28 = vadd.f32 %v2509_v30, %v2508_v32  ;;  %v5985_v32 = vld [vmem:[#allocation20_spill] sm:$0xff]  ;;  %v5986_v30 = vld [vmem:[#allocation25_spill] sm:$0xff] }
 0x5a9   :  { %3555 = vtanh.f32 %v5445_v28 }
 0x5b6   :  { %v3556_v22 = vpop.eup %3555 }
 0x5b7   :  { %v2512_v36 = vmul.f32 %v3556_v22, %v3554_v5  ;;  %v5987_v5 = vld [vmem:[#allocation27_spill] sm:$0xff]  ;;  %v5988_v22 = vld [vmem:[#allocation22_spill] sm:$0xff] }
 0x5b9   :  { %2579 = vmatmul.mubr.f32.vlgmr.msra.gmra.mxu0 %v2512_v36  ;;  %2650 = vmatmul.mubr.f32.vlgmr.msra.gmra.mxu1 %v2512_v36  ;;  %v5989_v36 = vmov 0.0  }
 0x5ba   :  { %2712 = vmatpush1.msra.mxu0 %v4991_v24  ;;  %2783 = vmatpush1.msra.mxu1 %v4997_v23 }
 0x5bb   :  { %2713 = vmatprep.subr.mxu0 %v5003_v20  ;;  %2784 = vmatprep.subr.mxu1 %v5009_v26 }
 0x5bc   :  { %2714 = vmatpush1.msra.mxu0 %v5015_v16  ;;  %2785 = vmatpush1.msra.mxu1 %v5021_v18 }
 0x5bd   :  { %2715 = vmatprep.subr.mxu0 %v5027_v42  ;;  %2786 = vmatprep.subr.mxu1 %v5033_v43 }
 0x5be   :  { %2716 = vmatpush1.msra.mxu0 %v5039_v45  ;;  %2787 = vmatpush1.msra.mxu1 %v5045_v46 }
 0x5bf   :  { %2717 = vmatprep.subr.mxu0 %v5051_v47  ;;  %2788 = vmatprep.subr.mxu1 %v5057_v48 }
 0x5c0   :  { %2718 = vmatpush1.msra.mxu0 %v5063_v49  ;;  %2789 = vmatpush1.msra.mxu1 %v5069_v50 }
 0x5c1   :  { %2719 = vmatprep.subr.mxu0 %v5075_v51  ;;  %2790 = vmatprep.subr.mxu1 %v5081_v52 }
 0x5c2   :  { %2720 = vmatpush1.msra.mxu0 %v5087_v53  ;;  %2791 = vmatpush1.msra.mxu1 %v5093_v54 }
 0x5c3   :  { %2721 = vmatprep.subr.mxu0 %v5099_v55  ;;  %2792 = vmatprep.subr.mxu1 %v5105_v56 }
 0x5c4   :  { %2722 = vmatpush1.msra.mxu0 %v5111_v57  ;;  %2793 = vmatpush1.msra.mxu1 %v5117_v58 }
 0x5c5   :  { %2723 = vmatprep.subr.mxu0 %v5123_v59  ;;  %2794 = vmatprep.subr.mxu1 %v5129_v61 }
 0x5c6   :  { %2724 = vmatpush1.msra.mxu0 %v5135_v2  ;;  %2795 = vmatpush1.msra.mxu1 %v5141_v3 }
 0x5c7   :  { %2725 = vmatprep.subr.mxu0 %v5147_v4  ;;  %2796 = vmatprep.subr.mxu1 %v5153_v6 }
 0x5c8   :  { %2726 = vmatpush1.msra.mxu0 %v5159_v7  ;;  %2797 = vmatpush1.msra.mxu1 %v5165_v8 }
 0x5c9   :  { %2727 = vmatprep.subr.mxu0 %v5171_v9  ;;  %2798 = vmatprep.subr.mxu1 %v5177_v10 }
 0x5ca   :  { %2728 = vmatpush1.msra.mxu0 %v5183_v11  ;;  %2799 = vmatpush1.msra.mxu1 %v5189_v12 }
 0x5cb   :  { %2729 = vmatprep.subr.mxu0 %v5195_v13  ;;  %2800 = vmatprep.subr.mxu1 %v5201_v14 }
 0x5cc   :  { %2730 = vmatpush1.msra.mxu0 %v5207_v15  ;;  %2801 = vmatpush1.msra.mxu1 %v5213_v17 }
 0x5cd   :  { %2731 = vmatprep.subr.mxu0 %v5219_v19  ;;  %2802 = vmatprep.subr.mxu1 %v5225_v27 }
 0x5ce   :  { %2732 = vmatpush1.msra.mxu0 %v5231_v34  ;;  %2803 = vmatpush1.msra.mxu1 %v5237_v39 }
 0x5cf   :  { %2733 = vmatprep.subr.mxu0 %v5970_v0  ;;  %2804 = vmatprep.subr.mxu1 %v5971_v31 }
 0x5d0   :  { %2734 = vmatpush1.msra.mxu0 %v5972_v62  ;;  %2805 = vmatpush1.msra.mxu1 %v5973_v44 }
 0x5d1   :  { %2735 = vmatprep.subr.mxu0 %v5974_v1  ;;  %2806 = vmatprep.subr.mxu1 %v5975_v29  ;;  %v5994_v29 = vld [vmem:[#allocation40_spill] sm:$0xff] }
 0x5d2   :  { %2736 = vmatpush1.msra.mxu0 %v5976_v41  ;;  %2807 = vmatpush1.msra.mxu1 %v5977_v25  ;;  %v5993_v41 = vld [vmem:[#allocation39_spill] sm:$0xff] }
 0x5d3   :  { %2737 = vmatprep.subr.mxu0 %v5978_v33  ;;  %2808 = vmatprep.subr.mxu1 %v5979_v38  ;;  %v5990_v38 = vld [vmem:[#allocation24_spill] sm:$0xff] }
 0x5d4   :  { %2738 = vmatpush1.msra.mxu0 %v5980_v37  ;;  %2809 = vmatpush1.msra.mxu1 %v5981_v40  ;;  %v5991_v40 = vld [vmem:[#allocation8_spill] sm:$0xff] }
 0x5d5   :  { %2739 = vmatprep.subr.mxu0 %v5982_v60  ;;  %2810 = vmatprep.subr.mxu1 %v5983_v63  ;;  %v5992_v60 = vld [vmem:[#allocation11_spill] sm:$0xff] }
 0x5d6   :  { %2740 = vmatpush1.msra.mxu0 %v5984_v21  ;;  %2811 = vmatpush1.msra.mxu1 %v5985_v32 }
 0x5d7   :  { %2741 = vmatprep.subr.mxu0 %v5986_v30  ;;  %2812 = vmatprep.subr.mxu1 %v5987_v5 }
 0x5d8   :  { %2742 = vmatpush1.msra.mxu0 %v5988_v22  ;;  %2775 = vmatprep.mubr.f32.mxu0 %v5989_v36 }
 0x5d9   :  { %2813 = vmatpush1.msra.mxu1 %v5990_v38  ;;  %2846 = vmatprep.mubr.f32.mxu1 %v5989_v36  ;;  %v5995_v38 = vcombine.low %v5993_v41, %v5994_v29 }
 0x5da   :  { %2908 = vmatprep.subr.mxu0 %v5991_v40  ;;  %2979 = vmatprep.subr.mxu1 %v5992_v60 }
 0x679   :  { %v2580_v63 = vpop.f32.mrf.mxu0  ;;  %v2651_v21 = vpop.f32.mrf.mxu1 }
 0x67b   :  { %v2582_v37 = vpop.f32.mrf.mxu0  ;;  %v2653_v32 = vpop.f32.mrf.mxu1 }
 0x67c   :  { %v2660_v33 = vcombine.low %v2580_v63, %v2582_v37  ;;  %v2661_v30 = vcombine.low %v2651_v21, %v2653_v32 }
 0x67e   :  { %v2668_v5 = vrot.slane %v2660_v33, %v4732_v35  ;;  %v2675_v22 = vrot.slane %v2661_v30, %v4732_v35 }
 0x680   :  { %v2676_v25 = vcombine.low %v2668_v5, %v2675_v22 }
 0x682   :  { %v2678_v1 = vadd.f32 %v2676_v25, %v5995_v38 }
 0x684   :  { %v3386_v36 = vmul.f32 -1.442695, %v2678_v1  ;;  %v2686_v44 = vrot.slane %v2678_v1, 2  ;;  %v2697_v60 = vrot.slane %v2678_v1, 6  ;;  %v2694_v0 = vrot.slane %v2678_v1, 4 }
 0x686   :  { %3557 = vpow2.f32 %v3386_v36  ;;  %v3387_v40 = vmul.f32 -1.442695, %v2686_v44  ;;  %v3388_v62 = vmul.f32 -1.442695, %v2697_v60 }
 0x688   :  { %3559 = vpow2.f32 %v3387_v40 }
 0x689   :  { %3561 = vpow2.f32 %v3388_v62 }
 0x693   :  { %v3558_v31 = vpop.eup %3557 }
 0x694   :  { %v2682_v37 = vadd.f32 1.0, %v3558_v31 }
 0x695   :  { %v3560_v63 = vpop.eup %3559 }
 0x696   :  { %3563 = vrcp.f32 %v2682_v37  ;;  %v2691_v33 = vadd.f32 1.0, %v3560_v63  ;;  %v3562_v21 = vpop.eup %3561 }
 0x697   :  { %3565 = vtanh.f32 %v2694_v0  ;;  %v2702_v25 = vadd.f32 1.0, %v3562_v21 }
 0x698   :  { %3567 = vrcp.f32 %v2691_v33 }
 0x699   :  { %3569 = vrcp.f32 %v2702_v25  ;;  %v3118_v25 = vld [vmem:[%s5708_s4 + $0x70] sm:$0xff] }
 0x6a3   :  { %v3564_v32 = vpop.eup %3563 }
 0x6a4   :  { %v3566_v29 = vpop.eup %3565 }
 0x6a5   :  { %v3568_v41 = vpop.eup %3567  ;;  %v2706_v44 = vmul.f32 %v3566_v29, %v3564_v32 }
 0x6a6   :  { %v2705_v38 = vmul.f32 %v3568_v41, %v5445_v28  ;;  %v3570_v31 = vpop.eup %3569  ;;  %v3119_v41 = vld [vmem:[%s5708_s4 + $0x78] sm:$0xff] }
 0x6a8   :  { %v5520_v30 = vadd.f32 %v2706_v44, %v2705_v38  ;;  %v3117_v38 = vld [vmem:[%s5708_s4 + $0x68] sm:$0xff]  ;;  %v3116_v44 = vld [vmem:[%s5708_s4 + $0x60] sm:$0xff] }
 0x6aa   :  { %3571 = vtanh.f32 %v5520_v30 }
 0x6b7   :  { %v3572_v1 = vpop.eup %3571 }
 0x6b8   :  { %v2709_v62 = vmul.f32 %v3572_v1, %v3570_v31  ;;  %v3114_v31 = vld [vmem:[%s5708_s4 + $0x50] sm:$0xff]  ;;  %v3113_v1 = vld [vmem:[%s5708_s4 + $0x48] sm:$0xff] }
 0x6ba   :  { %2776 = vmatmul.mubr.f32.vlgmr.msra.gmra.mxu0 %v2709_v62  ;;  %2847 = vmatmul.mubr.f32.vlgmr.msra.gmra.mxu1 %v2709_v62  ;;  %v3112_v62 = vld [vmem:[%s5708_s4 + $0x40] sm:$0xff] }
 0x6bb   :  { %2909 = vmatpush1.msra.mxu0 %v4991_v24  ;;  %2980 = vmatpush1.msra.mxu1 %v4997_v23  ;;  %v5996_v24 = vld [vmem:[#allocation9_spill] sm:$0xff] }
 0x6bc   :  { %2910 = vmatprep.subr.mxu0 %v5003_v20  ;;  %2981 = vmatprep.subr.mxu1 %v5009_v26  ;;  %v5997_v23 = vld [vmem:[#allocation13_spill] sm:$0xff]  ;;  %v5998_v20 = vld [vmem:[#allocation6_spill] sm:$0xff]  ;;  %v5999_v26 = vld [vmem:[#allocation7_spill] sm:$0xff] }
 0x6bd   :  { %2911 = vmatpush1.msra.mxu0 %v5015_v16  ;;  %2982 = vmatpush1.msra.mxu1 %v5021_v18  ;;  %v6000_v16 = vld [vmem:[#allocation32_spill] sm:$0xff]  ;;  %v6001_v18 = vld [vmem:[#allocation10_spill] sm:$0xff] }
 0x6be   :  { %2912 = vmatprep.subr.mxu0 %v5027_v42  ;;  %2983 = vmatprep.subr.mxu1 %v5033_v43  ;;  %v6002_v42 = vld [vmem:[#allocation15_spill] sm:$0xff]  ;;  %v6003_v43 = vld [vmem:[#allocation12_spill] sm:$0xff] }
 0x6bf   :  { %2913 = vmatpush1.msra.mxu0 %v5039_v45  ;;  %2984 = vmatpush1.msra.mxu1 %v5045_v46  ;;  %v6004_v45 = vld [vmem:[#allocation17_spill] sm:$0xff]  ;;  %v6005_v46 = vld [vmem:[#allocation14_spill] sm:$0xff] }
 0x6c0   :  { %2914 = vmatprep.subr.mxu0 %v5051_v47  ;;  %2985 = vmatprep.subr.mxu1 %v5057_v48  ;;  %v6006_v47 = vld [vmem:[#allocation19_spill] sm:$0xff]  ;;  %v6007_v48 = vld [vmem:[#allocation16_spill] sm:$0xff] }
 0x6c1   :  { %2915 = vmatpush1.msra.mxu0 %v5063_v49  ;;  %2986 = vmatpush1.msra.mxu1 %v5069_v50  ;;  %v6008_v49 = vld [vmem:[#allocation21_spill] sm:$0xff]  ;;  %v6009_v50 = vld [vmem:[#allocation18_spill] sm:$0xff] }
 0x6c2   :  { %2916 = vmatprep.subr.mxu0 %v5075_v51  ;;  %2987 = vmatprep.subr.mxu1 %v5081_v52  ;;  %v6010_v51 = vld [vmem:[#allocation23_spill] sm:$0xff]  ;;  %v6011_v52 = vld [vmem:[#allocation20_spill] sm:$0xff] }
 0x6c3   :  { %2917 = vmatpush1.msra.mxu0 %v5087_v53  ;;  %2988 = vmatpush1.msra.mxu1 %v5093_v54  ;;  %v6012_v53 = vld [vmem:[#allocation25_spill] sm:$0xff]  ;;  %v6013_v54 = vld [vmem:[#allocation27_spill] sm:$0xff] }
 0x6c4   :  { %2918 = vmatprep.subr.mxu0 %v5099_v55  ;;  %2989 = vmatprep.subr.mxu1 %v5105_v56  ;;  %v6014_v55 = vld [vmem:[#allocation22_spill] sm:$0xff]  ;;  %v6015_v56 = vmov 0.0  }
 0x6c5   :  { %2919 = vmatpush1.msra.mxu0 %v5111_v57  ;;  %2990 = vmatpush1.msra.mxu1 %v5117_v58  ;;  %v6016_v57 = vld [vmem:[#allocation24_spill] sm:$0xff] }
 0x6c6   :  { %2920 = vmatprep.subr.mxu0 %v5123_v59  ;;  %2991 = vmatprep.subr.mxu1 %v5129_v61 }
 0x6c7   :  { %2921 = vmatpush1.msra.mxu0 %v5135_v2  ;;  %2992 = vmatpush1.msra.mxu1 %v5141_v3 }
 0x6c8   :  { %2922 = vmatprep.subr.mxu0 %v5147_v4  ;;  %2993 = vmatprep.subr.mxu1 %v5153_v6 }
 0x6c9   :  { %2923 = vmatpush1.msra.mxu0 %v5159_v7  ;;  %2994 = vmatpush1.msra.mxu1 %v5165_v8 }
 0x6ca   :  { %2924 = vmatprep.subr.mxu0 %v5171_v9  ;;  %2995 = vmatprep.subr.mxu1 %v5177_v10  ;;  %v6017_v9 = vld [vmem:[#allocation41_spill] sm:$0xff]  ;;  %v6018_v10 = vld [vmem:[#allocation42_spill] sm:$0xff] }
 0x6cb   :  { %2925 = vmatpush1.msra.mxu0 %v5183_v11  ;;  %2996 = vmatpush1.msra.mxu1 %v5189_v12  ;;  %v6019_v11 = vcombine.low %v6017_v9, %v6018_v10 }
 0x6cc   :  { %2926 = vmatprep.subr.mxu0 %v5195_v13  ;;  %2997 = vmatprep.subr.mxu1 %v5201_v14 }
 0x6cd   :  { %2927 = vmatpush1.msra.mxu0 %v5207_v15  ;;  %2998 = vmatpush1.msra.mxu1 %v5213_v17 }
 0x6ce   :  { %2928 = vmatprep.subr.mxu0 %v5219_v19  ;;  %2999 = vmatprep.subr.mxu1 %v5225_v27 }
 0x6cf   :  { %2929 = vmatpush1.msra.mxu0 %v5231_v34  ;;  %3000 = vmatpush1.msra.mxu1 %v5237_v39 }
 0x6d0   :  { %2930 = vmatprep.subr.mxu0 %v5996_v24  ;;  %3001 = vmatprep.subr.mxu1 %v5997_v23  ;;  %v3111_v24 = vld [vmem:[%s5708_s4 + $0x38] sm:$0xff]  ;;  %v3110_v23 = vld [vmem:[%s5708_s4 + $0x30] sm:$0xff] }
 0x6d1   :  { %2931 = vmatpush1.msra.mxu0 %v5998_v20  ;;  %3002 = vmatpush1.msra.mxu1 %v5999_v26  ;;  %v3109_v20 = vld [vmem:[%s5708_s4 + $0x28] sm:$0xff]  ;;  %v3108_v26 = vld [vmem:[%s5708_s4 + $0x20] sm:$0xff] }
 0x6d2   :  { %2932 = vmatprep.subr.mxu0 %v6000_v16  ;;  %3003 = vmatprep.subr.mxu1 %v6001_v18  ;;  %v3107_v16 = vld [vmem:[%s5708_s4 + $0x18] sm:$0xff]  ;;  %v3106_v18 = vld [vmem:[%s5708_s4 + $0x10] sm:$0xff] }
 0x6d3   :  { %2933 = vmatpush1.msra.mxu0 %v6002_v42  ;;  %3004 = vmatpush1.msra.mxu1 %v6003_v43  ;;  %v3105_v42 = vld [vmem:[%s5708_s4 + $0x8] sm:$0xff]  ;;  %v3104_v43 = vld [vmem:[%s5708_s4] sm:$0xff] }
 0x6d4   :  { %2934 = vmatprep.subr.mxu0 %v6004_v45  ;;  %3005 = vmatprep.subr.mxu1 %v6005_v46  ;;  %v3203_v45 = vld [vmem:[%s5710_s6 + $0x28] sm:$0x1f]  ;;  %v3202_v46 = vld [vmem:[%s5710_s6 + $0x20] sm:$0xff] }
 0x6d5   :  { %2935 = vmatpush1.msra.mxu0 %v6006_v47  ;;  %3006 = vmatpush1.msra.mxu1 %v6007_v48  ;;  %v3201_v47 = vld [vmem:[%s5710_s6 + $0x18] sm:$0xff] }
 0x6d6   :  { %2936 = vmatprep.subr.mxu0 %v6008_v49  ;;  %3007 = vmatprep.subr.mxu1 %v6009_v50 }
 0x6d7   :  { %2937 = vmatpush1.msra.mxu0 %v6010_v51  ;;  %3008 = vmatpush1.msra.mxu1 %v6011_v52 }
 0x6d8   :  { %2938 = vmatprep.subr.mxu0 %v6012_v53  ;;  %3009 = vmatprep.subr.mxu1 %v6013_v54 }
 0x6d9   :  { %2939 = vmatpush1.msra.mxu0 %v6014_v55  ;;  %2972 = vmatprep.mubr.f32.mxu0 %v6015_v56 }
 0x6da   :  { %3010 = vmatpush1.msra.mxu1 %v6016_v57  ;;  %3043 = vmatprep.mubr.f32.mxu1 %v6015_v56 }
 0x6db   :  { %3423 = vmatprep.subr.mxu0 %v6015_v56  ;;  %3458 = vmatprep.subr.mxu1 %v6015_v56 }
 0x77a   :  { %v2777_v58 = vpop.f32.mrf.mxu0  ;;  %v2848_v59 = vpop.f32.mrf.mxu1 }
 0x77c   :  { %v2779_v61 = vpop.f32.mrf.mxu0  ;;  %v2850_v2 = vpop.f32.mrf.mxu1 }
 0x77d   :  { %v2857_v3 = vcombine.low %v2777_v58, %v2779_v61  ;;  %v2858_v4 = vcombine.low %v2848_v59, %v2850_v2  ;;  %v6020_v58 = vld [vmem:[#allocation43_spill] sm:$0xff]  ;;  %v6021_v59 = vld [vmem:[#allocation44_spill] sm:$0xff] }
 0x77e   :  { %v6022_v61 = vcombine.low %v6020_v58, %v6021_v59 }
 0x77f   :  { %v2865_v6 = vrot.slane %v2857_v3, %v4732_v35  ;;  %v2872_v7 = vrot.slane %v2858_v4, %v4732_v35 }
 0x781   :  { %v2873_v8 = vcombine.low %v2865_v6, %v2872_v7 }
 0x783   :  { %v2875_v12 = vadd.f32 %v2873_v8, %v6019_v11 }
 0x785   :  { %v3389_v13 = vmul.f32 -1.442695, %v2875_v12  ;;  %v2883_v14 = vrot.slane %v2875_v12, 2  ;;  %v2894_v17 = vrot.slane %v2875_v12, 6  ;;  %v2891_v34 = vrot.slane %v2875_v12, 4 }
 0x787   :  { %3573 = vpow2.f32 %v3389_v13  ;;  %v3390_v15 = vmul.f32 -1.442695, %v2883_v14  ;;  %v3391_v19 = vmul.f32 -1.442695, %v2894_v17 }
 0x789   :  { %3575 = vpow2.f32 %v3390_v15 }
 0x78a   :  { %3577 = vpow2.f32 %v3391_v19 }
 0x794   :  { %v3574_v27 = vpop.eup %3573 }
 0x795   :  { %v2879_v39 = vadd.f32 1.0, %v3574_v27 }
 0x796   :  { %v3576_v28 = vpop.eup %3575 }
 0x797   :  { %3579 = vrcp.f32 %v2879_v39  ;;  %v2888_v0 = vadd.f32 1.0, %v3576_v28  ;;  %v3578_v5 = vpop.eup %3577 }
 0x798   :  { %3581 = vtanh.f32 %v2891_v34  ;;  %v2899_v60 = vadd.f32 1.0, %v3578_v5 }
 0x799   :  { %3583 = vrcp.f32 %v2888_v0 }
 0x79a   :  { %3585 = vrcp.f32 %v2899_v60  ;;  %v3395_v60 = vld [vmem:[%s5709_s5] ss:$0 sm:$0xff]  ;;  %s3698_s5 = smov [#allocation3]  }
 0x7a4   :  { %v3580_v22 = vpop.eup %3579 }
 0x7a5   :  { %v3582_v36 = vpop.eup %3581 }
 0x7a6   :  { %v3584_v40 = vpop.eup %3583  ;;  %v2903_v63 = vmul.f32 %v3582_v36, %v3580_v22  ;;  %v3200_v22 = vld [vmem:[%s5710_s6 + $0x10] sm:$0xff]  ;;  %v3199_v36 = vld [vmem:[%s5710_s6 + $0x8] sm:$0xff] }
 0x7a7   :  { %v2902_v37 = vmul.f32 %v3584_v40, %v5520_v30  ;;  %v3586_v21 = vpop.eup %3585  ;;  %v3115_v30 = vld [vmem:[%s5708_s4 + $0x58] sm:$0xff]  ;;  %v3198_v40 = vld [vmem:[%s5710_s6] sm:$0xff]  ;;  %s3308_s6 = sshll.u32 %s3698_s5, 4  ;;  %s3309_s6 = int_to_ptr.vmem [resolvable:$true] %s3308_s6 }
 0x7a8   :  { %p3678_p1 = scmp.lt.s32.totalorder %s3309_s6, %s3309_s6 }
 0x7a9   :  { %v5595_v33 = vadd.f32 %v2903_v63, %v2902_v37 }
 0x7ab   :  { %3587 = vtanh.f32 %v5595_v33 }
 0x7b8   :  { %v3588_v32 = vpop.eup %3587 }
 0x7b9   :  { %v2906_v29 = vmul.f32 %v3588_v32, %v3586_v21  ;;  %v3396_v32 = vld [vmem:[%s5711_s7] ss:$0 sm:$0xff]  ;;  %s3673_s7 = scalar_lea.vmem %s3309_s6, 32 }
 0x7ba   :  { %p3674_p0 = scmp.ne.s32.totalorder %s3309_s6, %s3673_s7  ;;  %p3679_p2 = scmp.lt.s32.totalorder %s3673_s7, %s3673_s7 }
 0x7bb   :  { %2973 = vmatmul.mubr.f32.vlgmr.msra.gmra.mxu0 %v2906_v29  ;;  %3044 = vmatmul.mubr.f32.vlgmr.msra.gmra.mxu1 %v2906_v29 }
 0x7bc   :  { %3424 = vmatpush3.msra.mxu0 %v3119_v41  ;;  %3455 = vmatprep.mubr.msk.f32.mxu0 %vm3697_vm2, %v6015_v56  ;;  %p3680_p3 = por %p3679_p2, %p3678_p1 }
 0x7bd   :  { %3425 = vmatprep.subr.mxu0 %v6015_v56  ;;  %3470 = vmatprep.mubr.msk.f32.mxu1 %vm3697_vm2, %v6015_v56 }
 0x7be   :  { %3426 = vmatpush3.msra.mxu0 %v3118_v25  ;;  %3459 = vmatpush3.msk.msra.mxu1 %vm3215_vm3, %v3203_v45  ;;  %p3681_p4 = pnand %p3680_p3, %p3674_p0 }
 0x7bf   :  { %3427 = vmatprep.subr.mxu0 %v6015_v56  ;;  %3460 = vmatprep.subr.mxu1 %v6015_v56 }
 0x7c0   :  { %3428 = vmatpush3.msra.mxu0 %v3117_v38  ;;  %3461 = vmatpush3.msra.mxu1 %v3202_v46 }
 0x7c1   :  { %3429 = vmatprep.subr.mxu0 %v6015_v56  ;;  %3462 = vmatprep.subr.mxu1 %v6015_v56 }
 0x7c2   :  { %3430 = vmatpush3.msra.mxu0 %v3116_v44  ;;  %3463 = vmatpush3.msra.mxu1 %v3201_v47 }
 0x7c3   :  { %3431 = vmatprep.subr.mxu0 %v6015_v56  ;;  %3464 = vmatprep.subr.mxu1 %v6015_v56 }
 0x7c4   :  { %3432 = vmatpush3.msra.mxu0 %v3115_v30  ;;  %3465 = vmatpush3.msra.mxu1 %v3200_v22 }
 0x7c5   :  { %3433 = vmatprep.subr.mxu0 %v6015_v56  ;;  %3466 = vmatprep.subr.mxu1 %v6015_v56 }
 0x7c6   :  { %3434 = vmatpush3.msra.mxu0 %v3114_v31  ;;  %3467 = vmatpush3.msra.mxu1 %v3199_v36 }
 0x7c7   :  { %3435 = vmatprep.subr.mxu0 %v6015_v56  ;;  %3468 = vmatprep.subr.mxu1 %v6015_v56 }
 0x7c8   :  { %3436 = vmatpush3.msra.mxu0 %v3113_v1  ;;  %3469 = vmatpush3.msra.mxu1 %v3198_v40 }
 0x7c9   :  { %3437 = vmatprep.subr.mxu0 %v6015_v56 }
 0x7ca   :  { %3438 = vmatpush3.msra.mxu0 %v3112_v62 }
 0x7cb   :  { %3439 = vmatprep.subr.mxu0 %v6015_v56 }
 0x7cc   :  { %3440 = vmatpush3.msra.mxu0 %v3111_v24 }
 0x7cd   :  { %3441 = vmatprep.subr.mxu0 %v6015_v56 }
 0x7ce   :  { %3442 = vmatpush3.msra.mxu0 %v3110_v23 }
 0x7cf   :  { %3443 = vmatprep.subr.mxu0 %v6015_v56 }
 0x7d0   :  { %3444 = vmatpush3.msra.mxu0 %v3109_v20 }
 0x7d1   :  { %3445 = vmatprep.subr.mxu0 %v6015_v56 }
 0x7d2   :  { %3446 = vmatpush3.msra.mxu0 %v3108_v26 }
 0x7d3   :  { %3447 = vmatprep.subr.mxu0 %v6015_v56 }
 0x7d4   :  { %3448 = vmatpush3.msra.mxu0 %v3107_v16 }
 0x7d5   :  { %3449 = vmatprep.subr.mxu0 %v6015_v56 }
 0x7d6   :  { %3450 = vmatpush3.msra.mxu0 %v3106_v18 }
 0x7d7   :  { %3451 = vmatprep.subr.mxu0 %v6015_v56 }
 0x7d8   :  { %3452 = vmatpush3.msra.mxu0 %v3105_v42 }
 0x7d9   :  { %3453 = vmatprep.subr.mxu0 %v6015_v56 }
 0x7da   :  { %3454 = vmatpush3.msra.mxu0 %v3104_v43 }
 0x87b   :  { %v2974_v48 = vpop.f32.mrf.mxu0  ;;  %v3045_v49 = vpop.f32.mrf.mxu1 }
 0x87d   :  { %v2976_v50 = vpop.f32.mrf.mxu0  ;;  %v3047_v51 = vpop.f32.mrf.mxu1 }
 0x87e   :  { %v3054_v52 = vcombine.low %v2974_v48, %v2976_v50  ;;  %v3055_v53 = vcombine.low %v3045_v49, %v3047_v51 }
 0x880   :  { %v3062_v54 = vrot.slane %v3054_v52, %v4732_v35  ;;  %v3069_v55 = vrot.slane %v3055_v53, %v4732_v35 }
 0x882   :  { %v3070_v57 = vcombine.low %v3062_v54, %v3069_v55 }
 0x884   :  { %v3072_v2 = vadd.f32 %v3070_v57, %v6022_v61 }
 0x886   :  { %v3392_v3 = vmul.f32 -1.442695, %v3072_v2  ;;  %v3080_v4 = vrot.slane %v3072_v2, 2  ;;  %v3091_v7 = vrot.slane %v3072_v2, 6  ;;  %v3088_v10 = vrot.slane %v3072_v2, 4 }
 0x888   :  { %3589 = vpow2.f32 %v3392_v3  ;;  %v3393_v6 = vmul.f32 -1.442695, %v3080_v4  ;;  %v3394_v8 = vmul.f32 -1.442695, %v3091_v7 }
 0x88a   :  { %3591 = vpow2.f32 %v3393_v6 }
 0x88b   :  { %3593 = vpow2.f32 %v3394_v8 }
 0x895   :  { %v3590_v9 = vpop.eup %3589 }
 0x896   :  { %v3076_v11 = vadd.f32 1.0, %v3590_v9 }
 0x897   :  { %v3592_v12 = vpop.eup %3591 }
 0x898   :  { %3595 = vrcp.f32 %v3076_v11  ;;  %v3085_v13 = vadd.f32 1.0, %v3592_v12  ;;  %v3594_v35 = vpop.eup %3593 }
 0x899   :  { %3597 = vtanh.f32 %v3088_v10  ;;  %v3096_v19 = vadd.f32 1.0, %v3594_v35 }
 0x89a   :  { %3599 = vrcp.f32 %v3085_v13 }
 0x89b   :  { %3601 = vrcp.f32 %v3096_v19 }
 0x8a5   :  { %v3596_v14 = vpop.eup %3595 }
 0x8a6   :  { %v3598_v15 = vpop.eup %3597 }
 0x8a7   :  { %v3600_v17 = vpop.eup %3599  ;;  %v3100_v34 = vmul.f32 %v3598_v15, %v3596_v14 }
 0x8a8   :  { %v3099_v27 = vmul.f32 %v3600_v17, %v5595_v33  ;;  %v3602_v28 = vpop.eup %3601 }
 0x8aa   :  { %v3101_v39 = vadd.f32 %v3100_v34, %v3099_v27 }
 0x8ac   :  { %3603 = vtanh.f32 %v3101_v39 }
 0x8b9   :  { %v3604_v0 = vpop.eup %3603 }
 0x8ba   :  { %v3103_v5 = vmul.f32 %v3604_v0, %v3602_v28 }
 0x8bc   :  { %3456 = vmatmul.mubr.f32.vlgmr.msra.gmra.mxu0 %v3103_v5 }
 0x97c   :  { %v3193_v37 = vpop.f32.mrf.mxu0 }
 0x97d   :  { %v3194_v63 = vadd.f32 %v3395_v60, %v3193_v37 }
 0x97e   :  { %v3457_v33 = vpop.f32.mrf.mxu0 }
 0x97f   :  { %v3197_v21 = vmax.f32 %v3194_v63, 0.0 }
 0x981   :  { %3471 = vmatmul.mubr.msk.f32.vlgmr.msra.gmra.mxu1 %vm3211_vm4, %v3197_v21 }
 0xa41   :  { %v3285_v29 = vpop.f32.mrf.mxu1 }
 0xa42   :  { %v3286_v41 = vadd.f32 %v3396_v32, %v3285_v29 }
 0xa43   :  { %v3472_v25 = vpop.f32.mrf.mxu1 }
 0xa44   :  { %v3290_v56 = vsel %vm3289_vm5, %v3286_v41, -inf }
 0xa45   :  { %3291 = vmax.xlane.f32.xlu0 %v3290_v56 }
 0xace   :  { %v3292_v38 = vpop.xlane.xlu0 %3291 }
 0xacf   :  { %v3293_v44 = vsub.f32 %v3286_v41, %v3292_v38 }
 0xad1   :  { %v3294_v30 = vmul.f32 1.442695, %v3293_v44 }
 0xad3   :  { %3605 = vpow2.f32 %v3294_v30 }
 0xae0   :  { %v3606_v31 = vpop.eup %3605 }
 0xae1   :  { %v3296_v1 = vsel %vm3289_vm5, %v3606_v31, 0.0 }
 0xae2   :  { %3297 = vadd.xlane.f32.xlu0 %v3296_v1 }
 0xb6b   :  { %v3298_v62 = vpop.xlane.xlu0 %3297 }
 0xb6c   :  { %3607 = vrcp.f32 %v3298_v62 }
 0xb79   :  { %v3608_v24 = vpop.eup %3607 }
 0xb7a   :  { %v3300_v23 = vmul.f32 %v3608_v24, %v3606_v31 }
 0xb7c   :  { %3301 = vst.msk [vmem:[#allocation3] sm:$0x3] %vm3289_vm5, %v3300_v23 }
 0xb7d   :  { %3684 = shalt.err (!%p3681_p4)
}
 0xb7e   :  { %3311 = dma.vmem_to_hbm [thread:$0]  %s3309_s6, 32, %s5712_s8, [#allocation4]  }
 0xb7f   :  { %3693 = dma.done.wait [#allocation4], 32  }
 0xb80   :  { %3694 = vsyncadd [#allocation4], 4294967264 }
 0xb81   :  { %3315 = vsyncpa [#allocation4], 1 }

</bundles_post_ra>
